<compile_context>
chip_gen: v7x
topology: tpu7x:2x2x1
jax: 0.10.0
libtpu: 0.0.40
codegen_flags: <defaults>
</compile_context>

<pallas_src>
import jax
import jax.numpy as jnp
from jax import lax
from jax.experimental import pallas as pl
from jax.experimental.pallas import tpu as pltpu

BN_EPS = 1e-5
LANE = 128


def basic_block_kernel(xp_ref, w1_ref, w2_ref, b1_ref, b2_ref, o_ref, mid_ref):
    """Fused BasicBlock for one (batch, row-tile) grid step.

    xp_ref : (1, H+4, W+2, Cp)  padded input image (rows +2, cols +1, channels -> Cp)
    w1_ref : (3, 3*Cp, Cp)      conv1 weight, BN1 scale folded in, rows = (kw, ci) per kh
    w2_ref : (3, 3*Cp, Cp)      conv2 weight, BN2 scale folded in
    b1_ref : (1, Cp)            folded BN1 bias (f32)
    b2_ref : (1, Cp)            folded BN2 bias (f32)
    o_ref  : (1, TH, W, Cp)     output row tile (compute dtype)
    mid_ref: (TH+2, W+2, Cp)    scratch: column-padded conv1->bn->relu band
    """
    _, _, Wp, Cp = xp_ref.shape
    W = Wp - 2
    TH = o_ref.shape[1]

    h = pl.program_id(1)
    nh = pl.num_programs(1)
    r0 = pl.multiple_of(h * TH, TH)          # first output row of this tile
    f32 = jnp.float32
    cdim = (((2,), (0,)), ((), ()))          # contract last dim against weight rows

    def conv_band(read_band, w_ref, rows):
        # 3 accumulated dots (K = 3*Cp each) instead of one 9*Cp im2col concat.
        acc = jnp.zeros((rows, W, Cp), f32)
        for kh in range(3):
            band = read_band(kh)                                       # (rows, W+2, Cp)
            patches = jnp.concatenate(
                [band[:, dw:dw + W, :] for dw in range(3)], axis=-1)   # (rows, W, 3*Cp)
            acc = acc + lax.dot_general(patches, w_ref[kh], cdim,
                                        preferred_element_type=f32)
        return acc

    # ---- conv1 + BN1 + ReLU over a (TH+2)-row halo band -----------------------
    # Band row i corresponds to conv1 output at global row s = r0 - 1 + i.
    acc1 = conv_band(lambda kh: xp_ref[0, pl.ds(r0 + kh, TH + 2), :, :],
                     w1_ref, TH + 2)
    out1 = jnp.maximum(acc1 + b1_ref[...], 0.0)

    # ---- stage the band into column-padded scratch -----------------------------
    mid_ref[:, 1:W + 1, :] = out1.astype(mid_ref.dtype)
    zcol = jnp.zeros((TH + 2, 1, Cp), mid_ref.dtype)
    mid_ref[:, 0:1, :] = zcol
    mid_ref[:, W + 1:W + 2, :] = zcol

    # Only the first / last row tile touches conv2's zero-padding rows (s = -1 /
    # s = H); zero just those single band rows instead of a full-band iota mask.
    @pl.when(h == 0)
    def _():
        mid_ref[0:1, :, :] = jnp.zeros((1, W + 2, Cp), mid_ref.dtype)

    @pl.when(h == nh - 1)
    def _():
        mid_ref[TH + 1:TH + 2, :, :] = jnp.zeros((1, W + 2, Cp), mid_ref.dtype)

    # ---- conv2 + BN2 + residual + ReLU -----------------------------------------
    acc2 = conv_band(lambda kh: mid_ref[kh:kh + TH, :, :], w2_ref, TH)
    out2 = acc2 + b2_ref[...]

    residual = xp_ref[0, pl.ds(r0 + 2, TH), 1:1 + W, :].astype(f32)
    o_ref[0] = jnp.maximum(out2 + residual, 0.0).astype(o_ref.dtype)


def _pick_row_tile(H, target=16):
    # NOTE: degrades to small divisors for awkward H (e.g. prime H -> 1); for
    # such shapes pad H in the caller instead.
    th = min(target, H)
    while H % th:
        th -= 1
    return th


def basic_block_forward(x_nchw, params, *, compute_dtype=jnp.bfloat16, row_tile=16):
    """x_nchw: (N, C, H, W).  Returns (N, C, H, W) in x_nchw.dtype."""
    w1, w2 = params["w1"], params["w2"]                 # OIHW, like nn.Conv2d
    g1, be1, m1, v1 = params["bn1"]
    g2, be2, m2, v2 = params["bn2"]

    N, C, H, W = x_nchw.shape
    assert w1.shape[0] == C and w2.shape[0] == C, \
        "identity residual requires inplanes == planes"

    Cp = ((C + LANE - 1) // LANE) * LANE                # lane-dense channel count
    TH = _pick_row_tile(H, row_tile)

    # NCHW -> NHWC; pad rows by 2 (halo for the conv1 band feeding conv2),
    # cols by 1 (conv padding), channels up to Cp (lane density).
    x_nhwc = jnp.transpose(x_nchw, (0, 2, 3, 1)).astype(compute_dtype)
    xp = jnp.pad(x_nhwc, ((0, 0), (2, 2), (1, 1), (0, Cp - C)))

    # Fold inference BN into the conv weights (scale) and a per-channel f32 bias.
    def fold(w_oihw, gamma, beta, mean, var):
        scale = gamma / jnp.sqrt(var + BN_EPS)
        bias = beta - mean * scale
        w_hwio = jnp.transpose(w_oihw, (2, 3, 1, 0)) * scale[None, None, None, :]
        w_hwio = jnp.pad(w_hwio, ((0, 0), (0, 0), (0, Cp - C), (0, Cp - C)))
        w_k = w_hwio.reshape(3, 3 * Cp, Cp).astype(compute_dtype)   # rows = (kw, ci)
        b = jnp.pad(bias, (0, Cp - C)).reshape(1, Cp).astype(jnp.float32)
        return w_k, b

    w1f, b1 = fold(w1, g1, be1, m1, v1)
    w2f, b2 = fold(w2, g2, be2, m2, v2)

    # ---- VMEM budget: working set (double-buffered pipelined blocks + scratch +
    # im2col temporaries), clamped to the device's VMEM capacity. -----------------
    isz = jnp.dtype(compute_dtype).itemsize
    img_b = (H + 4) * (W + 2) * Cp * isz
    w_b = 2 * (9 * Cp * Cp * isz)
    out_b = TH * W * Cp * isz
    mid_b = (TH + 2) * (W + 2) * Cp * isz
    tmp_b = (TH + 2) * W * Cp * (3 * isz + 2 * 4)       # patches + f32 accumulators
    working = 2 * img_b + 2 * w_b + 2 * out_b + mid_b + tmp_b
    try:
        cap = getattr(pltpu.get_tpu_info(), "vmem_capacity_bytes", 64 * 2 ** 20)
    except Exception:
        cap = 64 * 2 ** 20
    vmem_limit = int(min(cap, max(2 * working, 32 * 2 ** 20)))

    grid = (N, H // TH)
    out_nhwc = pl.pallas_call(
        basic_block_kernel,
        out_shape=jax.ShapeDtypeStruct((N, H, W, Cp), compute_dtype),
        grid_spec=pltpu.PrefetchScalarGridSpec(
            num_scalar_prefetch=0,
            grid=grid,
            in_specs=[
                # Full padded image per batch element (re-fetched only when n changes).
                pl.BlockSpec((1, H + 4, W + 2, Cp), lambda n, h: (n, 0, 0, 0)),
                pl.BlockSpec((3, 3 * Cp, Cp), lambda n, h: (0, 0, 0)),
                pl.BlockSpec((3, 3 * Cp, Cp), lambda n, h: (0, 0, 0)),
                pl.BlockSpec((1, Cp), lambda n, h: (0, 0)),
                pl.BlockSpec((1, Cp), lambda n, h: (0, 0)),
            ],
            out_specs=pl.BlockSpec((1, TH, W, Cp), lambda n, h: (n, h, 0, 0)),
            scratch_shapes=[pltpu.VMEM((TH + 2, W + 2, Cp), compute_dtype)],
        ),
        compiler_params=pltpu.CompilerParams(
            dimension_semantics=("parallel", "arbitrary"),
            vmem_limit_bytes=vmem_limit),
    )(xp, w1f, w2f, b1, b2)

    # Drop channel padding, back to NCHW, back to the caller's dtype.
    return jnp.transpose(out_nhwc[..., :C], (0, 3, 1, 2)).astype(x_nchw.dtype)


def reference_forward(x_nchw, params):
    """Plain-JAX f32 reference (NCHW, like PyTorch) for correctness checking."""
    w1, w2 = params["w1"], params["w2"]
    g1, be1, m1, v1 = params["bn1"]
    g2, be2, m2, v2 = params["bn2"]

    def conv(x, w):
        return lax.conv_general_dilated(
            x, w, window_strides=(1, 1), padding=((1, 1), (1, 1)),
            dimension_numbers=("NCHW", "OIHW", "NCHW"))

    def bn(x, g, b, m, v):
        sh = (1, -1, 1, 1)
        return (x - m.reshape(sh)) / jnp.sqrt(v.reshape(sh) + BN_EPS) \
            * g.reshape(sh) + b.reshape(sh)

    out = jnp.maximum(bn(conv(x_nchw, w1), g1, be1, m1, v1), 0.0)
    out = bn(conv(out, w2), g2, be2, m2, v2)
    return jnp.maximum(out + x_nchw, 0.0)


if __name__ == "__main__":
    # Small shapes: inplanes = planes = 8, stride = 1, downsample = None
    N, C, H, W = 2, 8, 16, 16

    key = jax.random.PRNGKey(0)
    (k_x, k_w1, k_w2,
     k_g1, k_b1, k_m1, k_v1,
     k_g2, k_b2, k_m2, k_v2) = jax.random.split(key, 11)

    x = jax.random.normal(k_x, (N, C, H, W), dtype=jnp.float32)

    params = {
        "w1": 0.1 * jax.random.normal(k_w1, (C, C, 3, 3), dtype=jnp.float32),
        "w2": 0.1 * jax.random.normal(k_w2, (C, C, 3, 3), dtype=jnp.float32),
        "bn1": (
            1.0 + 0.1 * jax.random.normal(k_g1, (C,), dtype=jnp.float32),   # gamma
            0.1 * jax.random.normal(k_b1, (C,), dtype=jnp.float32),         # beta
            0.1 * jax.random.normal(k_m1, (C,), dtype=jnp.float32),         # running_mean
            jnp.abs(1.0 + 0.1 * jax.random.normal(k_v1, (C,),
                                                  dtype=jnp.float32)),      # running_var
        ),
        "bn2": (
            1.0 + 0.1 * jax.random.normal(k_g2, (C,), dtype=jnp.float32),
            0.1 * jax.random.normal(k_b2, (C,), dtype=jnp.float32),
            0.1 * jax.random.normal(k_m2, (C,), dtype=jnp.float32),
            jnp.abs(1.0 + 0.1 * jax.random.normal(k_v2, (C,),
                                                  dtype=jnp.float32)),
        ),
    }

    ref = jax.block_until_ready(reference_forward(x, params))

    # Default bf16 MXU path (loose tolerance vs the f32 reference).
    out_bf16 = jax.block_until_ready(basic_block_forward(x, params))
    assert out_bf16.shape == (N, C, H, W)
    assert jnp.max(jnp.abs(out_bf16 - ref)) < 8e-2, "bf16 path mismatch vs reference"

    # f32 compute path (tight tolerance).
    out_f32 = jax.block_until_ready(
        basic_block_forward(x, params, compute_dtype=jnp.float32))
    assert out_f32.shape == (N, C, H, W)
    assert jnp.max(jnp.abs(out_f32 - ref)) < 2e-4, "f32 path mismatch vs reference"

    print("KERNEL_OK")
</pallas_src>

<mosaic_0001>
module attributes {stable_mosaic.version = 11 : i64} {
  func.func @basic_block_kernel(%arg0: i32, %arg1: i32, %arg2: memref<1x20x18x128xbf16, #tpu.memory_space<vmem>>, %arg3: memref<3x384x128xbf16, #tpu.memory_space<vmem>>, %arg4: memref<3x384x128xbf16, #tpu.memory_space<vmem>>, %arg5: memref<1x128xf32, #tpu.memory_space<vmem>>, %arg6: memref<1x128xf32, #tpu.memory_space<vmem>>, %arg7: memref<1x16x16x128xbf16, #tpu.memory_space<vmem>>, %arg8: memref<18x18x128xbf16, #tpu.memory_space<vmem>>) attributes {dimension_semantics = [#tpu.dimension_semantics<parallel>, #tpu.dimension_semantics<arbitrary>], iteration_bounds = array<i64: 2, 1>, scalar_prefetch = 0 : i64, scratch_operands = 1 : i64, tpu.core_type = #tpu.core_type<tc>, window_params = [{transform_indices = @transform_0, window_bounds = array<i64: 1, 20, 18, 128>}, {pipeline_mode = #tpu.pipeline_mode<synchronous>, transform_indices = @transform_1, window_bounds = array<i64: 3, 384, 128>}, {pipeline_mode = #tpu.pipeline_mode<synchronous>, transform_indices = @transform_2, window_bounds = array<i64: 3, 384, 128>}, {pipeline_mode = #tpu.pipeline_mode<synchronous>, transform_indices = @transform_3, window_bounds = array<i64: 1, 128>}, {pipeline_mode = #tpu.pipeline_mode<synchronous>, transform_indices = @transform_4, window_bounds = array<i64: 1, 128>}, {transform_indices = @transform_5, window_bounds = array<i64: 1, 16, 16, 128>}]} {
    %c16_i32 = arith.constant 16 : i32
    %0 = arith.muli %arg1, %c16_i32 : i32
    %1 = tpu.assume_multiple %0, 16 : i32
    %cst = arith.constant 0.000000e+00 : f32
    %2 = vector.broadcast %cst : f32 to vector<18x16x128xf32>
    %c0_i32 = arith.constant 0 : i32
    %3 = arith.addi %1, %c0_i32 : i32
    %c0 = arith.constant 0 : index
    %4 = arith.index_cast %3 : i32 to index
    %c0_0 = arith.constant 0 : index
    %c0_1 = arith.constant 0 : index
    %5 = vector.load %arg2[%c0, %4, %c0_0, %c0_1] : memref<1x20x18x128xbf16, #tpu.memory_space<vmem>>, vector<1x18x18x128xbf16>
    %6 = vector.shape_cast %5 : vector<1x18x18x128xbf16> to vector<18x18x128xbf16>
    %7 = vector.extract_strided_slice %6 {offsets = [0, 0, 0], sizes = [18, 16, 128], strides = [1, 1, 1]} : vector<18x18x128xbf16> to vector<18x16x128xbf16>
    %8 = vector.extract_strided_slice %6 {offsets = [0, 1, 0], sizes = [18, 16, 128], strides = [1, 1, 1]} : vector<18x18x128xbf16> to vector<18x16x128xbf16>
    %9 = vector.extract_strided_slice %6 {offsets = [0, 2, 0], sizes = [18, 16, 128], strides = [1, 1, 1]} : vector<18x18x128xbf16> to vector<18x16x128xbf16>
    %10 = tpu.concatenate %7, %8, %9 in 2 : vector<18x16x128xbf16>, vector<18x16x128xbf16>, vector<18x16x128xbf16> -> vector<18x16x384xbf16>
    %c0_2 = arith.constant 0 : index
    %c0_3 = arith.constant 0 : index
    %c0_4 = arith.constant 0 : index
    %11 = vector.load %arg3[%c0_2, %c0_3, %c0_4] : memref<3x384x128xbf16, #tpu.memory_space<vmem>>, vector<1x384x128xbf16>
    %12 = vector.shape_cast %11 : vector<1x384x128xbf16> to vector<384x128xbf16>
    %cst_5 = arith.constant dense<0.000000e+00> : vector<18x16x128xf32>
    %13 = tpu.matmul %10, %12, %cst_5 {dimension_numbers = #tpu.dot_dimension_numbers<[2], [0], [0, 1], [1], [0, 0, 0, 1, 1, 1], [], []>} : vector<18x16x384xbf16>, vector<384x128xbf16>, vector<18x16x128xf32> -> vector<18x16x128xf32>
    %14 = arith.addf %2, %13 : vector<18x16x128xf32>
    %c1_i32 = arith.constant 1 : i32
    %15 = arith.addi %1, %c1_i32 : i32
    %c0_6 = arith.constant 0 : index
    %16 = arith.index_cast %15 : i32 to index
    %c0_7 = arith.constant 0 : index
    %c0_8 = arith.constant 0 : index
    %17 = vector.load %arg2[%c0_6, %16, %c0_7, %c0_8] : memref<1x20x18x128xbf16, #tpu.memory_space<vmem>>, vector<1x18x18x128xbf16>
    %18 = vector.shape_cast %17 : vector<1x18x18x128xbf16> to vector<18x18x128xbf16>
    %19 = vector.extract_strided_slice %18 {offsets = [0, 0, 0], sizes = [18, 16, 128], strides = [1, 1, 1]} : vector<18x18x128xbf16> to vector<18x16x128xbf16>
    %20 = vector.extract_strided_slice %18 {offsets = [0, 1, 0], sizes = [18, 16, 128], strides = [1, 1, 1]} : vector<18x18x128xbf16> to vector<18x16x128xbf16>
    %21 = vector.extract_strided_slice %18 {offsets = [0, 2, 0], sizes = [18, 16, 128], strides = [1, 1, 1]} : vector<18x18x128xbf16> to vector<18x16x128xbf16>
    %22 = tpu.concatenate %19, %20, %21 in 2 : vector<18x16x128xbf16>, vector<18x16x128xbf16>, vector<18x16x128xbf16> -> vector<18x16x384xbf16>
    %c1 = arith.constant 1 : index
    %c0_9 = arith.constant 0 : index
    %c0_10 = arith.constant 0 : index
    %23 = vector.load %arg3[%c1, %c0_9, %c0_10] : memref<3x384x128xbf16, #tpu.memory_space<vmem>>, vector<1x384x128xbf16>
    %24 = vector.shape_cast %23 : vector<1x384x128xbf16> to vector<384x128xbf16>
    %cst_11 = arith.constant dense<0.000000e+00> : vector<18x16x128xf32>
    %25 = tpu.matmul %22, %24, %cst_11 {dimension_numbers = #tpu.dot_dimension_numbers<[2], [0], [0, 1], [1], [0, 0, 0, 1, 1, 1], [], []>} : vector<18x16x384xbf16>, vector<384x128xbf16>, vector<18x16x128xf32> -> vector<18x16x128xf32>
    %26 = arith.addf %14, %25 : vector<18x16x128xf32>
    %c2_i32 = arith.constant 2 : i32
    %27 = arith.addi %1, %c2_i32 : i32
    %c0_12 = arith.constant 0 : index
    %28 = arith.index_cast %27 : i32 to index
    %c0_13 = arith.constant 0 : index
    %c0_14 = arith.constant 0 : index
    %29 = vector.load %arg2[%c0_12, %28, %c0_13, %c0_14] : memref<1x20x18x128xbf16, #tpu.memory_space<vmem>>, vector<1x18x18x128xbf16>
    %30 = vector.shape_cast %29 : vector<1x18x18x128xbf16> to vector<18x18x128xbf16>
    %31 = vector.extract_strided_slice %30 {offsets = [0, 0, 0], sizes = [18, 16, 128], strides = [1, 1, 1]} : vector<18x18x128xbf16> to vector<18x16x128xbf16>
    %32 = vector.extract_strided_slice %30 {offsets = [0, 1, 0], sizes = [18, 16, 128], strides = [1, 1, 1]} : vector<18x18x128xbf16> to vector<18x16x128xbf16>
    %33 = vector.extract_strided_slice %30 {offsets = [0, 2, 0], sizes = [18, 16, 128], strides = [1, 1, 1]} : vector<18x18x128xbf16> to vector<18x16x128xbf16>
    %34 = tpu.concatenate %31, %32, %33 in 2 : vector<18x16x128xbf16>, vector<18x16x128xbf16>, vector<18x16x128xbf16> -> vector<18x16x384xbf16>
    %c2 = arith.constant 2 : index
    %c0_15 = arith.constant 0 : index
    %c0_16 = arith.constant 0 : index
    %35 = vector.load %arg3[%c2, %c0_15, %c0_16] : memref<3x384x128xbf16, #tpu.memory_space<vmem>>, vector<1x384x128xbf16>
    %36 = vector.shape_cast %35 : vector<1x384x128xbf16> to vector<384x128xbf16>
    %cst_17 = arith.constant dense<0.000000e+00> : vector<18x16x128xf32>
    %37 = tpu.matmul %34, %36, %cst_17 {dimension_numbers = #tpu.dot_dimension_numbers<[2], [0], [0, 1], [1], [0, 0, 0, 1, 1, 1], [], []>} : vector<18x16x384xbf16>, vector<384x128xbf16>, vector<18x16x128xf32> -> vector<18x16x128xf32>
    %38 = arith.addf %26, %37 : vector<18x16x128xf32>
    %c0_18 = arith.constant 0 : index
    %c0_19 = arith.constant 0 : index
    %39 = vector.load %arg5[%c0_18, %c0_19] : memref<1x128xf32, #tpu.memory_space<vmem>>, vector<1x128xf32>
    %40 = vector.shape_cast %39 : vector<1x128xf32> to vector<1x1x128xf32>
    %41 = vector.broadcast %40 : vector<1x1x128xf32> to vector<18x16x128xf32>
    %42 = arith.addf %38, %41 : vector<18x16x128xf32>
    %cst_20 = arith.constant 0.000000e+00 : f32
    %43 = vector.broadcast %cst_20 : f32 to vector<18x16x128xf32>
    %44 = arith.maximumf %42, %43 : vector<18x16x128xf32>
    %45 = arith.truncf %44 : vector<18x16x128xf32> to vector<18x16x128xbf16>
    %c0_21 = arith.constant 0 : index
    %c1_22 = arith.constant 1 : index
    %c0_23 = arith.constant 0 : index
    %46 = vector.load %arg8[%c0_21, %c1_22, %c0_23] : memref<18x18x128xbf16, #tpu.memory_space<vmem>>, vector<18x16x128xbf16>
    tpu.vector_store %arg8[%c0_21, %c1_22, %c0_23], %45 {strides = array<i32>} : memref<18x18x128xbf16, #tpu.memory_space<vmem>>, vector<18x16x128xbf16>,
    %cst_24 = arith.constant 0.000000e+00 : bf16
    %47 = vector.broadcast %cst_24 : bf16 to vector<18x1x128xbf16>
    %c0_25 = arith.constant 0 : index
    %c0_26 = arith.constant 0 : index
    %c0_27 = arith.constant 0 : index
    %48 = vector.load %arg8[%c0_25, %c0_26, %c0_27] : memref<18x18x128xbf16, #tpu.memory_space<vmem>>, vector<18x1x128xbf16>
    tpu.vector_store %arg8[%c0_25, %c0_26, %c0_27], %47 {strides = array<i32>} : memref<18x18x128xbf16, #tpu.memory_space<vmem>>, vector<18x1x128xbf16>,
    %c0_28 = arith.constant 0 : index
    %c17 = arith.constant 17 : index
    %c0_29 = arith.constant 0 : index
    %49 = vector.load %arg8[%c0_28, %c17, %c0_29] : memref<18x18x128xbf16, #tpu.memory_space<vmem>>, vector<18x1x128xbf16>
    tpu.vector_store %arg8[%c0_28, %c17, %c0_29], %47 {strides = array<i32>} : memref<18x18x128xbf16, #tpu.memory_space<vmem>>, vector<18x1x128xbf16>,
    %c0_i32_30 = arith.constant 0 : i32
    %50 = arith.cmpi eq, %arg1, %c0_i32_30 : i32
    %51 = arith.extui %50 : i1 to i32
    %c0_i32_31 = arith.constant 0 : i32
    %52 = arith.cmpi ne, %51, %c0_i32_31 : i32
    scf.if %52 {
      %cst_67 = arith.constant 0.000000e+00 : bf16
      %100 = vector.broadcast %cst_67 : bf16 to vector<1x18x128xbf16>
      %c0_68 = arith.constant 0 : index
      %c0_69 = arith.constant 0 : index
      %c0_70 = arith.constant 0 : index
      %101 = vector.load %arg8[%c0_68, %c0_69, %c0_70] : memref<18x18x128xbf16, #tpu.memory_space<vmem>>, vector<1x18x128xbf16>
      tpu.vector_store %arg8[%c0_68, %c0_69, %c0_70], %100 {strides = array<i32>} : memref<18x18x128xbf16, #tpu.memory_space<vmem>>, vector<1x18x128xbf16>,
    } else {
    }
    %c0_i32_32 = arith.constant 0 : i32
    %53 = arith.cmpi eq, %arg1, %c0_i32_32 : i32
    %54 = arith.extui %53 : i1 to i32
    %c0_i32_33 = arith.constant 0 : i32
    %55 = arith.cmpi ne, %54, %c0_i32_33 : i32
    scf.if %55 {
      %cst_67 = arith.constant 0.000000e+00 : bf16
      %100 = vector.broadcast %cst_67 : bf16 to vector<1x18x128xbf16>
      %c17_68 = arith.constant 17 : index
      %c0_69 = arith.constant 0 : index
      %c0_70 = arith.constant 0 : index
      %101 = vector.load %arg8[%c17_68, %c0_69, %c0_70] : memref<18x18x128xbf16, #tpu.memory_space<vmem>>, vector<1x18x128xbf16>
      tpu.vector_store %arg8[%c17_68, %c0_69, %c0_70], %100 {strides = array<i32>} : memref<18x18x128xbf16, #tpu.memory_space<vmem>>, vector<1x18x128xbf16>,
    } else {
    }
    %cst_34 = arith.constant 0.000000e+00 : f32
    %56 = vector.broadcast %cst_34 : f32 to vector<16x16x128xf32>
    %c0_35 = arith.constant 0 : index
    %c0_36 = arith.constant 0 : index
    %c0_37 = arith.constant 0 : index
    %57 = vector.load %arg8[%c0_35, %c0_36, %c0_37] : memref<18x18x128xbf16, #tpu.memory_space<vmem>>, vector<16x18x128xbf16>
    %58 = vector.extract_strided_slice %57 {offsets = [0, 0, 0], sizes = [16, 16, 128], strides = [1, 1, 1]} : vector<16x18x128xbf16> to vector<16x16x128xbf16>
    %59 = vector.extract_strided_slice %57 {offsets = [0, 1, 0], sizes = [16, 16, 128], strides = [1, 1, 1]} : vector<16x18x128xbf16> to vector<16x16x128xbf16>
    %60 = vector.extract_strided_slice %57 {offsets = [0, 2, 0], sizes = [16, 16, 128], strides = [1, 1, 1]} : vector<16x18x128xbf16> to vector<16x16x128xbf16>
    %61 = tpu.concatenate %58, %59, %60 in 2 : vector<16x16x128xbf16>, vector<16x16x128xbf16>, vector<16x16x128xbf16> -> vector<16x16x384xbf16>
    %c0_38 = arith.constant 0 : index
    %c0_39 = arith.constant 0 : index
    %c0_40 = arith.constant 0 : index
    %62 = vector.load %arg4[%c0_38, %c0_39, %c0_40] : memref<3x384x128xbf16, #tpu.memory_space<vmem>>, vector<1x384x128xbf16>
    %63 = vector.shape_cast %62 : vector<1x384x128xbf16> to vector<384x128xbf16>
    %cst_41 = arith.constant dense<0.000000e+00> : vector<16x16x128xf32>
    %64 = tpu.matmul %61, %63, %cst_41 {dimension_numbers = #tpu.dot_dimension_numbers<[2], [0], [0, 1], [1], [0, 0, 0, 1, 1, 1], [], []>} : vector<16x16x384xbf16>, vector<384x128xbf16>, vector<16x16x128xf32> -> vector<16x16x128xf32>
    %65 = arith.addf %56, %64 : vector<16x16x128xf32>
    %c1_42 = arith.constant 1 : index
    %c0_43 = arith.constant 0 : index
    %c0_44 = arith.constant 0 : index
    %66 = vector.load %arg8[%c1_42, %c0_43, %c0_44] : memref<18x18x128xbf16, #tpu.memory_space<vmem>>, vector<16x18x128xbf16>
    %67 = vector.extract_strided_slice %66 {offsets = [0, 0, 0], sizes = [16, 16, 128], strides = [1, 1, 1]} : vector<16x18x128xbf16> to vector<16x16x128xbf16>
    %68 = vector.extract_strided_slice %66 {offsets = [0, 1, 0], sizes = [16, 16, 128], strides = [1, 1, 1]} : vector<16x18x128xbf16> to vector<16x16x128xbf16>
    %69 = vector.extract_strided_slice %66 {offsets = [0, 2, 0], sizes = [16, 16, 128], strides = [1, 1, 1]} : vector<16x18x128xbf16> to vector<16x16x128xbf16>
    %70 = tpu.concatenate %67, %68, %69 in 2 : vector<16x16x128xbf16>, vector<16x16x128xbf16>, vector<16x16x128xbf16> -> vector<16x16x384xbf16>
    %c1_45 = arith.constant 1 : index
    %c0_46 = arith.constant 0 : index
    %c0_47 = arith.constant 0 : index
    %71 = vector.load %arg4[%c1_45, %c0_46, %c0_47] : memref<3x384x128xbf16, #tpu.memory_space<vmem>>, vector<1x384x128xbf16>
    %72 = vector.shape_cast %71 : vector<1x384x128xbf16> to vector<384x128xbf16>
    %cst_48 = arith.constant dense<0.000000e+00> : vector<16x16x128xf32>
    %73 = tpu.matmul %70, %72, %cst_48 {dimension_numbers = #tpu.dot_dimension_numbers<[2], [0], [0, 1], [1], [0, 0, 0, 1, 1, 1], [], []>} : vector<16x16x384xbf16>, vector<384x128xbf16>, vector<16x16x128xf32> -> vector<16x16x128xf32>
    %74 = arith.addf %65, %73 : vector<16x16x128xf32>
    %c2_49 = arith.constant 2 : index
    %c0_50 = arith.constant 0 : index
    %c0_51 = arith.constant 0 : index
    %75 = vector.load %arg8[%c2_49, %c0_50, %c0_51] : memref<18x18x128xbf16, #tpu.memory_space<vmem>>, vector<16x18x128xbf16>
    %76 = vector.extract_strided_slice %75 {offsets = [0, 0, 0], sizes = [16, 16, 128], strides = [1, 1, 1]} : vector<16x18x128xbf16> to vector<16x16x128xbf16>
    %77 = vector.extract_strided_slice %75 {offsets = [0, 1, 0], sizes = [16, 16, 128], strides = [1, 1, 1]} : vector<16x18x128xbf16> to vector<16x16x128xbf16>
    %78 = vector.extract_strided_slice %75 {offsets = [0, 2, 0], sizes = [16, 16, 128], strides = [1, 1, 1]} : vector<16x18x128xbf16> to vector<16x16x128xbf16>
    %79 = tpu.concatenate %76, %77, %78 in 2 : vector<16x16x128xbf16>, vector<16x16x128xbf16>, vector<16x16x128xbf16> -> vector<16x16x384xbf16>
    %c2_52 = arith.constant 2 : index
    %c0_53 = arith.constant 0 : index
    %c0_54 = arith.constant 0 : index
    %80 = vector.load %arg4[%c2_52, %c0_53, %c0_54] : memref<3x384x128xbf16, #tpu.memory_space<vmem>>, vector<1x384x128xbf16>
    %81 = vector.shape_cast %80 : vector<1x384x128xbf16> to vector<384x128xbf16>
    %cst_55 = arith.constant dense<0.000000e+00> : vector<16x16x128xf32>
    %82 = tpu.matmul %79, %81, %cst_55 {dimension_numbers = #tpu.dot_dimension_numbers<[2], [0], [0, 1], [1], [0, 0, 0, 1, 1, 1], [], []>} : vector<16x16x384xbf16>, vector<384x128xbf16>, vector<16x16x128xf32> -> vector<16x16x128xf32>
    %83 = arith.addf %74, %82 : vector<16x16x128xf32>
    %c0_56 = arith.constant 0 : index
    %c0_57 = arith.constant 0 : index
    %84 = vector.load %arg6[%c0_56, %c0_57] : memref<1x128xf32, #tpu.memory_space<vmem>>, vector<1x128xf32>
    %85 = vector.shape_cast %84 : vector<1x128xf32> to vector<1x1x128xf32>
    %86 = vector.broadcast %85 : vector<1x1x128xf32> to vector<16x16x128xf32>
    %87 = arith.addf %83, %86 : vector<16x16x128xf32>
    %c2_i32_58 = arith.constant 2 : i32
    %88 = arith.addi %1, %c2_i32_58 : i32
    %c0_59 = arith.constant 0 : index
    %89 = arith.index_cast %88 : i32 to index
    %c1_60 = arith.constant 1 : index
    %c0_61 = arith.constant 0 : index
    %90 = vector.load %arg2[%c0_59, %89, %c1_60, %c0_61] : memref<1x20x18x128xbf16, #tpu.memory_space<vmem>>, vector<1x16x16x128xbf16>
    %91 = vector.shape_cast %90 : vector<1x16x16x128xbf16> to vector<16x16x128xbf16>
    %92 = arith.extf %91 : vector<16x16x128xbf16> to vector<16x16x128xf32>
    %93 = arith.addf %87, %92 : vector<16x16x128xf32>
    %cst_62 = arith.constant 0.000000e+00 : f32
    %94 = vector.broadcast %cst_62 : f32 to vector<16x16x128xf32>
    %95 = arith.maximumf %93, %94 : vector<16x16x128xf32>
    %96 = arith.truncf %95 : vector<16x16x128xf32> to vector<16x16x128xbf16>
    %c0_63 = arith.constant 0 : index
    %c0_64 = arith.constant 0 : index
    %c0_65 = arith.constant 0 : index
    %c0_66 = arith.constant 0 : index
    %97 = vector.load %arg7[%c0_63, %c0_64, %c0_65, %c0_66] : memref<1x16x16x128xbf16, #tpu.memory_space<vmem>>, vector<1x16x16x128xbf16>
    %98 = vector.shape_cast %97 : vector<1x16x16x128xbf16> to vector<16x16x128xbf16>
    %99 = vector.shape_cast %96 : vector<16x16x128xbf16> to vector<1x16x16x128xbf16>
    tpu.vector_store %arg7[%c0_63, %c0_64, %c0_65, %c0_66], %99 {strides = array<i32>} : memref<1x16x16x128xbf16, #tpu.memory_space<vmem>>, vector<1x16x16x128xbf16>,
    return
  }
  func.func @transform_0(%arg0: i32, %arg1: i32) -> (i32, i32, i32, i32) {
    %c0_i32 = arith.constant 0 : i32
    %c0_i32_0 = arith.constant 0 : i32
    %c0_i32_1 = arith.constant 0 : i32
    %c0_i32_2 = arith.constant 0 : i32
    return %arg0, %c0_i32, %c0_i32_0, %c0_i32_1 : i32, i32, i32, i32
  }
  func.func @transform_1(%arg0: i32, %arg1: i32) -> (i32, i32, i32) {
    %c0_i32 = arith.constant 0 : i32
    %c0_i32_0 = arith.constant 0 : i32
    %c0_i32_1 = arith.constant 0 : i32
    %c0_i32_2 = arith.constant 0 : i32
    return %c0_i32, %c0_i32_0, %c0_i32_1 : i32, i32, i32
  }
  func.func @transform_2(%arg0: i32, %arg1: i32) -> (i32, i32, i32) {
    %c0_i32 = arith.constant 0 : i32
    %c0_i32_0 = arith.constant 0 : i32
    %c0_i32_1 = arith.constant 0 : i32
    %c0_i32_2 = arith.constant 0 : i32
    return %c0_i32, %c0_i32_0, %c0_i32_1 : i32, i32, i32
  }
  func.func @transform_3(%arg0: i32, %arg1: i32) -> (i32, i32) {
    %c0_i32 = arith.constant 0 : i32
    %c0_i32_0 = arith.constant 0 : i32
    %c0_i32_1 = arith.constant 0 : i32
    return %c0_i32, %c0_i32_0 : i32, i32
  }
  func.func @transform_4(%arg0: i32, %arg1: i32) -> (i32, i32) {
    %c0_i32 = arith.constant 0 : i32
    %c0_i32_0 = arith.constant 0 : i32
    %c0_i32_1 = arith.constant 0 : i32
    return %c0_i32, %c0_i32_0 : i32, i32
  }
  func.func @transform_5(%arg0: i32, %arg1: i32) -> (i32, i32, i32, i32) {
    %c0_i32 = arith.constant 0 : i32
    %c0_i32_0 = arith.constant 0 : i32
    %c0_i32_1 = arith.constant 0 : i32
    return %arg0, %arg1, %c0_i32, %c0_i32_0 : i32, i32, i32, i32
  }
}

</mosaic_0001>

<bundles_post_ra>
// kernel: tpu_custom_call.1
= control target key start
LH: loop header
LB: loop body
LE: loop exit
PB: predicated region body
PF: predicated region fallthrough
CT: control target
= control target key end

     0   :  { %10 = vsyncpa [#allocation4], 0  ;;  %s13463_s0 = inlined_call_operand.vmem [shape: bf16[2,20,18,128], index: 0, kind: input, shape index: {}]   ;;  %s13464_s1 = inlined_call_operand.vmem [shape: bf16[3,384,128], index: 1, kind: input, shape index: {}]   ;;  %s13465_s2 = inlined_call_operand.hbm [shape: bf16[3,384,128], index: 2, kind: input, shape index: {}]   ;;  %s13466_s3 = inlined_call_operand.vmem [shape: f32[1,128], index: 3, kind: input, shape index: {}]   ;;  %s13467_s4 = inlined_call_operand.vmem [shape: f32[1,128], index: 4, kind: input, shape index: {}]   ;;  %s13468_s5 = inlined_call_operand.hbm [shape: bf16[2,16,16,128], index: 5, kind: output, shape index: {}]  }
   0x1   :  { %11 = vsyncpa [#allocation5], 0 }
   0x2   :  { %13 = vsyncpa [#allocation5 + $0x1], 0  ;;  %s10377_s18 = smov 0   ;;  %s10379_s19 = smov 0  }
   0x3   :  { %s10381_s20 = smov 0   ;;  %s10383_s21 = smov 0  }
   0x4   :  { %s10385_s22 = smov 0   ;;  %s10387_s23 = smov 0  }
   0x5 LB: > { %s7913_s24 = sadd.s32 4294967295, %s10338_s23   ;;  %s7914_s25 = sadd.s32 4294967294, %s10338_s23   ;;  %s10338_s23 = sphi %s10387_s23, %s19_s23   ;;  %s10334_s22 = sphi %s10385_s22, %s13603_s22   ;;  %s10330_s21 = sphi %s10383_s21, %s13602_s21   ;;  %s10326_s20 = sphi %s10381_s20, %s13601_s20   ;;  %s10322_s19 = sphi %s10379_s19, %s13600_s19   ;;  %s10318_s18 = sphi %s10377_s18, %s13599_s18  }
   0x6   : > { %s31_s26 = sadd.s32 1, %s10334_s22  ;;  %s150_s27 = sadd.s32 1, %s10326_s20 }
   0x7   : > { %p33_p0 = scmp.ge.s32.totalorder %s31_s26, 2  ;;  %p160_p1 = scmp.ne.s32.totalorder %s10326_s20, %s10322_s19 }
   0x8   : > { %p161_p2 = scmp.eq.s32.totalorder %s7913_s24, 1  ;;  %p166_p3 = scmp.ne.s32.totalorder %s10322_s19, %s10318_s18 }
   0x9   : > { %s13605_s26 = smov (%p33_p0, %s31_s26), 0  ;;  %p167_p5 = scmp.eq.s32.totalorder %s7914_s25, 1 }
   0xa   : > { %p10417_p4 = por %p161_p2, %p160_p1  ;;  %s145_s29 = ssub.s32 %s10334_s22, %s13605_s26 }
   0xb   : > { %p7915_p6 = scmp.ge.s32.totalorder %s10338_s23, 1  ;;  %p148_p7 = scmp.eq.s32.totalorder %s145_s29, 0 }
   0xc   : > { %s13477_s28 = scalar_select %p10417_p4, 1, 0 }
   0xd   : > { %p10424_p8 = por %p167_p5, %p166_p3  ;;  %p174_p9 = scmp.lt.s32.totalorder %s10338_s23, 3 }
   0xe   : > { %s10430_s6 = scalar_select %p148_p7, %s10326_s20, %s150_s27  }
   0xf   : > { %s13478_s30 = scalar_select %p10424_p8, 1, 0 }
  0x10   : > { %p10432_p10 = pnand %p7915_p6, %p174_p9  ;;  %p10436_p11 = scmp.eq.s32.totalorder %s7913_s24, 0 }
  0x11   : > { %s10340_s9 = smov [#allocation3]   ;;  %s10228_s14 = scalar_lea.hbm %s13465_s2, 9216 }
  0x12   : > { %s13479_s7 = scalar_select %p10432_p10, 1, 0 }
  0x13   : > { %s13480_s8 = scalar_select %p10436_p11, 1, 0 }
  0x14   : > { %p9786_p12 = pneg %p10432_p10  ;;  %s189_s10 = sshll.u32 %s10340_s9, 4  ;;  %s190_s10 = int_to_ptr.vmem [resolvable:$true] %s189_s10 }
  0x15   : > { %p10229_p0 = scmp.ne.s32.totalorder %s13465_s2, %s10228_s14  ;;  %p10235_p5 = scmp.lt.u32.totalorder %s10228_s14, %s13465_s2 }
  0x16   : > { %p10444_p13 = pnand %p10436_p11, %p9786_p12 }
  0x18   : > { %p10230_p1 = pneg %p10444_p13 }
  0x1a   : > { %p10231_p2 = pnand %p10230_p1, %p10229_p0 }
  0x1c   : > { %p10232_p3 = pneg %p10231_p2 }
  0x1e   : > { %p10237_p6 = pnand %p10235_p5, %p10232_p3 }
  0x20   : > { %10240 = shalt.err (!%p10237_p6)
}
  0x21   : > { %s10241_s25 = scalar_lea.vmem %s190_s10, 9216  ;;  %p10249_p8 = scmp.lt.s32.totalorder %s190_s10, %s190_s10 }
  0x22   : > { %p10242_p7 = scmp.ne.s32.totalorder %s190_s10, %s10241_s25  ;;  %p10250_p4 = scmp.lt.s32.totalorder %s10241_s25, %s10241_s25 }
  0x24   : > { %p10244_p9 = pnand %p10242_p7, %p10230_p1  ;;  %p10251_p11 = por %p10250_p4, %p10249_p8 }
  0x26   : > { %p10245_p12 = pneg %p10244_p9 }
  0x28   : > { %p10252_p10 = pnand %p10251_p11, %p10245_p12 }
  0x2a   : > { %10255 = shalt.err (!%p10252_p10)
}
  0x2b   : > { %s10341_s27 = smov 64   ;;  %s10342_s29 = smov 4  }
  0x2c   : > { %9789 = dma.hbm_to_vmem [thread:$0]  (!%p10444_p13), %s13465_s2, 9216, %s190_s10, [#allocation4], %s10341_s27, %s10341_s27, %s10342_s29  }
  0x2d   : > { %p13482_p0 = scmp.ne.s32.totalorder %s13479_s7, 0 }
  0x2f   : > { %219 = sbr.rel (%p13482_p0) target bundleno = 1262 (0x4ee), region = 40 }
  0x36   : > { %p13483_p2 = scmp.ne.s32.totalorder %s13480_s8, 0 }
  0x38   : > { %10309 = dma.done.wait (%p13483_p2), [#allocation4], 9216  }
  0x39   : > { %10311 = vsyncadd (%p13483_p2), [#allocation4], 4294958080  ;;  %v13473_v0 = vmov 0   ;;  %v9851_v1 = vld [vmem:[%s13464_s1 + $0xc0] sm:$0xff]   ;;  %v9852_v2 = vld [vmem:[%s13464_s1 + $0xc8] sm:$0xff]   ;;  %p247_p4 = scmp.lt.s32.totalorder %s10330_s21, 1 }
  0x3a   : > { %1549 = vmatprep.subr.bf16.mxu0 %v13473_v0  ;;  %v9854_v3 = vld [vmem:[%s13464_s1 + $0x140] sm:$0xff]   ;;  %v9856_v4 = vld [vmem:[%s13464_s1 + $0x148] sm:$0xff]   ;;  %v9853_v5 = vld [vmem:[%s13464_s1 + $0xd0] sm:$0xff]   ;;  %vm709_vm0 = vcmask 1046528   ;;  %vm474_vm1 = vsmask.f32 7424 }
  0x3b   : > { %1550 = vmatpush1.bf16.msra.mxu0 %v9851_v1  ;;  %9287 = vmatprep.subr.bf16.mxu1 %v9854_v3  ;;  %v9858_v6 = vld [vmem:[%s13464_s1 + $0x150] sm:$0xff]   ;;  %s248_s29 = scalar_select %p247_p4, %s10330_s21, 1  ;;  %v9855_v7 = vld [vmem:[%s13464_s1 + $0xd8] sm:$0xff]   ;;  %v9857_v9 = vld [vmem:[%s13464_s1 + $0xe0] sm:$0xff]   ;;  %vm3697_vm2 = vsmask.f32 256 }
  0x3c   : > { %1551 = vmatprep.subr.bf16.mxu0 %v13473_v0  ;;  %9288 = vmatpush3.bf16.msra.mxu1 %v9854_v3  ;;  %v9860_v8 = vld [vmem:[%s13464_s1 + $0x158] sm:$0xff]   ;;  %v9862_v10 = vld [vmem:[%s13464_s1 + $0x160] sm:$0xff]   ;;  %v9859_v11 = vld [vmem:[%s13464_s1 + $0xe8] sm:$0xff]   ;;  %vm4060_vm3 = vcmask 1043456   ;;  %vm4061_vm4 = vsmask.f32 7938 }
  0x3d   : > { %9289 = vmatprep.subr.bf16.mxu1 %v9856_v4  ;;  %s9779_s10 = smul.u32 240, %s248_s29  ;;  %v9864_v12 = vld [vmem:[%s13464_s1 + $0x168] sm:$0xff]   ;;  %v9861_v15 = vld [vmem:[%s13464_s1 + $0xf0] sm:$0xff]   ;;  %v9863_v19 = vld [vmem:[%s13464_s1 + $0xf8] sm:$0xff]   ;;  %vm4067_vm5 = vcmask 1040384   ;;  %s244_s12 = sand.u32 1, %s10322_s19  }
  0x3e   : > { %v9866_v18 = vld [vmem:[%s13464_s1 + $0x170] sm:$0xff]   ;;  %v9868_v25 = vld [vmem:[%s13464_s1 + $0x178] sm:$0xff]   ;;  %v9865_v26 = vld [vmem:[%s13464_s1 + $0x100] sm:$0xff]   ;;  %vm3698_vm6 = vsmask.f32 4368  ;;  %s13271_s13 = sshll.u32 %s244_s12, 7 }
  0x3f   : > { %1552 = vmatpush1.bf16.msra.mxu0 %v9852_v2  ;;  %s10513_s27 = scalar_lea.vmem %s13463_s0, %s9779_s10  ;;  %v9867_v33 = vld [vmem:[%s13464_s1 + $0x108] sm:$0xff]   ;;  %v10573_v36 = vld [vmem:[%s13464_s1] sm:$0xff]   ;;  %v9869_v43 = vld [vmem:[%s13464_s1 + $0x110] sm:$0xff]   ;;  %s13287_s11 = scalar_lea.vmem [#allocation6], %s13271_s13 }
  0x40   : > { %1553 = vmatprep.subr.bf16.mxu0 %v13473_v0  ;;  %9290 = vmatpush3.bf16.msra.mxu1 %v9856_v4  ;;  %v10520_v13 = vld [vmem:[%s10513_s27 + $0xc] sm:$0xff]   ;;  %v9871_v14 = vld [vmem:[%s10513_s27 + $0x14] ss:$0 sps:$4 sm:$0x11]   ;;  %v10536_v21 = vld [vmem:[%s10513_s27 + $0x18] sm:$0xff]   ;;  %s7818_s10 = sshll.u32 %s13287_s11, 4  ;;  %s13411_s10 = int_to_ptr.vmem [resolvable:$true] %s7818_s10 }
  0x41   : > { %9291 = vmatprep.subr.bf16.mxu1 %v9858_v6  ;;  %v1284_v16 = vrot.slane %v10520_v13, 1  ;;  %v1285_v17 = vrot.slane %v9871_v14, 1  ;;  %v10539_v22 = vld [vmem:[%s10513_s27 + $0x20] ss:$0 sps:$4 sm:$0x11]   ;;  %v10542_v23 = vld [vmem:[%s10513_s27 + $0x24] sm:$0xff]   ;;  %vm11952_vm7 = vmand %vm4060_vm3, %vm4061_vm4 }
  0x42   : > { %v10545_v24 = vld [vmem:[%s10513_s27 + $0x2c] ss:$0 sps:$4 sm:$0x11]   ;;  %v1287_v27 = vrot.slane %v10536_v21, 1  ;;  %v1288_v28 = vrot.slane %v10539_v22, 1  ;;  %v1290_v29 = vrot.slane %v10542_v23, 1  ;;  %vm11961_vm8 = vmand %vm4067_vm5, %vm3697_vm2 }
  0x43   : > { %1554 = vmatpush1.bf16.msra.mxu0 %v9853_v5  ;;  %v1286_v20 = vsel %vm709_vm0, %v1284_v16, %v1285_v17  ;;  %v10558_v30 = vld [vmem:[%s10513_s27 + $0x38] ss:$0 sps:$4 sm:$0x11]   ;;  %v1291_v31 = vrot.slane %v10545_v24, 1  ;;  %v1053_v32 = vshll.u32 %v10520_v13, 16  ;;  %v10567_v34 = vld [vmem:[%s10513_s27 + $0x30] sm:$0xff]   ;;  %vm11967_vm9 = vmor %vm3697_vm2, %vm3698_vm6 }
  0x44   : > { %1555 = vmatprep.subr.bf16.mxu0 %v13473_v0  ;;  %9292 = vmatpush3.bf16.msra.mxu1 %v9858_v6  ;;  %v1051_v35 = vshrl.u32 %v10520_v13, 16  ;;  %v1289_v38 = vsel %vm709_vm0, %v1287_v27, %v1288_v28  ;;  %v10577_v39 = vld [vmem:[%s10513_s27 + $0x44] ss:$0 sps:$4 sm:$0x11]   ;;  %v1058_v40 = vshll.u32 %v9871_v14, 16  ;;  %v10583_v42 = vld [vmem:[%s10513_s27 + $0x3c] sm:$0xff]   ;;  %vm12005_vm10 = vmand %vm4067_vm5, %vm4061_vm4 }
  0x45   : > { %9293 = vmatprep.subr.bf16.mxu1 %v9860_v8  ;;  %9303 = vmatprep.mubr.bf16.mxu1 %v1286_v20  ;;  %v1055_v37 = vrot.slane %v1053_v32, 1  ;;  %v1292_v41 = vsel %vm709_vm0, %v1290_v29, %v1291_v31  ;;  %v1293_v44 = vrot.slane %v10567_v34, 1  ;;  %v1294_v45 = vrot.slane %v10558_v30, 1  ;;  %v10593_v47 = vld [vmem:[%s13464_s1 + $0x8] sm:$0xff]   ;;  %v9874_v52 = vld [vmem:[%s13464_s1 + $0x118] sm:$0xff]   ;;  %v10617_v57 = vld [vmem:[%s13464_s1 + $0x10] sm:$0xff]  }
  0x46   : > { %v1060_v48 = vrot.slane %v1058_v40, 1  ;;  %v1296_v49 = vrot.slane %v10583_v42, 1  ;;  %v1297_v50 = vrot.slane %v10577_v39, 1  ;;  %v10605_v53 = vld [vmem:[%s10513_s27 + $0x50] ss:$0 sps:$4 sm:$0x11]  }
  0x47   : > { %1556 = vmatpush1.bf16.msra.mxu0 %v9855_v7  ;;  %v1056_v46 = vor.u32 %v1055_v37, %v1051_v35  ;;  %v1295_v54 = vsel %vm709_vm0, %v1293_v44, %v1294_v45  ;;  %v10609_v55 = vld [vmem:[%s10513_s27 + $0x48] sm:$0xff]   ;;  %v10620_v58 = vld [vmem:[%s10513_s27 + $0x54] sm:$0xff]   ;;  %v10623_v59 = vld [vmem:[%s10513_s27 + $0x5c] ss:$0 sps:$4 sm:$0x11]   ;;  %v1300_v62 = vrot.slane %v10605_v53, 1 }
  0x48   : > { %1557 = vmatprep.subr.bf16.mxu0 %v13473_v0  ;;  %9294 = vmatpush3.bf16.msra.mxu1 %v9860_v8  ;;  %v1298_v56 = vsel %vm709_vm0, %v1296_v49, %v1297_v50  ;;  %v9875_v60 = vld [vmem:[%s13464_s1 + $0x120] sm:$0xff]   ;;  %v1299_v61 = vrot.slane %v10609_v55, 1  ;;  %v10636_v63 = vld [vmem:[%s13464_s1 + $0x18] sm:$0xff]   ;;  %v1302_v1 = vrot.slane %v10620_v58, 1  ;;  %v1303_v2 = vrot.slane %v10623_v59, 1  ;;  %v9881_v3 = vld [vmem:[%s13464_s1 + $0x128] sm:$0xff]  }
  0x49   : > { %9295 = vmatprep.subr.bf16.mxu1 %v9862_v10  ;;  %v1061_v51 = vsel %vm474_vm1, %v1056_v46, %v1060_v48  ;;  %v10645_v4 = vld [vmem:[%s10513_s27 + $0x60] sm:$0xff]   ;;  %v10648_v5 = vld [vmem:[%s10513_s27 + $0x68] ss:$0 sps:$4 sm:$0x11]   ;;  %v1063_v16 = vshrl.u32 %v10536_v21, 16  ;;  %v10691_v28 = vld [vmem:[%s10513_s27 + $0x78] sm:$0xff]  }
  0x4a   : > { %1581 = vmatprep.mubr.bf16.mxu0 %v1061_v51  ;;  %v10651_v6 = vld [vmem:[%s10513_s27 + $0x74] ss:$0 sps:$4 sm:$0x11]   ;;  %v1301_v7 = vsel %vm709_vm0, %v1299_v61, %v1300_v62  ;;  %v10657_v8 = vld [vmem:[%s13464_s1 + $0x20] sm:$0xff]   ;;  %v1305_v14 = vrot.slane %v10645_v4, 1  ;;  %v1077_v29 = vshll.u32 %v10542_v23, 16 }
  0x4b   : > { %1558 = vmatpush1.bf16.msra.mxu0 %v9857_v9  ;;  %v1065_v9 = vshll.u32 %v10536_v21, 16  ;;  %v10688_v27 = vld [vmem:[%s10513_s27 + $0x80] ss:$0 sps:$4 sm:$0x11]   ;;  %v1311_v40 = vrot.slane %v10691_v28, 1  ;;  %v1082_v45 = vshll.u32 %v10545_v24, 16 }
  0x4c   : > { %1559 = vmatprep.subr.bf16.mxu0 %v13473_v0  ;;  %9296 = vmatpush3.bf16.msra.mxu1 %v9862_v10  ;;  %v1304_v10 = vsel %vm709_vm0, %v1302_v1, %v1303_v2  ;;  %v10700_v31 = vld [vmem:[%s10513_s27 + $0x8c] ss:$0 sps:$4 sm:$0x11]   ;;  %v1079_v44 = vrot.slane %v1077_v29, 1  ;;  %v10717_v46 = vld [vmem:[%s13464_s1 + $0x38] sm:$0xff]   ;;  %v10729_v24 = vld [vmem:[%s10513_s27 + $0x90] sm:$0xff]  }
  0x4d   : > { %9297 = vmatprep.subr.bf16.mxu1 %v9864_v12  ;;  %v1067_v17 = vrot.slane %v1065_v9, 1  ;;  %v1315_v50 = vrot.slane %v10700_v31, 1  ;;  %v10725_v51 = vld [vmem:[%s10513_s27 + $0x98] ss:$0 sps:$4 sm:$0x11]   ;;  %v1084_v62 = vrot.slane %v1082_v45, 1 }
  0x4e   : > { %v1318_v2 = vrot.slane %v10725_v51, 1  ;;  %v1094_v9 = vshll.u32 %v10558_v30, 16  ;;  %v10768_v30 = vld [vmem:[%s10513_s27 + $0xa8] sm:$0xff]   ;;  %v10788_v29 = vld [vmem:[%s10513_s27 + $0xbc] ss:$0 sps:$4 sm:$0x11]  }
  0x4f   : > { %1560 = vmatpush1.bf16.msra.mxu0 %v9859_v11  ;;  %v10664_v11 = vld [vmem:[%s10513_s27 + $0x6c] sm:$0xff]   ;;  %s10256_s8 = scalar_lea.vmem %s13411_s10, 2048  ;;  %p13597_p10 = scmp.ne.s32.totalorder %s13477_s28, 0 }
  0x50   : > { %1561 = vmatprep.subr.bf16.mxu0 %v13473_v0  ;;  %9298 = vmatpush3.bf16.msra.mxu1 %v9864_v12  ;;  %v9883_v12 = vld [vmem:[%s13464_s1 + $0x130] sm:$0xff]   ;;  %v1308_v20 = vrot.slane %v10664_v11, 1  ;;  %p10257_p8 = scmp.ne.s32.totalorder %s13411_s10, %s10256_s8  ;;  %s10344_s16 = smov [#allocation6]  }
  0x51   : > { %9299 = vmatprep.subr.bf16.mxu1 %v9866_v18  ;;  %s10260_s17 = sshll.u32 %s10344_s16, 4  ;;  %s10261_s17 = int_to_ptr.vmem [resolvable:$false] %s10260_s17 }
  0x52   : > { %p10258_p11 = pnand %p10257_p8, %p13597_p10  ;;  %s10262_s24 = scalar_lea.vmem %s10261_s17, 4096 }
  0x53   : > { %1562 = vmatpush1.bf16.msra.mxu0 %v9861_v15  ;;  %v1306_v15 = vrot.slane %v10648_v5, 1  ;;  %p10263_p1 = scmp.lt.s32.totalorder %s13411_s10, %s10261_s17  ;;  %p10264_p3 = scmp.lt.s32.totalorder %s10262_s24, %s10256_s8 }
  0x54   : > { %1563 = vmatprep.subr.bf16.mxu0 %v13473_v0  ;;  %9300 = vmatpush3.bf16.msra.mxu1 %v9866_v18  ;;  %v1070_v18 = vshll.u32 %v10539_v22, 16  ;;  %v10696_v22 = vld [vmem:[%s13464_s1 + $0x30] sm:$0xff]   ;;  %p10259_p13 = pneg %p10258_p11 }
  0x55   : > { %9301 = vmatprep.subr.bf16.mxu1 %v9868_v25  ;;  %v1307_v32 = vsel %vm709_vm0, %v1305_v14, %v1306_v15  ;;  %p10265_p5 = por %p10264_p3, %p10263_p1 }
  0x56   : > { %v1072_v35 = vrot.slane %v1070_v18, 1 }
  0x57   : > { %1564 = vmatpush1.bf16.msra.mxu0 %v9863_v19  ;;  %v10679_v19 = vld [vmem:[%s13464_s1 + $0x28] sm:$0xff]   ;;  %p10266_p6 = pnand %p10265_p5, %p10259_p13 }
  0x58   : > { %1565 = vmatprep.subr.bf16.mxu0 %v13473_v0  ;;  %9302 = vmatpush3.bf16.msra.mxu1 %v9868_v25  ;;  %v1309_v25 = vrot.slane %v10651_v6, 1 }
  0x59   : > { %9587 = vmatprep.subr.bf16.mxu1 %v13473_v0 }
  0x5a   : > { %v1310_v37 = vsel %vm709_vm0, %v1308_v20, %v1309_v25  ;;  %v1101_v25 = vshll.u32 %v10583_v42, 16 }
  0x5b   : > { %1566 = vmatpush1.bf16.msra.mxu0 %v9865_v26  ;;  %9304 = vmatmul.mubr.bf16.vlgmr.msra.gmra.mrb[0].mxu1 %v1289_v38  ;;  %v9889_v26 = vld [vmem:[%s13464_s1 + $0x138] sm:$0xff]   ;;  %v10707_v38 = vld [vmem:[%s10513_s27 + $0x84] sm:$0xff]  }
  0x5c   : > { %1567 = vmatprep.subr.bf16.mxu0 %v13473_v0  ;;  %9307 = vmatprep.mubr.bf16.mxu1 %v1292_v41  ;;  %v1312_v41 = vrot.slane %v10688_v27, 1  ;;  %v1314_v49 = vrot.slane %v10707_v38, 1 }
  0x5d   : > { %9603 = vmatpush1.bf16.msra.mxu1 %v10573_v36 }
  0x5e   : > { %9588 = vmatprep.subr.bf16.mxu1 %v13473_v0  ;;  %v1316_v1 = vsel %vm709_vm0, %v1314_v49, %v1315_v50  ;;  %v10818_v49 = vld [vmem:[%s10513_s27 + $0xcc] sm:$0xff]  }
  0x5f   : > { %1568 = vmatpush1.bf16.msra.mxu0 %v9867_v33  ;;  %v1068_v33 = vor.u32 %v1067_v17, %v1063_v16  ;;  %v1096_v17 = vrot.slane %v1094_v9, 1  ;;  %v1332_v9 = vrot.slane %v10818_v49, 1 }
  0x60   : > { %1569 = vmatprep.subr.bf16.mxu0 %v13473_v0 }
  0x61   : > { %9604 = vmatpush1.bf16.msra.mxu1 %v10593_v47  ;;  %v1073_v48 = vsel %vm474_vm1, %v1068_v33, %v1072_v35  ;;  %v1106_v35 = vshll.u32 %v10577_v39, 16  ;;  %v10808_v39 = vld [vmem:[%s10513_s27 + $0xc0] sm:$0xff]  }
  0x62   : > { %9589 = vmatprep.subr.bf16.mxu1 %v13473_v0 }
  0x63   : > { %1570 = vmatpush1.bf16.msra.mxu0 %v9869_v43  ;;  %9308 = vmatmul.mubr.bf16.gmra.mrb[4].mxu1 %v1295_v54  ;;  %v1075_v43 = vshrl.u32 %v10542_v23, 16  ;;  %v1313_v54 = vsel %vm709_vm0, %v1311_v40, %v1312_v41  ;;  %v1103_v40 = vrot.slane %v1101_v25, 1  ;;  %v10801_v41 = vld [vmem:[%s13464_s1 + $0x58] sm:$0xff]   ;;  %v10864_v25 = vld [vmem:[%s13464_s1 + $0x70] sm:$0xff]  }
  0x64   : > { %1571 = vmatprep.subr.bf16.mxu0 %v13473_v0  ;;  %9311 = vmatprep.mubr.bf16.mxu1 %v1298_v56  ;;  %v1089_v56 = vshll.u32 %v10567_v34, 16 }
  0x65   : > { %9605 = vmatpush1.bf16.msra.mxu1 %v10617_v57  ;;  %v1080_v61 = vor.u32 %v1079_v44, %v1075_v43  ;;  %v1327_v44 = vrot.slane %v10788_v29, 1 }
  0x66   : > { %9590 = vmatprep.subr.bf16.mxu1 %v13473_v0 }
  0x67   : > { %1572 = vmatpush1.bf16.msra.mxu0 %v9874_v52  ;;  %v10732_v52 = vld [vmem:[%s10513_s27 + $0xa4] ss:$0 sps:$4 sm:$0x11]   ;;  %v1085_v15 = vsel %vm474_vm1, %v1080_v61, %v1084_v62  ;;  %v10828_v61 = vld [vmem:[%s10513_s27 + $0xd4] ss:$0 sps:$4 sm:$0x11]  }
  0x68   : > { %1573 = vmatprep.subr.bf16.mxu0 %v13473_v0  ;;  %v1321_v14 = vrot.slane %v10732_v52, 1  ;;  %v1329_v62 = vrot.slane %v10808_v39, 1 }
  0x69   : > { %9606 = vmatpush1.bf16.msra.mxu1 %v10636_v63 }
  0x6a   : > { %9591 = vmatprep.subr.bf16.mxu1 %v13473_v0 }
  0x6b   : > { %1574 = vmatpush1.bf16.msra.mxu0 %v9875_v60  ;;  %9312 = vmatmul.mubr.bf16.gmra.mrb[8].mxu1 %v1301_v7  ;;  %v10739_v60 = vld [vmem:[%s10513_s27 + $0x9c] sm:$0xff]   ;;  %v1091_v7 = vrot.slane %v1089_v56, 1 }
  0x6c   : > { %1575 = vmatprep.subr.bf16.mxu0 %v13473_v0  ;;  %9315 = vmatprep.mubr.bf16.mxu1 %v1304_v10  ;;  %v10758_v10 = vld [vmem:[%s13464_s1 + $0x48] sm:$0xff]  }
  0x6d   : > { %9607 = vmatpush1.bf16.msra.mxu1 %v10657_v8 }
  0x6e   : > { %9592 = vmatprep.subr.bf16.mxu1 %v13473_v0 }
  0x6f   : > { %1576 = vmatpush1.bf16.msra.mxu0 %v9881_v3  ;;  %v1087_v3 = vshrl.u32 %v10567_v34, 16 }
  0x70   : > { %1577 = vmatprep.subr.bf16.mxu0 %v13473_v0 }
  0x71   : > { %9608 = vmatpush1.bf16.msra.mxu1 %v10679_v19  ;;  %v1092_v18 = vor.u32 %v1091_v7, %v1087_v3  ;;  %v10842_v7 = vld [vmem:[%s13464_s1 + $0x68] sm:$0xff]  }
  0x72   : > { %9593 = vmatprep.subr.bf16.mxu1 %v13473_v0 }
  0x73   : > { %1578 = vmatpush1.bf16.msra.mxu0 %v9883_v12  ;;  %9316 = vmatmul.mubr.bf16.gmra.mrb[12].mxu1 %v1307_v32  ;;  %v1320_v12 = vrot.slane %v10739_v60, 1  ;;  %v1099_v32 = vshrl.u32 %v10583_v42, 16 }
  0x74   : > { %1579 = vmatprep.subr.bf16.mxu0 %v13473_v0  ;;  %9319 = vmatprep.mubr.bf16.mxu1 %v1310_v37  ;;  %v1097_v37 = vsel %vm474_vm1, %v1092_v18, %v1096_v17 }
  0x75   : > { %9609 = vmatpush1.bf16.msra.mxu1 %v10696_v22  ;;  %v1322_v20 = vsel %vm709_vm0, %v1320_v12, %v1321_v14  ;;  %v1104_v50 = vor.u32 %v1103_v40, %v1099_v32  ;;  %v9928_v12 = vld [vmem:[%s10513_s27 + $0x50] ss:$0 sps:$4 sm:$0x11]  }
  0x76   : > { %9594 = vmatprep.subr.bf16.mxu1 %v13473_v0 }
  0x77   : > { %1580 = vmatpush1.bf16.msra.mxu0 %v9889_v26  ;;  %v10785_v26 = vld [vmem:[%s10513_s27 + $0xb4] sm:$0xff]  }
  0x78   : > { %2047 = vmatprep.subr.bf16.mxu0 %v13473_v0  ;;  %v1326_v43 = vrot.slane %v10785_v26, 1 }
  0x79   : > { %9610 = vmatpush1.bf16.msra.mxu1 %v10717_v46 }
  0x7a   : > { %1582 = vmatmul.mubr.bf16.vlgmr.msra.gmra.mrb[0].mxu0 %v10520_v13  ;;  %v10747_v13 = vld [vmem:[%s13464_s1 + $0x40] sm:$0xff]   ;;  %9595 = vmatprep.subr.bf16.mxu1 %v13473_v0  ;;  %v1328_v56 = vsel %vm709_vm0, %v1326_v43, %v1327_v44  ;;  %v1123_v43 = vshrl.u32 %v10620_v58, 16  ;;  %v9930_v44 = vld [vmem:[%s10513_s27 + $0x5c] ss:$0 sps:$4 sm:$0x11]  }
  0x7b   : > { %2048 = vmatpush1.bf16.msra.mxu0 %v10573_v36  ;;  %1589 = vmatprep.mubr.bf16.mxu0 %v1073_v48  ;;  %v1317_v36 = vrot.slane %v10729_v24, 1  ;;  %v1113_v48 = vshll.u32 %v10609_v55, 16 }
  0x7c   : > { %2049 = vmatprep.subr.bf16.mxu0 %v13473_v0  ;;  %9320 = vmatmul.mubr.bf16.gmra.mrb[16].mxu1 %v1313_v54  ;;  %v1108_v54 = vrot.slane %v1106_v35, 1  ;;  %v555_v35 = vshll.u32 %v9928_v12, 16 }
  0x7d   : > { %9323 = vmatprep.mubr.bf16.mxu1 %v1316_v1  ;;  %9611 = vmatpush1.bf16.msra.mxu1 %v10747_v13  ;;  %v1319_v16 = vsel %vm709_vm0, %v1317_v36, %v1318_v2  ;;  %v1111_v36 = vshrl.u32 %v10609_v55, 16  ;;  %v1118_v2 = vshll.u32 %v10605_v53, 16  ;;  %v1115_v3 = vrot.slane %v1113_v48, 1 }
  0x7e   : > { %9596 = vmatprep.subr.bf16.mxu1 %v13473_v0  ;;  %v1109_v14 = vsel %vm474_vm1, %v1104_v50, %v1108_v54  ;;  %v1130_v48 = vshll.u32 %v10623_v59, 16  ;;  %v10887_v54 = vld [vmem:[%s13464_s1 + $0x78] sm:$0xff]  }
  0x7f   : > { %2050 = vmatpush1.bf16.msra.mxu0 %v10593_v47  ;;  %v10771_v47 = vld [vmem:[%s10513_s27 + $0xb0] ss:$0 sps:$4 sm:$0x11]   ;;  %v1120_v17 = vrot.slane %v1118_v2, 1  ;;  %v1137_v2 = vshll.u32 %v10645_v4, 16 }
  0x80   : > { %2051 = vmatprep.subr.bf16.mxu0 %v13473_v0  ;;  %v1324_v33 = vrot.slane %v10771_v47, 1 }
  0x81   : > { %9612 = vmatpush1.bf16.msra.mxu1 %v10758_v10 }
  0x82   : > { %1590 = vmatmul.mubr.bf16.gmra.mrb[4].mxu0 %v10536_v21  ;;  %v10781_v21 = vld [vmem:[%s13464_s1 + $0x50] sm:$0xff]   ;;  %9597 = vmatprep.subr.bf16.mxu1 %v13473_v0 }
  0x83   : > { %1597 = vmatprep.mubr.bf16.mxu0 %v1085_v15  ;;  %2052 = vmatpush1.bf16.msra.mxu0 %v10617_v57  ;;  %v1323_v57 = vrot.slane %v10768_v30, 1  ;;  %v1333_v15 = vrot.slane %v10828_v61, 1 }
  0x84   : > { %2053 = vmatprep.subr.bf16.mxu0 %v13473_v0  ;;  %9324 = vmatmul.mubr.bf16.gmra.mrb[20].mxu1 %v1319_v16  ;;  %v10854_v16 = vld [vmem:[%s10513_s27 + $0xd8] sm:$0xff]  }
  0x85   : > { %9327 = vmatprep.mubr.bf16.mxu1 %v1322_v20  ;;  %9613 = vmatpush1.bf16.msra.mxu1 %v10781_v21  ;;  %v1325_v45 = vsel %vm709_vm0, %v1323_v57, %v1324_v33  ;;  %v1116_v20 = vor.u32 %v1115_v3, %v1111_v36  ;;  %v1125_v57 = vshll.u32 %v10620_v58, 16  ;;  %v1335_v40 = vrot.slane %v10854_v16, 1 }
  0x86   : > { %9598 = vmatprep.subr.bf16.mxu1 %v13473_v0  ;;  %v1132_v36 = vrot.slane %v1130_v48, 1  ;;  %v1154_v48 = vshll.u32 %v10651_v6, 16  ;;  %v1161_v6 = vshll.u32 %v10691_v28, 16 }
  0x87   : > { %2054 = vmatpush1.bf16.msra.mxu0 %v10636_v63  ;;  %v10811_v63 = vld [vmem:[%s10513_s27 + $0xc8] ss:$0 sps:$4 sm:$0x11]   ;;  %v1121_v50 = vsel %vm474_vm1, %v1116_v20, %v1120_v17 }
  0x88   : > { %2055 = vmatprep.subr.bf16.mxu0 %v13473_v0  ;;  %v1330_v1 = vrot.slane %v10811_v63, 1  ;;  %v9932_v17 = vld [vmem:[%s10513_s27 + $0x68] ss:$0 sps:$4 sm:$0x11]  }
  0x89   : > { %9614 = vmatpush1.bf16.msra.mxu1 %v10801_v41 }
  0x8a   : > { %1598 = vmatmul.mubr.bf16.gmra.mrb[8].mxu0 %v10542_v23  ;;  %v10825_v23 = vld [vmem:[%s13464_s1 + $0x60] sm:$0xff]   ;;  %9599 = vmatprep.subr.bf16.mxu1 %v13473_v0  ;;  %v1331_v18 = vsel %vm709_vm0, %v1329_v62, %v1330_v1  ;;  %v557_v62 = vrot.slane %v555_v35, 1  ;;  %v579_v35 = vshll.u32 %v9932_v17, 16 }
  0x8b   : > { %1605 = vmatprep.mubr.bf16.mxu0 %v1097_v37  ;;  %2056 = vmatpush1.bf16.msra.mxu0 %v10657_v8  ;;  %v10832_v8 = vld [vmem:[%s10513_s27 + $0x48] sm:$0xff]   ;;  %v10872_v37 = vld [vmem:[%s10513_s27 + $0x54] sm:$0xff]  }
  0x8c   : > { %2057 = vmatprep.subr.bf16.mxu0 %v13473_v0  ;;  %9328 = vmatmul.mubr.bf16.gmra.mrb[24].mxu1 %v1325_v45  ;;  %v550_v53 = vshll.u32 %v10832_v8, 16  ;;  %v548_v32 = vshrl.u32 %v10832_v8, 16  ;;  %v1127_v45 = vrot.slane %v1125_v57, 1  ;;  %v562_v1 = vshll.u32 %v10872_v37, 16 }
  0x8d   : > { %9331 = vmatprep.mubr.bf16.mxu1 %v1328_v56  ;;  %9615 = vmatpush1.bf16.msra.mxu1 %v10825_v23 }
  0x8e   : > { %9600 = vmatprep.subr.bf16.mxu1 %v13473_v0  ;;  %v552_v33 = vrot.slane %v550_v53, 1  ;;  %v564_v12 = vrot.slane %v562_v1, 1  ;;  %v1139_v53 = vrot.slane %v1137_v2, 1 }
  0x8f   : > { %2058 = vmatpush1.bf16.msra.mxu0 %v10679_v19  ;;  %v10858_v19 = vld [vmem:[%s10513_s27 + $0xe0] ss:$0 sps:$4 sm:$0x11]  }
  0x90   : > { %2059 = vmatprep.subr.bf16.mxu0 %v13473_v0  ;;  %v553_v56 = vor.u32 %v552_v33, %v548_v32 }
  0x91   : > { %9616 = vmatpush1.bf16.msra.mxu1 %v10842_v7 }
  0x92   : > { %1606 = vmatmul.mubr.bf16.gmra.mrb[12].mxu0 %v10567_v34  ;;  %v1334_v34 = vsel %vm709_vm0, %v1332_v9, %v1333_v15  ;;  %9601 = vmatprep.subr.bf16.mxu1 %v13473_v0  ;;  %v558_v3 = vsel %vm474_vm1, %v553_v56, %v557_v62  ;;  %v560_v9 = vshrl.u32 %v10872_v37, 16  ;;  %v10900_v15 = vld [vmem:[%s10513_s27 + $0x60] sm:$0xff]  }
  0x93   : > { %1613 = vmatprep.mubr.bf16.mxu0 %v1109_v14  ;;  %2060 = vmatpush1.bf16.msra.mxu0 %v10696_v22  ;;  %v1336_v22 = vrot.slane %v10858_v19, 1  ;;  %v567_v14 = vshll.u32 %v9930_v44, 16  ;;  %v572_v33 = vshrl.u32 %v10900_v15, 16  ;;  %v1147_v44 = vshrl.u32 %v10664_v11, 16 }
  0x94   : > { %2061 = vmatprep.subr.bf16.mxu0 %v13473_v0  ;;  %9332 = vmatmul.mubr.bf16.gmra.mrb[28].mxu1 %v1331_v18  ;;  %v565_v20 = vor.u32 %v564_v12, %v560_v9  ;;  %v1159_v12 = vshrl.u32 %v10691_v28, 16 }
  0x95   : > { %9335 = vmatprep.mubr.bf16.mxu1 %v1334_v34  ;;  %9617 = vmatpush1.bf16.msra.mxu1 %v10864_v25  ;;  %v1337_v59 = vsel %vm709_vm0, %v1335_v40, %v1336_v22  ;;  %v569_v57 = vrot.slane %v567_v14, 1  ;;  %v574_v34 = vshll.u32 %v10900_v15, 16  ;;  %v10915_v40 = vld [vmem:[%s10513_s27 + $0x6c] sm:$0xff]   ;;  %v1163_v14 = vrot.slane %v1161_v6, 1 }
  0x96   : > { %9602 = vmatprep.subr.bf16.mxu1 %v13473_v0  ;;  %v586_v1 = vshll.u32 %v10915_v40, 16 }
  0x97   : > { %2062 = vmatpush1.bf16.msra.mxu0 %v10717_v46  ;;  %v1128_v46 = vor.u32 %v1127_v45, %v1123_v43  ;;  %v570_v43 = vsel %vm474_vm1, %v565_v20, %v569_v57  ;;  %v576_v22 = vrot.slane %v574_v34, 1  ;;  %v9950_v20 = vld [vmem:[%s13464_s1 + $0x198] sm:$0xff]   ;;  %v1164_v57 = vor.u32 %v1163_v14, %v1159_v12 }
  0x98   : > { %2063 = vmatprep.subr.bf16.mxu0 %v13473_v0  ;;  %v588_v9 = vrot.slane %v586_v1, 1  ;;  %v9957_v1 = vld [vmem:[%s13464_s1 + $0x1b0] sm:$0xff]   ;;  %v9961_v12 = vld [vmem:[%s13464_s1 + $0x1b8] sm:$0xff]  }
  0x99   : > { %9618 = vmatpush1.bf16.msra.mxu1 %v10887_v54  ;;  %v1133_v18 = vsel %vm474_vm1, %v1128_v46, %v1132_v36  ;;  %v577_v62 = vor.u32 %v576_v22, %v572_v33  ;;  %v10939_v36 = vld [vmem:[%s10513_s27 + $0x78] sm:$0xff]   ;;  %v1178_v22 = vshll.u32 %v10700_v31, 16 }
  0x9a   : > { %1614 = vmatmul.mubr.bf16.gmra.mrb[16].mxu0 %v10583_v42  ;;  %3120 = vmatprep.subr.bf16.mxu1 %v13473_v0  ;;  %v1142_v42 = vshll.u32 %v10648_v5, 16  ;;  %v1149_v5 = vshll.u32 %v10664_v11, 16 }
  0x9b   : > { %1621 = vmatprep.mubr.bf16.mxu0 %v1121_v50  ;;  %2064 = vmatpush1.bf16.msra.mxu0 %v10747_v13  ;;  %v1135_v13 = vshrl.u32 %v10645_v4, 16  ;;  %v581_v50 = vrot.slane %v579_v35, 1  ;;  %v1171_v35 = vshrl.u32 %v10707_v38, 16  ;;  %v1180_v31 = vrot.slane %v1178_v22, 1 }
  0x9c   : > { %2065 = vmatprep.subr.bf16.mxu0 %v13473_v0  ;;  %9336 = vmatmul.mubr.bf16.gmra.mrb[32].mxu1 %v1337_v59  ;;  %v1144_v32 = vrot.slane %v1142_v42, 1  ;;  %v1151_v45 = vrot.slane %v1149_v5, 1  ;;  %v584_v59 = vshrl.u32 %v10915_v40, 16 }
  0x9d   : > { %2127 = vmatprep.mubr.bf16.mxu1 %v558_v3  ;;  %v582_v3 = vsel %vm474_vm1, %v577_v62, %v581_v50  ;;  %v9954_v50 = vld [vmem:[%s13464_s1 + $0x1a8] sm:$0xff]   ;;  %v10994_v62 = vld [vmem:[%s10513_s27 + $0x90] sm:$0xff]  }
  0x9e   : > { %v1152_v2 = vor.u32 %v1151_v45, %v1147_v44  ;;  %v589_v17 = vor.u32 %v588_v9, %v584_v59  ;;  %v1190_v59 = vshll.u32 %v10725_v51, 16 }
  0x9f   : > { %2066 = vmatpush1.bf16.msra.mxu0 %v10758_v10  ;;  %v1140_v10 = vor.u32 %v1139_v53, %v1135_v13  ;;  %v9936_v13 = vld [vmem:[%s10513_s27 + $0x80] ss:$0 sps:$4 sm:$0x11]  }
  0xa0   : > { %2067 = vmatprep.subr.bf16.mxu0 %v13473_v0  ;;  %v603_v33 = vshll.u32 %v9936_v13, 16  ;;  %v1192_v14 = vrot.slane %v1190_v59, 1  ;;  %v620_v13 = vshrl.u32 %v10994_v62, 16 }
  0xa1   : > { %v1145_v56 = vsel %vm474_vm1, %v1140_v10, %v1144_v32  ;;  %v596_v32 = vshrl.u32 %v10939_v36, 16 }
  0xa2   : > { %1622 = vmatmul.mubr.bf16.gmra.mrb[20].mxu0 %v10609_v55  ;;  %v9943_v55 = vld [vmem:[%s13464_s1 + $0x180] sm:$0xff]  }
  0xa3   : > { %1629 = vmatprep.mubr.bf16.mxu0 %v1133_v18  ;;  %2068 = vmatpush1.bf16.msra.mxu0 %v10781_v21  ;;  %v9934_v21 = vld [vmem:[%s10513_s27 + $0x74] ss:$0 sps:$4 sm:$0x11]   ;;  %v598_v18 = vshll.u32 %v10939_v36, 16 }
  0xa4   : > { %2069 = vmatprep.subr.bf16.mxu0 %v13473_v0  ;;  %2128 = vmatmul.mubr.bf16.vlgmr.msra.gmra.mrb[36].mxu1 %v10832_v8  ;;  %v9944_v8 = vld [vmem:[%s13464_s1 + $0x188] sm:$0xff]   ;;  %v591_v46 = vshll.u32 %v9934_v21, 16 }
  0xa5   : > { %2135 = vmatprep.mubr.bf16.mxu1 %v570_v43  ;;  %3121 = vmatpush1.bf16.msra.mxu1 %v9943_v55  ;;  %v600_v5 = vrot.slane %v598_v18, 1  ;;  %v9938_v43 = vld [vmem:[%s10513_s27 + $0x8c] ss:$0 sps:$4 sm:$0x11]   ;;  %v9965_v18 = vld [vmem:[%s13464_s1 + $0x1c0] sm:$0xff]  }
  0xa6   : > { %3122 = vmatprep.subr.bf16.mxu1 %v13473_v0  ;;  %v593_v42 = vrot.slane %v591_v46, 1 }
  0xa7   : > { %2070 = vmatpush1.bf16.msra.mxu0 %v10801_v41  ;;  %v1156_v41 = vrot.slane %v1154_v48, 1  ;;  %v601_v45 = vor.u32 %v600_v5, %v596_v32  ;;  %v605_v48 = vrot.slane %v603_v33, 1 }
  0xa8   : > { %2071 = vmatprep.subr.bf16.mxu0 %v13473_v0  ;;  %v594_v34 = vsel %vm474_vm1, %v589_v17, %v593_v42 }
  0xa9   : > { %3123 = vmatpush1.bf16.msra.mxu1 %v9944_v8  ;;  %v1157_v53 = vsel %vm474_vm1, %v1152_v2, %v1156_v41  ;;  %v606_v6 = vsel %vm474_vm1, %v601_v45, %v605_v48  ;;  %v1183_v41 = vshrl.u32 %v10729_v24, 16  ;;  %v9940_v2 = vld [vmem:[%s10513_s27 + $0x98] ss:$0 sps:$4 sm:$0x11]   ;;  %v1207_v45 = vshrl.u32 %v10768_v30, 16 }
  0xaa   : > { %1630 = vmatmul.mubr.bf16.gmra.mrb[24].mxu0 %v10620_v58  ;;  %v9947_v58 = vld [vmem:[%s13464_s1 + $0x190] sm:$0xff]   ;;  %3124 = vmatprep.subr.bf16.mxu1 %v13473_v0  ;;  %v627_v17 = vshll.u32 %v9940_v2, 16 }
  0xab   : > { %1637 = vmatprep.mubr.bf16.mxu0 %v1145_v56  ;;  %2072 = vmatpush1.bf16.msra.mxu0 %v10825_v23  ;;  %v1166_v23 = vshll.u32 %v10688_v27, 16  ;;  %v615_v56 = vshll.u32 %v9938_v43, 16  ;;  %v9946_v48 = vld [vmem:[%s10513_s27 + $0xb0] ss:$0 sps:$4 sm:$0x11]  }
  0xac   : > { %2073 = vmatprep.subr.bf16.mxu0 %v13473_v0  ;;  %2136 = vmatmul.mubr.bf16.gmra.mrb[40].mxu1 %v10872_v37  ;;  %v1173_v37 = vshll.u32 %v10707_v38, 16  ;;  %v629_v5 = vrot.slane %v627_v17, 1 }
  0xad   : > { %2143 = vmatprep.mubr.bf16.mxu1 %v582_v3  ;;  %3125 = vmatpush1.bf16.msra.mxu1 %v9947_v58  ;;  %v1168_v27 = vrot.slane %v1166_v23, 1  ;;  %v617_v46 = vrot.slane %v615_v56, 1  ;;  %v622_v58 = vshll.u32 %v10994_v62, 16  ;;  %v11014_v23 = vld [vmem:[%s10513_s27 + $0x9c] sm:$0xff]  }
  0xae   : > { %3126 = vmatprep.subr.bf16.mxu1 %v13473_v0  ;;  %v1175_v10 = vrot.slane %v1173_v37, 1  ;;  %v9975_v56 = vld [vmem:[%s13464_s1 + $0x1d8] sm:$0xff]  }
  0xaf   : > { %2074 = vmatpush1.bf16.msra.mxu0 %v10842_v7  ;;  %v10963_v7 = vld [vmem:[%s10513_s27 + $0x84] sm:$0xff]   ;;  %v1169_v44 = vsel %vm474_vm1, %v1164_v57, %v1168_v27  ;;  %v634_v57 = vshll.u32 %v11014_v23, 16 }
  0xb0   : > { %2075 = vmatprep.subr.bf16.mxu0 %v13473_v0  ;;  %v610_v55 = vshll.u32 %v10963_v7, 16  ;;  %v1176_v8 = vor.u32 %v1175_v10, %v1171_v35  ;;  %v9942_v27 = vld [vmem:[%s10513_s27 + $0xa4] ss:$0 sps:$4 sm:$0x11]   ;;  %v11036_v10 = vld [vmem:[%s10513_s27 + $0xa8] sm:$0xff]  }
  0xb1   : > { %3127 = vmatpush1.bf16.msra.mxu1 %v9950_v20  ;;  %v1202_v20 = vshll.u32 %v10732_v52, 16  ;;  %v9969_v52 = vld [vmem:[%s13464_s1 + $0x1c8] sm:$0xff]   ;;  %v639_v35 = vshll.u32 %v9942_v27, 16  ;;  %v9984_v27 = vld [vmem:[%s13464_s1 + $0x1f0] sm:$0xff]  }
  0xb2   : > { %1638 = vmatmul.mubr.bf16.gmra.mrb[28].mxu0 %v10645_v4  ;;  %v9953_v4 = vld [vmem:[%s13464_s1 + $0x1a0] sm:$0xff]   ;;  %3128 = vmatprep.subr.bf16.mxu1 %v13473_v0  ;;  %v612_v21 = vrot.slane %v610_v55, 1  ;;  %v1181_v3 = vsel %vm474_vm1, %v1176_v8, %v1180_v31  ;;  %v636_v55 = vrot.slane %v634_v57, 1  ;;  %v651_v8 = vshll.u32 %v9946_v48, 16 }
  0xb3   : > { %1645 = vmatprep.mubr.bf16.mxu0 %v1157_v53  ;;  %2076 = vmatpush1.bf16.msra.mxu0 %v10864_v25  ;;  %v10977_v25 = vld [vmem:[%s13464_s1 + $0x80] sm:$0xff]   ;;  %v624_v53 = vrot.slane %v622_v58, 1  ;;  %v1204_v33 = vrot.slane %v1202_v20, 1  ;;  %v9949_v58 = vld [vmem:[%s10513_s27 + $0xbc] ss:$0 sps:$4 sm:$0x11]  }
  0xb4   : > { %2077 = vmatprep.subr.bf16.mxu0 %v13473_v0  ;;  %2144 = vmatmul.mubr.bf16.gmra.mrb[44].mxu1 %v10900_v15  ;;  %v1185_v15 = vshll.u32 %v10729_v24, 16 }
  0xb5   : > { %2151 = vmatprep.mubr.bf16.mxu1 %v594_v34  ;;  %3129 = vmatpush1.bf16.msra.mxu1 %v9953_v4  ;;  %v625_v32 = vor.u32 %v624_v53, %v620_v13  ;;  %v632_v4 = vshrl.u32 %v11014_v23, 16  ;;  %v663_v13 = vshll.u32 %v9949_v58, 16  ;;  %v11078_v53 = vld [vmem:[%s10513_s27 + $0xc0] sm:$0xff]  }
  0xb6   : > { %3130 = vmatprep.subr.bf16.mxu1 %v13473_v0 }
  0xb7   : > { %2078 = vmatpush1.bf16.msra.mxu0 %v10887_v54  ;;  %v608_v54 = vshrl.u32 %v10963_v7, 16  ;;  %v630_v22 = vsel %vm474_vm1, %v625_v32, %v629_v5  ;;  %v665_v57 = vrot.slane %v663_v13, 1 }
  0xb8   : > { %9339 = vmatprep.subr.bf16.mxu0 %v10977_v25 }
  0xb9   : > { %3131 = vmatpush1.bf16.msra.mxu1 %v9954_v50  ;;  %v613_v9 = vor.u32 %v612_v21, %v608_v54  ;;  %v637_v54 = vor.u32 %v636_v55, %v632_v4  ;;  %v646_v21 = vshll.u32 %v11036_v10, 16  ;;  %v11100_v55 = vld [vmem:[%s10513_s27 + $0xcc] sm:$0xff]  }
  0xba   : > { %1646 = vmatmul.mubr.bf16.gmra.mrb[32].mxu0 %v10664_v11  ;;  %3132 = vmatprep.subr.bf16.mxu1 %v13473_v0  ;;  %v1187_v11 = vrot.slane %v1185_v15, 1  ;;  %v641_v15 = vrot.slane %v639_v35, 1 }
  0xbb   : > { %1653 = vmatprep.mubr.bf16.mxu0 %v1169_v44  ;;  %v618_v42 = vsel %vm474_vm1, %v613_v9, %v617_v46  ;;  %v9971_v44 = vld [vmem:[%s13464_s1 + $0x1d0] sm:$0xff]   ;;  %v648_v59 = vrot.slane %v646_v21, 1  ;;  %v9979_v46 = vld [vmem:[%s13464_s1 + $0x1e0] sm:$0xff]   ;;  %v653_v9 = vrot.slane %v651_v8, 1  ;;  %v1262_v8 = vshll.u32 %v10858_v19, 16 }
  0xbc   : > { %2152 = vmatmul.mubr.bf16.gmra.mrb[48].mxu1 %v10915_v40  ;;  %v1197_v40 = vshll.u32 %v10739_v60, 16  ;;  %v1188_v51 = vor.u32 %v1187_v11, %v1183_v41  ;;  %v642_v11 = vsel %vm474_vm1, %v637_v54, %v641_v15  ;;  %v1257_v54 = vshll.u32 %v10854_v16, 16 }
  0xbd   : > { %2159 = vmatprep.mubr.bf16.mxu1 %v606_v6  ;;  %3133 = vmatpush1.bf16.msra.mxu1 %v9957_v1  ;;  %v644_v1 = vshrl.u32 %v11036_v10, 16  ;;  %v11057_v6 = vld [vmem:[%s10513_s27 + $0xb4] sm:$0xff]  }
  0xbe   : > { %3134 = vmatprep.subr.bf16.mxu1 %v13473_v0  ;;  %v1199_v37 = vrot.slane %v1197_v40, 1  ;;  %v1193_v34 = vsel %vm474_vm1, %v1188_v51, %v1192_v14  ;;  %v658_v51 = vshll.u32 %v11057_v6, 16  ;;  %v9981_v14 = vld [vmem:[%s13464_s1 + $0x1e8] sm:$0xff]  }
  0xbf   : > { %v649_v40 = vor.u32 %v648_v59, %v644_v1  ;;  %v11116_v1 = vld [vmem:[%s10513_s27 + $0x18] sm:$0xff]  }
  0xc0   : > { %v660_v20 = vrot.slane %v658_v51, 1  ;;  %v2624_v19 = vshll.u32 %v11116_v1, 16 }
  0xc1   : > { %3135 = vmatpush1.bf16.msra.mxu1 %v9961_v12 }
  0xc2   : > { %1654 = vmatmul.mubr.bf16.gmra.mrb[36].mxu0 %v10691_v28  ;;  %3136 = vmatprep.subr.bf16.mxu1 %v13473_v0  ;;  %v1195_v28 = vshrl.u32 %v10739_v60, 16 }
  0xc3   : > { %1661 = vmatprep.mubr.bf16.mxu0 %v1181_v3  ;;  %v1226_v3 = vshll.u32 %v10788_v29, 16  ;;  %v1233_v29 = vshll.u32 %v10808_v39, 16 }
  0xc4   : > { %2160 = vmatmul.mubr.bf16.gmra.mrb[52].mxu1 %v10939_v36  ;;  %v1209_v36 = vshll.u32 %v10768_v30, 16  ;;  %v1200_v43 = vor.u32 %v1199_v37, %v1195_v28  ;;  %v1238_v37 = vshll.u32 %v10811_v63, 16 }
  0xc5   : > { %2167 = vmatprep.mubr.bf16.mxu1 %v618_v42  ;;  %3137 = vmatpush1.bf16.msra.mxu1 %v9965_v18  ;;  %v656_v42 = vshrl.u32 %v11057_v6, 16  ;;  %v654_v18 = vsel %vm474_vm1, %v649_v40, %v653_v9  ;;  %v1235_v28 = vrot.slane %v1233_v29, 1  ;;  %v9988_v9 = vld [vmem:[%s10513_s27 + $0x20] ss:$0 sps:$4 sm:$0x11]   ;;  %v2622_v29 = vshrl.u32 %v11116_v1, 16 }
  0xc6   : > { %3138 = vmatprep.subr.bf16.mxu1 %v13473_v0  ;;  %v1211_v50 = vrot.slane %v1209_v36, 1  ;;  %v1205_v31 = vsel %vm474_vm1, %v1200_v43, %v1204_v33  ;;  %v9986_v33 = vld [vmem:[%s13464_s1 + $0x1f8] sm:$0xff]   ;;  %v1240_v63 = vrot.slane %v1238_v37, 1  ;;  %v668_v36 = vshrl.u32 %v11078_v53, 16 }
  0xc7   : > { %v661_v5 = vor.u32 %v660_v20, %v656_v42  ;;  %v2626_v42 = vrot.slane %v2624_v19, 1  ;;  %v2629_v13 = vshll.u32 %v9988_v9, 16  ;;  %v11149_v37 = vld [vmem:[%s10513_s27 + $0x18] sm:$0xff]  }
  0xc8   : > { %v1212_v41 = vor.u32 %v1211_v50, %v1207_v45  ;;  %v1250_v45 = vshll.u32 %v10828_v61, 16  ;;  %v11112_v61 = vld [vmem:[%s10513_s27] sm:$0xff]  }
  0xc9   : > { %3139 = vmatpush1.bf16.msra.mxu1 %v9969_v52  ;;  %v670_v52 = vshll.u32 %v11078_v53, 16  ;;  %v666_v43 = vsel %vm474_vm1, %v661_v5, %v665_v57  ;;  %v476_v58 = vshrl.u32 %v11112_v61, 16  ;;  %v2627_v57 = vor.u32 %v2626_v42, %v2622_v29  ;;  %v10199_v5 = vld [vmem:[%s10513_s27 + $0xcc] sm:$0xff]  }
  0xca   : > { %1662 = vmatmul.mubr.bf16.gmra.mrb[40].mxu0 %v10707_v38  ;;  %3140 = vmatprep.subr.bf16.mxu1 %v13473_v0  ;;  %v1214_v38 = vshll.u32 %v10771_v47, 16  ;;  %v9966_v42 = vld [vmem:[%s13464_s1 + $0x90] sm:$0xff]  }
  0xcb   : > { %1669 = vmatprep.mubr.bf16.mxu0 %v1193_v34  ;;  %v9952_v34 = vld [vmem:[%s10513_s27 + $0xc8] ss:$0 sps:$4 sm:$0x11]  }
  0xcc   : > { %2168 = vmatmul.mubr.bf16.gmra.mrb[56].mxu1 %v10963_v7  ;;  %v1216_v47 = vrot.slane %v1214_v38, 1  ;;  %v1221_v7 = vshll.u32 %v10785_v26, 16  ;;  %v675_v4 = vshll.u32 %v9952_v34, 16  ;;  %v9956_v38 = vld [vmem:[%s10513_s27 + $0xd4] ss:$0 sps:$4 sm:$0x11]  }
  0xcd   : > { %2175 = vmatprep.mubr.bf16.mxu1 %v630_v22  ;;  %3141 = vmatpush1.bf16.msra.mxu1 %v9971_v44  ;;  %v672_v22 = vrot.slane %v670_v52, 1  ;;  %v687_v21 = vshll.u32 %v9956_v38, 16  ;;  %v2631_v34 = vrot.slane %v2629_v13, 1 }
  0xce   : > { %3142 = vmatprep.subr.bf16.mxu1 %v13473_v0  ;;  %v1223_v2 = vrot.slane %v1221_v7, 1  ;;  %v1217_v12 = vsel %vm474_vm1, %v1212_v41, %v1216_v47  ;;  %v677_v15 = vrot.slane %v675_v4, 1  ;;  %v1255_v41 = vshrl.u32 %v10854_v16, 16 }
  0xcf   : > { %v673_v50 = vor.u32 %v672_v22, %v668_v36  ;;  %v689_v59 = vrot.slane %v687_v21, 1  ;;  %v2632_v36 = vsel %vm474_vm1, %v2627_v57, %v2631_v34 }
  0xd1   : > { %3143 = vmatpush1.bf16.msra.mxu1 %v9975_v56  ;;  %v678_v47 = vsel %vm474_vm1, %v673_v50, %v677_v15  ;;  %v11166_v50 = vld [vmem:[%s10513_s27 + $0x20] ss:$0 sps:$4 sm:$0x11]   ;;  %v500_v15 = vshrl.u32 %v11149_v37, 16 }
  0xd2   : > { %1670 = vmatmul.mubr.bf16.gmra.mrb[44].mxu0 %v10729_v24  ;;  %3144 = vmatprep.subr.bf16.mxu1 %v13473_v0  ;;  %v1219_v24 = vshrl.u32 %v10785_v26, 16 }
  0xd3   : > { %1677 = vmatprep.mubr.bf16.mxu0 %v1205_v31  ;;  %v682_v31 = vshll.u32 %v11100_v55, 16 }
  0xd4   : > { %2176 = vmatmul.mubr.bf16.gmra.mrb[60].mxu1 %v10994_v62  ;;  %v1228_v62 = vrot.slane %v1226_v3, 1  ;;  %v1224_v17 = vor.u32 %v1223_v2, %v1219_v24  ;;  %v11126_v24 = vld [vmem:[%s10513_s27 + $0xc] sm:$0xff]  }
  0xd5   : > { %2183 = vmatprep.mubr.bf16.mxu1 %v642_v11  ;;  %3145 = vmatpush1.bf16.msra.mxu1 %v9979_v46  ;;  %v684_v7 = vrot.slane %v682_v31, 1  ;;  %v1259_v11 = vrot.slane %v1257_v54, 1  ;;  %v478_v46 = vshll.u32 %v11112_v61, 16 }
  0xd6   : > { %3146 = vmatprep.subr.bf16.mxu1 %v13473_v0  ;;  %v1229_v32 = vsel %vm474_vm1, %v1224_v17, %v1228_v62  ;;  %v11141_v17 = vld [vmem:[%s10513_s27 + $0x24] sm:$0xff]  }
  0xd7   : > { %v1260_v40 = vor.u32 %v1259_v11, %v1255_v41  ;;  %v480_v51 = vrot.slane %v478_v46, 1  ;;  %v2634_v52 = vshrl.u32 %v11141_v17, 16  ;;  %v2858_v38 = vrot.slane %v11141_v17, 1  ;;  %v11178_v41 = vld [vmem:[%s10513_s27 + $0x2c] ss:$0 sps:$4 sm:$0x11]  }
  0xd8   : > { %v9997_v46 = vld [vmem:[%s10513_s27 + $0x44] ss:$0 sps:$4 sm:$0x11]  }
  0xd9   : > { %3147 = vmatpush1.bf16.msra.mxu1 %v9981_v14  ;;  %v490_v14 = vshll.u32 %v11126_v24, 16  ;;  %v2665_v34 = vshll.u32 %v9997_v46, 16 }
  0xda   : > { %1678 = vmatmul.mubr.bf16.gmra.mrb[48].mxu0 %v10739_v60  ;;  %3148 = vmatprep.subr.bf16.mxu1 %v13473_v0  ;;  %v1231_v60 = vshrl.u32 %v10808_v39, 16 }
  0xdb   : > { %1685 = vmatprep.mubr.bf16.mxu0 %v1217_v12  ;;  %v11135_v12 = vld [vmem:[%s10513_s27 + $0x14] ss:$0 sps:$4 sm:$0x11]  }
  0xdc   : > { %2184 = vmatmul.mubr.bf16.gmra.mrb[64].mxu1 %v11014_v23  ;;  %v1245_v23 = vshll.u32 %v10818_v49, 16  ;;  %v1236_v35 = vor.u32 %v1235_v28, %v1231_v60  ;;  %v488_v60 = vshrl.u32 %v11126_v24, 16  ;;  %v492_v28 = vrot.slane %v490_v14, 1 }
  0xdd   : > { %2191 = vmatprep.mubr.bf16.mxu1 %v654_v18  ;;  %3149 = vmatpush1.bf16.msra.mxu1 %v9984_v27  ;;  %v9991_v18 = vld [vmem:[%s10513_s27 + $0x2c] ss:$0 sps:$4 sm:$0x11]  }
  0xde   : > { %3150 = vmatprep.subr.bf16.mxu1 %v13473_v0  ;;  %v1247_v44 = vrot.slane %v1245_v23, 1  ;;  %v1241_v48 = vsel %vm474_vm1, %v1236_v35, %v1240_v63  ;;  %v11155_v63 = vld [vmem:[%s10513_s27 + $0x30] sm:$0xff]   ;;  %v481_v23 = vor.u32 %v480_v51, %v476_v58  ;;  %v9994_v35 = vld [vmem:[%s10513_s27 + $0x38] ss:$0 sps:$4 sm:$0x11]  }
  0xdf   : > { %v2648_v22 = vshll.u32 %v11155_v63, 16  ;;  %v2861_v19 = vrot.slane %v11155_v63, 1 }
  0xe1   : > { %3151 = vmatpush1.bf16.msra.mxu1 %v9986_v33  ;;  %v2641_v33 = vshll.u32 %v9991_v18, 16 }
  0xe2   : > { %1686 = vmatmul.mubr.bf16.gmra.mrb[52].mxu0 %v10768_v30  ;;  %v1243_v30 = vshrl.u32 %v10818_v49, 16  ;;  %v680_v49 = vshrl.u32 %v11100_v55, 16 }
  0xe3   : > { %1693 = vmatprep.mubr.bf16.mxu0 %v1229_v32  ;;  %v2636_v32 = vshll.u32 %v11141_v17, 16  ;;  %v2643_v31 = vrot.slane %v2641_v33, 1 }
  0xe4   : > { %2192 = vmatmul.mubr.bf16.gmra.mrb[68].mxu1 %v11036_v10  ;;  %v1252_v10 = vrot.slane %v1250_v45, 1  ;;  %v1248_v56 = vor.u32 %v1247_v44, %v1243_v30  ;;  %v685_v3 = vor.u32 %v684_v7, %v680_v49  ;;  %v2855_v30 = vrot.slane %v11116_v1, 1  ;;  %v10200_v49 = vld [vmem:[%s10513_s27 + $0xd8] sm:$0xff]  }
  0xe5   : > { %2199 = vmatprep.mubr.bf16.mxu1 %v666_v43  ;;  %v2638_v4 = vrot.slane %v2636_v32, 1  ;;  %v502_v43 = vshll.u32 %v11149_v37, 16  ;;  %v2856_v44 = vrot.slane %v9988_v9, 1  ;;  %v2653_v7 = vshll.u32 %v9994_v35, 16  ;;  %v11190_v9 = vld [vmem:[%s10513_s27 + $0x24] sm:$0xff]  }
  0xe6   : > { %v1253_v2 = vsel %vm474_vm1, %v1248_v56, %v1252_v10  ;;  %v690_v62 = vsel %vm474_vm1, %v685_v3, %v689_v59  ;;  %v2646_v56 = vshrl.u32 %v11155_v63, 16  ;;  %v11182_v59 = vld [vmem:[%s10513_s27 + $0x3c] sm:$0xff]   ;;  %v507_v3 = vshll.u32 %v11166_v50, 16  ;;  %v11216_v32 = vld [vmem:[%s10513_s27 + $0x48] sm:$0xff]  }
  0xe7   : > { %v11170_v10 = vsel %vm709_vm0, %v2855_v30, %v2856_v44  ;;  %v504_v21 = vrot.slane %v502_v43, 1  ;;  %v2655_v14 = vrot.slane %v2653_v7, 1 }
  0xe8   : > { %v509_v13 = vrot.slane %v507_v3, 1  ;;  %v9980_v3 = vld [vmem:[%s13464_s1 + $0xb0] sm:$0xff]  }
  0xea   : > { %1694 = vmatmul.mubr.bf16.gmra.mrb[56].mxu0 %v10785_v26  ;;  %v11121_v26 = vld [vmem:[%s10513_s27 + $0x8] ss:$0 sps:$4 sm:$0x11]  }
  0xeb   : > { %1701 = vmatprep.mubr.bf16.mxu0 %v1241_v48  ;;  %v483_v16 = vshll.u32 %v11121_v26, 16  ;;  %v2859_v48 = vrot.slane %v9991_v18, 1  ;;  %v519_v18 = vshll.u32 %v11178_v41, 16 }
  0xec   : > { %2200 = vmatmul.mubr.bf16.gmra.mrb[72].mxu1 %v11057_v6  ;;  %v1264_v6 = vrot.slane %v1262_v8, 1  ;;  %v493_v8 = vor.u32 %v492_v28, %v488_v60  ;;  %v2658_v28 = vshrl.u32 %v11182_v59, 16 }
  0xed   : > { %2207 = vmatprep.mubr.bf16.mxu1 %v678_v47  ;;  %v485_v27 = vrot.slane %v483_v16, 1  ;;  %v11173_v54 = vsel %vm709_vm0, %v2858_v38, %v2859_v48  ;;  %v2650_v47 = vrot.slane %v2648_v22, 1  ;;  %v2864_v16 = vrot.slane %v11182_v59, 1 }
  0xee   : > { %v1265_v20 = vsel %vm474_vm1, %v1260_v40, %v1264_v6  ;;  %v2862_v6 = vrot.slane %v9994_v35, 1  ;;  %v2865_v40 = vrot.slane %v9997_v46, 1  ;;  %v2672_v35 = vshll.u32 %v11216_v32, 16 }
  0xef   : > { %v486_v45 = vsel %vm474_vm1, %v481_v23, %v485_v27  ;;  %v2651_v51 = vor.u32 %v2650_v47, %v2646_v56  ;;  %v11211_v27 = vld [vmem:[%s10513_s27 + $0x38] ss:$0 sps:$4 sm:$0x11]   ;;  %v521_v43 = vrot.slane %v519_v18, 1  ;;  %v2670_v38 = vshrl.u32 %v11216_v32, 16 }
  0xf0   : > { %v11198_v29 = vsel %vm709_vm0, %v2861_v19, %v2862_v6  ;;  %v531_v30 = vshll.u32 %v11211_v27, 16  ;;  %v2674_v48 = vrot.slane %v2672_v35, 1  ;;  %v9985_v18 = vld [vmem:[%s13464_s1 + $0xb8] sm:$0xff]  }
  0xf1   : > { %v2656_v60 = vsel %vm474_vm1, %v2651_v51, %v2655_v14 }
  0xf2   : > { %1702 = vmatmul.mubr.bf16.gmra.mrb[60].mxu0 %v10808_v39  ;;  %v495_v39 = vshll.u32 %v11135_v12, 16 }
  0xf3   : > { %1709 = vmatprep.mubr.bf16.mxu0 %v1253_v2  ;;  %v9962_v2 = vld [vmem:[%s13464_s1 + $0x88] sm:$0xff]  }
  0xf4   : > { %2208 = vmatmul.mubr.bf16.gmra.mrb[76].mxu1 %v11078_v53  ;;  %v497_v53 = vrot.slane %v495_v39, 1  ;;  %v514_v39 = vshll.u32 %v11190_v9, 16 }
  0xf5   : > { %2215 = vmatprep.mubr.bf16.mxu1 %v690_v62  ;;  %v2660_v62 = vshll.u32 %v11182_v59, 16 }
  0xf6   : > { %v498_v58 = vsel %vm474_vm1, %v493_v8, %v497_v53  ;;  %v11222_v53 = vld [vmem:[%s10513_s27 + $0x30] sm:$0xff]   ;;  %v516_v33 = vrot.slane %v514_v39, 1  ;;  %v11253_v8 = vld [vmem:[%s10513_s27 + $0x44] ss:$0 sps:$4 sm:$0x11]  }
  0xf7   : > { %v2662_v57 = vrot.slane %v2660_v62, 1  ;;  %v526_v22 = vshll.u32 %v11222_v53, 16  ;;  %v524_v56 = vshrl.u32 %v11222_v53, 16  ;;  %v11266_v62 = vld [vmem:[%s10513_s27 + $0x60] sm:$0xff]  }
  0xf9   : > { %v528_v47 = vrot.slane %v526_v22, 1 }
  0xfa   : > { %1710 = vmatmul.mubr.bf16.gmra.mrb[64].mxu0 %v10199_v5  ;;  %v9970_v5 = vld [vmem:[%s13464_s1 + $0x98] sm:$0xff]  }
  0xfb   : > { %1717 = vmatprep.mubr.bf16.mxu0 %v1265_v20  ;;  %v505_v20 = vor.u32 %v504_v21, %v500_v15  ;;  %v11248_v21 = vld [vmem:[%s10513_s27 + $0x5c] ss:$0 sps:$4 sm:$0x11]  }
  0xfc   : > { %2216 = vmatmul.mubr.bf16.gmra.mrb[80].mxu1 %v11100_v55  ;;  %v2639_v55 = vor.u32 %v2638_v4, %v2634_v52  ;;  %v512_v52 = vshrl.u32 %v11190_v9, 16  ;;  %v2667_v4 = vrot.slane %v2665_v34, 1  ;;  %v2689_v14 = vshll.u32 %v11248_v21, 16  ;;  %v11282_v34 = vld [vmem:[%s13464_s1 + $0x200] sm:$0xff]  }
  0xfd   : > { %3152 = vmatprep.mubr.bf16.mxu1 %v2632_v36  ;;  %v510_v23 = vsel %vm474_vm1, %v505_v20, %v509_v13  ;;  %v2663_v36 = vor.u32 %v2662_v57, %v2658_v28  ;;  %v11271_v13 = vld [vmem:[%s10513_s27 + $0x68] ss:$0 sps:$4 sm:$0x11]   ;;  %v2696_v57 = vshll.u32 %v11266_v62, 16 }
  0xfe   : > { %v2644_v11 = vsel %vm474_vm1, %v2639_v55, %v2643_v31  ;;  %v517_v44 = vor.u32 %v516_v33, %v512_v52  ;;  %v11238_v55 = vld [vmem:[%s10513_s27 + $0x54] sm:$0xff]   ;;  %v9976_v31 = vld [vmem:[%s13464_s1 + $0xa8] sm:$0xff]   ;;  %v2691_v28 = vrot.slane %v2689_v14, 1  ;;  %v2694_v52 = vshrl.u32 %v11266_v62, 16 }
  0xff   : > { %v2698_v33 = vrot.slane %v2696_v57, 1 }
 0x100   : > { %v522_v7 = vsel %vm474_vm1, %v517_v44, %v521_v43 }
 0x101   : > { %v2699_v43 = vor.u32 %v2698_v33, %v2694_v52  ;;  %v10201_v52 = vld [vmem:[%s10513_s27 + $0x48] sm:$0xff]  }
 0x102   : > { %1718 = vmatmul.mubr.bf16.gmra.mrb[68].mxu0 %v10200_v49  ;;  %v11244_v49 = vld [vmem:[%s10513_s27 + $0x3c] sm:$0xff]   ;;  %v728_v33 = vrot.slane %v10201_v52, 1 }
 0x103   : > { %2079 = vmatprep.mubr.bf16.mxu0 %v486_v45  ;;  %v2668_v45 = vsel %vm474_vm1, %v2663_v36, %v2667_v4  ;;  %v536_v19 = vshrl.u32 %v11244_v49, 16  ;;  %v538_v6 = vshll.u32 %v11244_v49, 16  ;;  %v11288_v36 = vld [vmem:[%s10513_s27 + $0x6c] sm:$0xff]   ;;  %v11292_v4 = vld [vmem:[%s10513_s27 + $0x74] ss:$0 sps:$4 sm:$0x11]  }
 0x104   : > { %3153 = vmatmul.mubr.bf16.vlgmr.msra.gmra.mrb[84].mxu1 %v11116_v1  ;;  %v11201_v1 = vsel %vm709_vm0, %v2864_v16, %v2865_v40  ;;  %v2682_v40 = vshrl.u32 %v11238_v55, 16  ;;  %v2708_v22 = vshll.u32 %v11288_v36, 16 }
 0x105   : > { %3160 = vmatprep.mubr.bf16.mxu1 %v2644_v11  ;;  %v2675_v11 = vor.u32 %v2674_v48, %v2670_v38  ;;  %v540_v39 = vrot.slane %v538_v6, 1  ;;  %v2713_v48 = vshll.u32 %v11292_v4, 16 }
 0x106   : > { %v2710_v38 = vrot.slane %v2708_v22, 1  ;;  %v10202_v22 = vld [vmem:[%s10513_s27 + $0x50] ss:$0 sps:$4 sm:$0x11]  }
 0x10a   : > { %2080 = vmatmul.mubr.bf16.vlgmr.msra.gmra.mrb[72].mxu0 %v11112_v61 }
 0x10b   : > { %9340 = vmatpush3.bf16.msra.mxu0 %v10977_v25  ;;  %2087 = vmatprep.mubr.bf16.mxu0 %v498_v58  ;;  %v10000_v25 = vld [vmem:[%s10513_s27 + $0x50] ss:$0 sps:$4 sm:$0x11]   ;;  %v529_v58 = vor.u32 %v528_v47, %v524_v56  ;;  %v713_v56 = vrot.slane %v11126_v24, 1  ;;  %v2715_v47 = vrot.slane %v2713_v48, 1  ;;  %v11378_v48 = vld [vmem:[%s10513_s27 + $0x9c] sm:$0xff]  }
 0x10c   : > { %9341 = vmatprep.subr.bf16.mxu0 %v9962_v2  ;;  %3161 = vmatmul.mubr.bf16.gmra.mrb[88].mxu1 %v11141_v17  ;;  %v9974_v17 = vld [vmem:[%s13464_s1 + $0xa0] sm:$0xff]   ;;  %v2677_v15 = vshll.u32 %v10000_v25, 16 }
 0x10d   : > { %3168 = vmatprep.mubr.bf16.mxu1 %v2656_v60 }
 0x10e   : > { %v2679_v46 = vrot.slane %v2677_v15, 1  ;;  %v11304_v15 = vld [vmem:[%s10513_s27 + $0x78] sm:$0xff]  }
 0x10f   : > { %9342 = vmatpush3.bf16.msra.mxu0 %v9962_v2  ;;  %v2684_v2 = vshll.u32 %v11238_v55, 16 }
 0x110   : > { %9343 = vmatprep.subr.bf16.mxu0 %v9966_v42  ;;  %v2680_v16 = vsel %vm474_vm1, %v2675_v11, %v2679_v46  ;;  %v714_v11 = vrot.slane %v11135_v12, 1  ;;  %v2718_v12 = vshrl.u32 %v11304_v15, 16 }
 0x111   : > { %v2686_v51 = vrot.slane %v2684_v2, 1  ;;  %v716_v2 = vrot.slane %v11149_v37, 1 }
 0x112   : > { %2088 = vmatmul.mubr.bf16.gmra.mrb[76].mxu0 %v11126_v24  ;;  %v719_v24 = vrot.slane %v11190_v9, 1  ;;  %v715_v14 = vsel %vm709_vm0, %v713_v56, %v714_v11 }
 0x113   : > { %9344 = vmatpush3.bf16.msra.mxu0 %v9966_v42  ;;  %2095 = vmatprep.mubr.bf16.mxu0 %v510_v23  ;;  %v543_v42 = vshll.u32 %v11253_v8, 16  ;;  %v2687_v60 = vor.u32 %v2686_v51, %v2682_v40  ;;  %v2701_v23 = vshll.u32 %v11271_v13, 16  ;;  %v11331_v51 = vld [vmem:[%s10513_s27 + $0x84] sm:$0xff]  }
 0x114   : > { %9345 = vmatprep.subr.bf16.mxu0 %v9970_v5  ;;  %3169 = vmatmul.mubr.bf16.gmra.mrb[92].mxu1 %v11155_v63  ;;  %v533_v63 = vrot.slane %v531_v30, 1  ;;  %v710_v30 = vrot.slane %v11112_v61, 1 }
 0x115   : > { %3176 = vmatprep.mubr.bf16.mxu1 %v2668_v45  ;;  %v2692_v25 = vsel %vm474_vm1, %v2687_v60, %v2691_v28  ;;  %v2706_v45 = vshrl.u32 %v11288_v36, 16  ;;  %v726_v28 = vrot.slane %v11253_v8, 1 }
 0x116   : > { %v534_v20 = vsel %vm474_vm1, %v529_v58, %v533_v63  ;;  %v717_v63 = vrot.slane %v11166_v50, 1  ;;  %v9992_v50 = vld [vmem:[%s13464_s1 + $0x208] sm:$0xff]  }
 0x117   : > { %9346 = vmatpush3.bf16.msra.mxu0 %v9970_v5  ;;  %v541_v5 = vor.u32 %v540_v39, %v536_v19  ;;  %v725_v39 = vrot.slane %v11244_v49, 1 }
 0x118   : > { %9347 = vmatprep.subr.bf16.mxu0 %v9974_v17 }
 0x11a   : > { %2096 = vmatmul.mubr.bf16.gmra.mrb[80].mxu0 %v11149_v37 }
 0x11b   : > { %2103 = vmatprep.mubr.bf16.mxu0 %v522_v7  ;;  %9348 = vmatpush3.bf16.msra.mxu0 %v9974_v17  ;;  %v2703_v17 = vrot.slane %v2701_v23, 1  ;;  %v2720_v7 = vshll.u32 %v11304_v15, 16 }
 0x11c   : > { %9349 = vmatprep.subr.bf16.mxu0 %v9976_v31  ;;  %3177 = vmatmul.mubr.bf16.gmra.mrb[96].mxu1 %v11182_v59  ;;  %v545_v59 = vrot.slane %v543_v42, 1  ;;  %v723_v42 = vrot.slane %v11211_v27, 1 }
 0x11d   : > { %3184 = vmatprep.mubr.bf16.mxu1 %v2680_v16  ;;  %v2704_v44 = vsel %vm474_vm1, %v2699_v43, %v2703_v17  ;;  %v2722_v40 = vrot.slane %v2720_v7, 1  ;;  %v2730_v43 = vshrl.u32 %v11331_v51, 16  ;;  %v10001_v7 = vld [vmem:[%s13464_s1 + $0x220] sm:$0xff]  }
 0x11e   : > { %v546_v35 = vsel %vm474_vm1, %v541_v5, %v545_v59  ;;  %v11353_v5 = vld [vmem:[%s10513_s27 + $0x90] sm:$0xff]  }
 0x11f   : > { %9350 = vmatpush3.bf16.msra.mxu0 %v9976_v31  ;;  %v11308_v31 = vld [vmem:[%s10513_s27 + $0x80] ss:$0 sps:$4 sm:$0x11]  }
 0x120   : > { %9351 = vmatprep.subr.bf16.mxu0 %v9980_v3  ;;  %v2725_v37 = vshll.u32 %v11308_v31, 16 }
 0x122   : > { %2104 = vmatmul.mubr.bf16.gmra.mrb[84].mxu0 %v11190_v9  ;;  %v11339_v9 = vld [vmem:[%s10513_s27 + $0x8c] ss:$0 sps:$4 sm:$0x11]   ;;  %v2727_v60 = vrot.slane %v2725_v37, 1 }
 0x123   : > { %2111 = vmatprep.mubr.bf16.mxu0 %v534_v20  ;;  %9352 = vmatpush3.bf16.msra.mxu0 %v9980_v3  ;;  %v720_v3 = vrot.slane %v11178_v41, 1  ;;  %v722_v41 = vrot.slane %v11222_v53, 1  ;;  %v2723_v20 = vor.u32 %v2722_v40, %v2718_v12  ;;  %v2737_v27 = vshll.u32 %v11339_v9, 16  ;;  %v10004_v40 = vld [vmem:[%s13464_s1 + $0x228] sm:$0xff]  }
 0x124   : > { %9353 = vmatprep.subr.bf16.mxu0 %v9985_v18  ;;  %3185 = vmatmul.mubr.bf16.gmra.mrb[100].mxu1 %v11216_v32  ;;  %v711_v32 = vrot.slane %v11121_v26, 1  ;;  %v2711_v26 = vor.u32 %v2710_v38, %v2706_v45  ;;  %v11400_v37 = vld [vmem:[%s10513_s27 + $0xa4] ss:$0 sps:$4 sm:$0x11]  }
 0x125   : > { %3192 = vmatprep.mubr.bf16.mxu1 %v2692_v25  ;;  %v9995_v25 = vld [vmem:[%s13464_s1 + $0x210] sm:$0xff]   ;;  %v721_v45 = vsel %vm709_vm0, %v719_v24, %v720_v3  ;;  %v724_v56 = vsel %vm709_vm0, %v722_v41, %v723_v42 }
 0x126   : > { %v712_v61 = vsel %vm709_vm0, %v710_v30, %v711_v32  ;;  %v2716_v16 = vsel %vm474_vm1, %v2711_v26, %v2715_v47  ;;  %v9998_v30 = vld [vmem:[%s13464_s1 + $0x218] sm:$0xff]   ;;  %v2739_v32 = vrot.slane %v2737_v27, 1  ;;  %v2742_v47 = vshrl.u32 %v11353_v5, 16 }
 0x127   : > { %9354 = vmatpush3.bf16.msra.mxu0 %v9985_v18  ;;  %v718_v18 = vsel %vm709_vm0, %v716_v2, %v717_v63 }
 0x128   : > { %9391 = vmatprep.subr.bf16.mxu0 %v11282_v34 }
 0x12a   : > { %2112 = vmatmul.mubr.bf16.gmra.mrb[88].mxu0 %v11222_v53  ;;  %v2732_v53 = vshll.u32 %v11331_v51, 16 }
 0x12b   : > { %2119 = vmatprep.mubr.bf16.mxu0 %v546_v35  ;;  %v2728_v35 = vsel %vm474_vm1, %v2723_v20, %v2727_v60  ;;  %v10203_v20 = vld [vmem:[%s10513_s27 + $0x54] sm:$0xff]  }
 0x12c   : > { %3193 = vmatmul.mubr.bf16.gmra.mrb[104].mxu1 %v11238_v55  ;;  %v2734_v17 = vrot.slane %v2732_v53, 1  ;;  %v731_v60 = vrot.slane %v10203_v20, 1  ;;  %v10204_v53 = vld [vmem:[%s10513_s27 + $0x5c] ss:$0 sps:$4 sm:$0x11]  }
 0x12d   : > { %3200 = vmatprep.mubr.bf16.mxu1 %v2704_v44  ;;  %v2744_v44 = vshll.u32 %v11353_v5, 16  ;;  %v732_v27 = vrot.slane %v10204_v53, 1  ;;  %v10209_v53 = vld [vmem:[%s10513_s27 + $0x78] sm:$0xff]  }
 0x12e   : > { %v11314_v46 = vpop.f32.mrb[0].mxu1 }
 0x12f   : > { %v11321_v19 = vpop.f32.mrb[1].mxu1  ;;  %v2746_v2 = vrot.slane %v2744_v44, 1 }
 0x130   : > { %v11323_v6 = vpop.f32.mrb[2].mxu1 }
 0x131   : > { %v11326_v58 = vpop.f32.mrb[3].mxu1 }
 0x132   : > { %2120 = vmatmul.mubr.bf16.gmra.mrb[92].mxu0 %v11244_v49  ;;  %v11356_v49 = vld [vmem:[%s10513_s27 + $0x98] ss:$0 sps:$4 sm:$0x11]  }
 0x133   : > { %9355 = vmatprep.mubr.bf16.mxu0 %v712_v61  ;;  %v2749_v38 = vshll.u32 %v11356_v49, 16  ;;  %v2735_v61 = vor.u32 %v2734_v17, %v2730_v43  ;;  %v10007_v43 = vld [vmem:[%s13464_s1 + $0x230] sm:$0xff]  }
 0x134   : > { %3201 = vmatmul.mubr.bf16.gmra.mrb[108].mxu1 %v11266_v62 }
 0x135   : > { %3208 = vmatprep.mubr.bf16.mxu1 %v2716_v16  ;;  %v2751_v24 = vrot.slane %v2749_v38, 1  ;;  %v2740_v12 = vsel %vm474_vm1, %v2735_v61, %v2739_v32  ;;  %v2756_v16 = vshll.u32 %v11378_v48, 16  ;;  %v11423_v32 = vld [vmem:[%s10513_s27 + $0xa8] sm:$0xff]   ;;  %v733_v61 = vsel %vm709_vm0, %v731_v60, %v732_v27 }
 0x136   : > { %v11347_v57 = vpop.f32.mrb[4].mxu1  ;;  %v740_v27 = vrot.slane %v10209_v53, 1 }
 0x137   : > { %v11349_v59 = vpop.f32.mrb[5].mxu1 }
 0x138   : > { %v11362_v8 = vpop.f32.mrb[6].mxu1 }
 0x139   : > { %v11365_v23 = vpop.f32.mrb[7].mxu1 }
 0x13a   : > { %9356 = vmatmul.mubr.bf16.vlgmr.msra.gmra.mrb[96].mxu0 %v715_v14  ;;  %v2747_v14 = vor.u32 %v2746_v2, %v2742_v47 }
 0x13b   : > { %9392 = vmatpush3.bf16.msra.mxu0 %v11282_v34  ;;  %9359 = vmatprep.mubr.bf16.mxu0 %v718_v18  ;;  %v729_v34 = vrot.slane %v10202_v22, 1  ;;  %v2754_v22 = vshrl.u32 %v11378_v48, 16 }
 0x13c   : > { %9393 = vmatprep.subr.bf16.mxu0 %v9992_v50  ;;  %3209 = vmatmul.mubr.bf16.gmra.mrb[112].mxu1 %v11288_v36  ;;  %v2752_v17 = vsel %vm474_vm1, %v2747_v14, %v2751_v24  ;;  %v10207_v14 = vld [vmem:[%s10513_s27 + $0x6c] sm:$0xff]  }
 0x13d   : > { %3216 = vmatprep.mubr.bf16.mxu1 %v2728_v35  ;;  %v730_v41 = vsel %vm709_vm0, %v728_v33, %v729_v34  ;;  %v2758_v34 = vrot.slane %v2756_v16, 1  ;;  %v11438_v16 = vld [vmem:[%s10513_s27 + $0xb0] ss:$0 sps:$4 sm:$0x11]   ;;  %v737_v20 = vrot.slane %v10207_v14, 1 }
 0x13e   : > { %v11381_v26 = vpop.f32.mrb[8].mxu1  ;;  %v11466_v14 = vld [vmem:[%s10513_s27 + $0xbc] ss:$0 sps:$4 sm:$0x11]  }
 0x13f   : > { %9394 = vmatpush3.bf16.msra.mxu0 %v9992_v50  ;;  %v11387_v11 = vpop.f32.mrb[9].mxu1  ;;  %v727_v50 = vsel %vm709_vm0, %v725_v39, %v726_v28  ;;  %v10206_v28 = vld [vmem:[%s10513_s27 + $0x68] ss:$0 sps:$4 sm:$0x11]   ;;  %v2759_v24 = vor.u32 %v2758_v34, %v2754_v22  ;;  %v2766_v22 = vshrl.u32 %v11423_v32, 16 }
 0x140   : > { %9395 = vmatprep.subr.bf16.mxu0 %v9995_v25  ;;  %v11389_v63 = vpop.f32.mrb[10].mxu1  ;;  %v735_v52 = vrot.slane %v10206_v28, 1 }
 0x141   : > { %v11391_v3 = vpop.f32.mrb[11].mxu1 }
 0x142   : > { %9360 = vmatmul.mubr.bf16.gmra.mrb[100].mxu0 %v721_v45 }
 0x143   : > { %9363 = vmatprep.mubr.bf16.mxu0 %v724_v56  ;;  %9396 = vmatpush3.bf16.msra.mxu0 %v9995_v25  ;;  %v10205_v25 = vld [vmem:[%s10513_s27 + $0x60] sm:$0xff]  }
 0x144   : > { %9397 = vmatprep.subr.bf16.mxu0 %v9998_v30  ;;  %3217 = vmatmul.mubr.bf16.gmra.mrb[116].mxu1 %v11304_v15  ;;  %v734_v39 = vrot.slane %v10205_v25, 1  ;;  %v10210_v25 = vld [vmem:[%s10513_s27 + $0x80] ss:$0 sps:$4 sm:$0x11]  }
 0x145   : > { %3224 = vmatprep.mubr.bf16.mxu1 %v2740_v12 }
 0x146   : > { %v11404_v42 = vpop.f32.mrb[12].mxu1  ;;  %v736_v47 = vsel %vm709_vm0, %v734_v39, %v735_v52  ;;  %v741_v39 = vrot.slane %v10210_v25, 1 }
 0x147   : > { %9398 = vmatpush3.bf16.msra.mxu0 %v9998_v30  ;;  %v11406_v18 = vpop.f32.mrb[13].mxu1  ;;  %v2761_v30 = vshll.u32 %v11400_v37, 16 }
 0x148   : > { %9399 = vmatprep.subr.bf16.mxu0 %v10001_v7  ;;  %v11412_v35 = vpop.f32.mrb[14].mxu1 }
 0x149   : > { %v11414_v33 = vpop.f32.mrb[15].mxu1  ;;  %v2763_v12 = vrot.slane %v2761_v30, 1  ;;  %v2773_v30 = vshll.u32 %v11438_v16, 16 }
 0x14a   : > { %9364 = vmatmul.mubr.bf16.gmra.mrb[104].mxu0 %v727_v50  ;;  %v2768_v50 = vshll.u32 %v11423_v32, 16 }
 0x14b   : > { %9367 = vmatprep.mubr.bf16.mxu0 %v730_v41  ;;  %9400 = vmatpush3.bf16.msra.mxu0 %v10001_v7  ;;  %v10012_v7 = vld [vmem:[%s13464_s1 + $0x238] sm:$0xff]  }
 0x14c   : > { %9401 = vmatprep.subr.bf16.mxu0 %v10004_v40  ;;  %3225 = vmatmul.mubr.bf16.gmra.mrb[120].mxu1 %v11331_v51  ;;  %v2770_v34 = vrot.slane %v2768_v50, 1  ;;  %v2775_v50 = vrot.slane %v2773_v30, 1 }
 0x14d   : > { %v1583_v44 = vpop.f32.mrb[0].mxu0  ;;  %3232 = vmatprep.mubr.bf16.mxu1 %v2752_v17  ;;  %v2764_v17 = vsel %vm474_vm1, %v2759_v24, %v2763_v12 }
 0x14e   : > { %v11426_v45 = vadd.f32 %v11321_v19, %v1583_v44  ;;  %v1585_v38 = vpop.f32.mrb[1].mxu0  ;;  %v11457_v44 = vld [vmem:[%s10513_s27 + $0xb4] sm:$0xff]   ;;  %v2771_v12 = vor.u32 %v2770_v34, %v2766_v22 }
 0x14f   : > { %v1586_v56 = vpop.f32.mrb[2].mxu0  ;;  %9402 = vmatpush3.bf16.msra.mxu0 %v10004_v40  ;;  %v11441_v40 = vpop.f32.mrb[16].mxu1  ;;  %v10214_v22 = vld [vmem:[%s10513_s27 + $0x98] ss:$0 sps:$4 sm:$0x11]  }
 0x150   : > { %13484 = vst [vmem:[#allocation9_spill] sm:$0xff] %v11426_v45  ;;  %v11435_v19 = vadd.f32 %v11326_v58, %v1586_v56  ;;  %v1588_v2 = vpop.f32.mrb[3].mxu0  ;;  %9403 = vmatprep.subr.bf16.mxu0 %v10007_v43  ;;  %v11443_v41 = vpop.f32.mrb[17].mxu1  ;;  %v10208_v58 = vld [vmem:[%s10513_s27 + $0x74] ss:$0 sps:$4 sm:$0x11]  }
 0x151   : > { %v738_v60 = vrot.slane %v10208_v58, 1  ;;  %v11449_v28 = vpop.f32.mrb[18].mxu1  ;;  %v742_v2 = vsel %vm709_vm0, %v740_v27, %v741_v39  ;;  %v2780_v58 = vshll.u32 %v11457_v44, 16  ;;  %v10212_v27 = vld [vmem:[%s10513_s27 + $0x8c] ss:$0 sps:$4 sm:$0x11]  }
 0x152   : > { %13485 = vst [vmem:[#allocation10_spill] sm:$0xff] %v11435_v19  ;;  %9368 = vmatmul.mubr.bf16.gmra.mrb[108].mxu0 %v733_v61  ;;  %v11451_v52 = vpop.f32.mrb[19].mxu1  ;;  %v744_v25 = vrot.slane %v10212_v27, 1  ;;  %v10213_v39 = vld [vmem:[%s10513_s27 + $0x90] sm:$0xff]   ;;  %v747_v34 = vrot.slane %v10214_v22, 1 }
 0x153   : > { %9371 = vmatprep.mubr.bf16.mxu0 %v736_v47  ;;  %9404 = vmatpush3.bf16.msra.mxu0 %v10007_v43  ;;  %v739_v47 = vsel %vm709_vm0, %v737_v20, %v738_v60 }
 0x154   : > { %9405 = vmatprep.subr.bf16.mxu0 %v10012_v7  ;;  %3233 = vmatmul.mubr.bf16.gmra.mrb[124].mxu1 %v11353_v5 }
 0x155   : > { %v1591_v38 = vpop.f32.mrb[4].mxu0  ;;  %3240 = vmatprep.mubr.bf16.mxu1 %v2764_v17  ;;  %v746_v17 = vrot.slane %v10213_v39, 1 }
 0x156   : > { %v1593_v56 = vpop.f32.mrb[5].mxu0  ;;  %v11461_v61 = vadd.f32 %v11314_v46, %v1591_v38 }
 0x157   : > { %v1594_v43 = vpop.f32.mrb[6].mxu0  ;;  %9406 = vmatpush3.bf16.msra.mxu0 %v10012_v7  ;;  %v11472_v53 = vpop.f32.mrb[20].mxu1  ;;  %v10211_v7 = vld [vmem:[%s10513_s27 + $0x84] sm:$0xff]   ;;  %v2778_v56 = vshrl.u32 %v11457_v44, 16 }
 0x158   : > { %13486 = vst [vmem:[#allocation11_spill] sm:$0xff] %v11461_v61  ;;  %v1596_v24 = vpop.f32.mrb[7].mxu0  ;;  %v11470_v46 = vadd.f32 %v11323_v6, %v1594_v43  ;;  %v11474_v20 = vpop.f32.mrb[21].mxu1  ;;  %v743_v60 = vrot.slane %v10211_v7, 1  ;;  %v2776_v6 = vsel %vm474_vm1, %v2771_v12, %v2775_v50  ;;  %v2782_v43 = vrot.slane %v2780_v58, 1  ;;  %v11519_v61 = vld [vmem:[%s10513_s27 + $0xcc] sm:$0xff]  }
 0x159   : > { %v11480_v30 = vpop.f32.mrb[22].mxu1  ;;  %v748_v50 = vsel %vm709_vm0, %v746_v17, %v747_v34  ;;  %v10216_v17 = vld [vmem:[%s10513_s27 + $0xa4] ss:$0 sps:$4 sm:$0x11]   ;;  %v10217_v34 = vld [vmem:[%s10513_s27 + $0xa8] sm:$0xff]  }
 0x15a   : > { %13487 = vst [vmem:[#allocation12_spill] sm:$0xff] %v11470_v46  ;;  %9372 = vmatmul.mubr.bf16.gmra.mrb[112].mxu0 %v739_v47  ;;  %v11482_v38 = vpop.f32.mrb[23].mxu1  ;;  %v2785_v47 = vshll.u32 %v11466_v14, 16  ;;  %v745_v12 = vsel %vm709_vm0, %v743_v60, %v744_v25  ;;  %v2783_v0 = vor.u32 %v2782_v43, %v2778_v56  ;;  %v10215_v60 = vld [vmem:[%s10513_s27 + $0x9c] sm:$0xff]  }
 0x15b   : > { %9375 = vmatprep.mubr.bf16.mxu0 %v742_v2  ;;  %v11488_v2 = vld [vmem:[%s10513_s27 + $0xc0] sm:$0xff]   ;;  %v749_v25 = vrot.slane %v10215_v60, 1 }
 0x15c   : > { %3241 = vmatmul.mubr.bf16.gmra.mrb[128].mxu1 %v11378_v48 }
 0x15d   : > { %v1599_v24 = vpop.f32.mrb[8].mxu0  ;;  %3248 = vmatprep.mubr.bf16.mxu1 %v2776_v6  ;;  %v752_v6 = vrot.slane %v10217_v34, 1 }
 0x15e   : > { %v11491_v7 = vadd.f32 %v11349_v59, %v1599_v24  ;;  %v1601_v27 = vpop.f32.mrb[9].mxu0  ;;  %v2787_v59 = vrot.slane %v2785_v47, 1  ;;  %v11500_v24 = vld [vmem:[%s10513_s27 + $0xc8] ss:$0 sps:$4 sm:$0x11]  }
 0x15f   : > { %v1602_v39 = vpop.f32.mrb[10].mxu0  ;;  %v2792_v27 = vshll.u32 %v11488_v2, 16 }
 0x160   : > { %13488 = vst [vmem:[#allocation13_spill] sm:$0xff] %v11491_v7  ;;  %v11497_v58 = vadd.f32 %v11365_v23, %v1602_v39  ;;  %v1604_v22 = vpop.f32.mrb[11].mxu0  ;;  %v11503_v7 = vpop.f32.mrb[24].mxu1  ;;  %v750_v23 = vrot.slane %v10216_v17, 1 }
 0x161   : > { %13490 = vst [vmem:[#allocation15_spill] sm:$0xff] %v11503_v7  ;;  %v11505_v46 = vpop.f32.mrb[25].mxu1  ;;  %v10218_v39 = vld [vmem:[%s10513_s27 + $0xb0] ss:$0 sps:$4 sm:$0x11]   ;;  %v2788_v22 = vsel %vm474_vm1, %v2783_v0, %v2787_v59 }
 0x162   : > { %13489 = vst [vmem:[#allocation14_spill] sm:$0xff] %v11497_v58  ;;  %9376 = vmatmul.mubr.bf16.gmra.mrb[116].mxu0 %v745_v12  ;;  %v753_v56 = vrot.slane %v10218_v39, 1  ;;  %v11511_v43 = vpop.f32.mrb[26].mxu1  ;;  %v2790_v12 = vshrl.u32 %v11488_v2, 16  ;;  %v2794_v58 = vrot.slane %v2792_v27, 1  ;;  %v751_v0 = vsel %vm709_vm0, %v749_v25, %v750_v23  ;;  %v10219_v25 = vld [vmem:[%s10513_s27 + $0xb4] sm:$0xff]  }
 0x163   : > { %9379 = vmatprep.mubr.bf16.mxu0 %v748_v50  ;;  %13491 = vst [vmem:[#allocation16_spill] sm:$0xff] %v11511_v43  ;;  %v11513_v47 = vpop.f32.mrb[27].mxu1  ;;  %v2797_v50 = vshll.u32 %v11500_v24, 16  ;;  %v11528_v43 = vld [vmem:[%s10513_s27 + $0xd4] ss:$0 sps:$4 sm:$0x11]  }
 0x164   : > { %3249 = vmatmul.mubr.bf16.gmra.mrb[132].mxu1 %v11423_v32  ;;  %v754_v59 = vsel %vm709_vm0, %v752_v6, %v753_v56  ;;  %v2795_v19 = vor.u32 %v2794_v58, %v2790_v12  ;;  %v755_v23 = vrot.slane %v10219_v25, 1  ;;  %v10220_v6 = vld [vmem:[%s10513_s27 + $0xbc] ss:$0 sps:$4 sm:$0x11]  }
 0x165   : > { %v1607_v60 = vpop.f32.mrb[12].mxu0  ;;  %3256 = vmatprep.mubr.bf16.mxu1 %v2788_v22  ;;  %v2799_v45 = vrot.slane %v2797_v50, 1  ;;  %v756_v58 = vrot.slane %v10220_v6, 1  ;;  %v10221_v22 = vld [vmem:[%s10513_s27 + $0xc0] sm:$0xff]  }
 0x166   : > { %v1609_v17 = vpop.f32.mrb[13].mxu0  ;;  %v11523_v34 = vadd.f32 %v11347_v57, %v1607_v60  ;;  %v758_v12 = vrot.slane %v10221_v22, 1  ;;  %v10222_v50 = vld [vmem:[%s10513_s27 + $0xc8] ss:$0 sps:$4 sm:$0x11]  }
 0x167   : > { %v1610_v39 = vpop.f32.mrb[14].mxu0  ;;  %v2804_v17 = vshll.u32 %v11519_v61, 16  ;;  %v11534_v57 = vpop.f32.mrb[28].mxu1 }
 0x168   : > { %13492 = vst [vmem:[#allocation17_spill] sm:$0xff] %v11523_v34  ;;  %v1612_v27 = vpop.f32.mrb[15].mxu0  ;;  %v11532_v7 = vadd.f32 %v11362_v8, %v1610_v39  ;;  %13494 = vst [vmem:[#allocation19_spill] sm:$0xff] %v11534_v57  ;;  %v11536_v60 = vpop.f32.mrb[29].mxu1  ;;  %v2800_v39 = vsel %vm474_vm1, %v2795_v19, %v2799_v45  ;;  %v11550_v34 = vld [vmem:[%s10513_s27 + $0xd8] sm:$0xff]  }
 0x169   : > { %13495 = vst [vmem:[#allocation20_spill] sm:$0xff] %v11536_v60  ;;  %v11540_v56 = vpop.f32.mrb[30].mxu1  ;;  %v759_v27 = vrot.slane %v10222_v50, 1  ;;  %v11559_v19 = vld [vmem:[%s10513_s27 + $0xe0] ss:$0 sps:$4 sm:$0x11]  }
 0x16a   : > { %13493 = vst [vmem:[#allocation18_spill] sm:$0xff] %v11532_v7  ;;  %9380 = vmatmul.mubr.bf16.gmra.mrb[120].mxu0 %v751_v0  ;;  %13496 = vst [vmem:[#allocation21_spill] sm:$0xff] %v11540_v56  ;;  %v11544_v8 = vpop.f32.mrb[31].mxu1  ;;  %v2802_v0 = vshrl.u32 %v11519_v61, 16  ;;  %v2806_v7 = vrot.slane %v2804_v17, 1  ;;  %v757_v56 = vsel %vm709_vm0, %v755_v23, %v756_v58  ;;  %v10223_v23 = vld [vmem:[%s10513_s27 + $0xcc] sm:$0xff]  }
 0x16b   : > { %9383 = vmatprep.mubr.bf16.mxu0 %v754_v59  ;;  %13497 = vst [vmem:[#allocation22_spill] sm:$0xff] %v11544_v8  ;;  %v2809_v59 = vshll.u32 %v11528_v43, 16  ;;  %v760_v45 = vsel %vm709_vm0, %v758_v12, %v759_v27  ;;  %v761_v58 = vrot.slane %v10223_v23, 1  ;;  %v10224_v12 = vld [vmem:[%s10513_s27 + $0xd4] ss:$0 sps:$4 sm:$0x11]  }
 0x16c   : > { %3257 = vmatmul.mubr.bf16.gmra.mrb[136].mxu1 %v11457_v44  ;;  %v2807_v57 = vor.u32 %v2806_v7, %v2802_v0  ;;  %v762_v27 = vrot.slane %v10224_v12, 1  ;;  %v2821_v7 = vshll.u32 %v11559_v19, 16 }
 0x16d   : > { %v1615_v25 = vpop.f32.mrb[16].mxu0  ;;  %3264 = vmatprep.mubr.bf16.mxu1 %v2800_v39  ;;  %v2811_v8 = vrot.slane %v2809_v59, 1  ;;  %v2814_v59 = vshrl.u32 %v11550_v34, 16 }
 0x16e   : > { %v1617_v6 = vpop.f32.mrb[17].mxu0  ;;  %v11554_v22 = vadd.f32 %v11387_v11, %v1615_v25 }
 0x16f   : > { %v1618_v50 = vpop.f32.mrb[18].mxu0  ;;  %v2816_v6 = vshll.u32 %v11550_v34, 16  ;;  %v11565_v11 = vpop.f32.mrb[32].mxu1 }
 0x170   : > { %13498 = vst [vmem:[#allocation23_spill] sm:$0xff] %v11554_v22  ;;  %v1620_v17 = vpop.f32.mrb[19].mxu0  ;;  %v11563_v60 = vadd.f32 %v11391_v3, %v1618_v50  ;;  %13500 = vst [vmem:[#allocation25_spill] sm:$0xff] %v11565_v11  ;;  %v11567_v25 = vpop.f32.mrb[33].mxu1  ;;  %v2812_v3 = vsel %vm474_vm1, %v2807_v57, %v2811_v8  ;;  %v2823_v22 = vrot.slane %v2821_v7, 1 }
 0x171   : > { %13501 = vst [vmem:[#allocation26_spill] sm:$0xff] %v11567_v25  ;;  %v11571_v39 = vpop.f32.mrb[34].mxu1  ;;  %v2818_v50 = vrot.slane %v2816_v6, 1  ;;  %v11587_v57 = vld [vmem:[%s10513_s27 + $0xec] ss:$0 sps:$4 sm:$0x11]  }
 0x172   : > { %13499 = vst [vmem:[#allocation24_spill] sm:$0xff] %v11563_v60  ;;  %9384 = vmatmul.mubr.bf16.gmra.mrb[124].mxu0 %v757_v56  ;;  %13502 = vst [vmem:[#allocation27_spill] sm:$0xff] %v11571_v39  ;;  %v11574_v0 = vpop.f32.mrb[35].mxu1  ;;  %v11579_v56 = vld [vmem:[%s10513_s27 + $0xe4] sm:$0xff]   ;;  %v763_v60 = vsel %vm709_vm0, %v761_v58, %v762_v27  ;;  %v10031_v6 = vld [vmem:[#allocation3 + $0x140] sm:$0xff]  }
 0x173   : > { %9387 = vmatprep.mubr.bf16.mxu0 %v760_v45  ;;  %13503 = vst [vmem:[#allocation28_spill] sm:$0xff] %v11574_v0  ;;  %v2819_v11 = vor.u32 %v2818_v50, %v2814_v59  ;;  %v2828_v8 = vshll.u32 %v11579_v56, 16  ;;  %9443 = vmatprep.subr.bf16.mxu1 %v10031_v6 }
 0x174   : > { %3265 = vmatmul.mubr.bf16.gmra.mrb[140].mxu1 %v11488_v2 }
 0x175   : > { %v1623_v17 = vpop.f32.mrb[20].mxu0  ;;  %3272 = vmatprep.mubr.bf16.mxu1 %v2812_v3  ;;  %9444 = vmatpush3.bf16.msra.mxu1 %v10031_v6  ;;  %v2824_v27 = vsel %vm474_vm1, %v2819_v11, %v2823_v22  ;;  %v2830_v7 = vrot.slane %v2828_v8, 1  ;;  %v2833_v3 = vshll.u32 %v11587_v57, 16 }
 0x176   : > { %v1625_v45 = vpop.f32.mrb[21].mxu0  ;;  %v11583_v23 = vadd.f32 %v11381_v26, %v1623_v17 }
 0x177   : > { %v1626_v12 = vpop.f32.mrb[22].mxu0  ;;  %v2129_v45 = vpop.f32.mrb[36].mxu1  ;;  %v2835_v17 = vrot.slane %v2833_v3, 1 }
 0x178   : > { %v1628_v39 = vpop.f32.mrb[23].mxu0  ;;  %v11591_v0 = vadd.f32 %v11389_v63, %v1626_v12  ;;  %v2131_v25 = vpop.f32.mrb[37].mxu1 }
 0x179   : > { %v2132_v26 = vpop.f32.mrb[38].mxu1  ;;  %v2826_v39 = vshrl.u32 %v11579_v56, 16 }
 0x17a   : > { %9388 = vmatmul.mubr.bf16.gmra.mrb[128].mxu0 %v763_v60  ;;  %v2134_v58 = vpop.f32.mrb[39].mxu1 }
 0x17b   : > { %9407 = vmatprep.mubr.bf16.mxu0 %v11170_v10  ;;  %v2831_v11 = vor.u32 %v2830_v7, %v2826_v39 }
 0x17c   : > { %3273 = vmatmul.mubr.bf16.gmra.mrb[144].mxu1 %v11519_v61 }
 0x17d   : > { %v1631_v59 = vpop.f32.mrb[24].mxu0  ;;  %3280 = vmatprep.mubr.bf16.mxu1 %v2824_v27  ;;  %v10226_v27 = vld [vmem:[%s10513_s27 + $0x50] ss:$0 sps:$4 sm:$0x11]  }
 0x17e   : > { %v1633_v50 = vpop.f32.mrb[25].mxu0  ;;  %v1809_v63 = vadd.f32 %v11406_v18, %v1631_v59  ;;  %v10225_v59 = vld [vmem:[%s10513_s27 + $0x48] sm:$0xff]  }
 0x17f   : > { %v1634_v60 = vpop.f32.mrb[26].mxu0  ;;  %v2137_v12 = vpop.f32.mrb[40].mxu1  ;;  %v2867_v50 = vrot.slane %v10225_v59, 1  ;;  %v2874_v59 = vrot.slane %v11271_v13, 1 }
 0x180   : > { %v11599_v10 = vadd.f32 %v2129_v45, %v1809_v63  ;;  %v1636_v25 = vpop.f32.mrb[27].mxu0  ;;  %v1812_v22 = vadd.f32 %v11414_v33, %v1634_v60  ;;  %v2139_v6 = vpop.f32.mrb[41].mxu1  ;;  %v2868_v45 = vrot.slane %v10226_v27, 1  ;;  %v2836_v63 = vsel %vm474_vm1, %v2831_v11, %v2835_v17  ;;  %v10032_v60 = vld [vmem:[#allocation3 + $0x148] sm:$0xff]  }
 0x181   : > { %v2140_v18 = vpop.f32.mrb[42].mxu1  ;;  %9445 = vmatprep.subr.bf16.mxu1 %v10032_v60  ;;  %v2870_v17 = vrot.slane %v11238_v55, 1 }
 0x182   : > { %v11602_v8 = vadd.f32 %v2132_v26, %v1812_v22  ;;  %9408 = vmatmul.mubr.bf16.vlgmr.msra.gmra.mrb[132].mxu0 %v11173_v54  ;;  %v2142_v58 = vpop.f32.mrb[43].mxu1  ;;  %v2869_v3 = vsel %vm709_vm0, %v2867_v50, %v2868_v45  ;;  %9446 = vmatpush3.bf16.msra.mxu1 %v10032_v60 }
 0x183   : > { %9411 = vmatprep.mubr.bf16.mxu0 %v11198_v29 }
 0x184   : > { %3281 = vmatmul.mubr.bf16.gmra.mrb[148].mxu1 %v11550_v34 }
 0x185   : > { %v1639_v25 = vpop.f32.mrb[28].mxu0  ;;  %3288 = vmatprep.mubr.bf16.mxu1 %v2836_v63 }
 0x186   : > { %v1641_v33 = vpop.f32.mrb[29].mxu0  ;;  %v1817_v39 = vadd.f32 %v11404_v42, %v1639_v25 }
 0x187   : > { %v1642_v26 = vpop.f32.mrb[30].mxu0  ;;  %v2145_v22 = vpop.f32.mrb[44].mxu1 }
 0x188   : > { %v11611_v54 = vadd.f32 %v2137_v12, %v1817_v39  ;;  %v1644_v7 = vpop.f32.mrb[31].mxu0  ;;  %v1820_v29 = vadd.f32 %v11412_v35, %v1642_v26  ;;  %v2147_v11 = vpop.f32.mrb[45].mxu1  ;;  %v2871_v12 = vrot.slane %v11248_v21, 1  ;;  %v2873_v35 = vrot.slane %v11266_v62, 1 }
 0x189   : > { %v2148_v42 = vpop.f32.mrb[46].mxu1  ;;  %v2877_v26 = vrot.slane %v11292_v4, 1 }
 0x18a   : > { %v11615_v6 = vadd.f32 %v2140_v18, %v1820_v29  ;;  %9412 = vmatmul.mubr.bf16.gmra.mrb[136].mxu0 %v11201_v1  ;;  %v2150_v58 = vpop.f32.mrb[47].mxu1  ;;  %v2872_v45 = vsel %vm709_vm0, %v2870_v17, %v2871_v12  ;;  %v2875_v25 = vsel %vm709_vm0, %v2873_v35, %v2874_v59  ;;  %v2879_v29 = vrot.slane %v11304_v15, 1  ;;  %v10033_v35 = vld [vmem:[#allocation3 + $0x150] sm:$0xff]  }
 0x18b   : > { %9415 = vmatprep.mubr.bf16.mxu0 %v2869_v3  ;;  %v2880_v3 = vrot.slane %v11308_v31, 1  ;;  %9447 = vmatprep.subr.bf16.mxu1 %v10033_v35 }
 0x18c   : > { %3289 = vmatmul.mubr.bf16.gmra.mrb[152].mxu1 %v11579_v56 }
 0x18d   : > { %v1647_v50 = vpop.f32.mrb[32].mxu0  ;;  %9448 = vmatpush3.bf16.msra.mxu1 %v10033_v35 }
 0x18e   : > { %v1649_v27 = vpop.f32.mrb[33].mxu0  ;;  %v1825_v18 = vadd.f32 %v11443_v41, %v1647_v50  ;;  %v2876_v41 = vrot.slane %v11288_v36, 1  ;;  %v2881_v36 = vsel %vm709_vm0, %v2879_v29, %v2880_v3  ;;  %v2883_v50 = vrot.slane %v11339_v9, 1 }
 0x18f   : > { %v1650_v1 = vpop.f32.mrb[34].mxu0  ;;  %v2153_v33 = vpop.f32.mrb[48].mxu1  ;;  %v2891_v29 = vrot.slane %v11423_v32, 1 }
 0x190   : > { %v11625_v63 = vadd.f32 %v2145_v22, %v1825_v18  ;;  %v1652_v55 = vpop.f32.mrb[35].mxu0  ;;  %v1828_v21 = vadd.f32 %v11451_v52, %v1650_v1  ;;  %v2155_v13 = vpop.f32.mrb[49].mxu1  ;;  %v2885_v18 = vrot.slane %v11353_v5, 1 }
 0x191   : > { %v2156_v39 = vpop.f32.mrb[50].mxu1 }
 0x192   : > { %v11629_v62 = vadd.f32 %v2148_v42, %v1828_v21  ;;  %9416 = vmatmul.mubr.bf16.gmra.mrb[140].mxu0 %v2872_v45  ;;  %v2158_v7 = vpop.f32.mrb[51].mxu1  ;;  %v2878_v42 = vsel %vm709_vm0, %v2876_v41, %v2877_v26  ;;  %v2889_v26 = vrot.slane %v11400_v37, 1 }
 0x193   : > { %9419 = vmatprep.mubr.bf16.mxu0 %v2875_v25 }
 0x195   : > { %v1655_v60 = vpop.f32.mrb[36].mxu0 }
 0x196   : > { %v1657_v52 = vpop.f32.mrb[37].mxu0  ;;  %v1833_v22 = vadd.f32 %v11441_v40, %v1655_v60  ;;  %v2882_v40 = vrot.slane %v11331_v51, 1 }
 0x197   : > { %v1658_v11 = vpop.f32.mrb[38].mxu0  ;;  %v2161_v4 = vpop.f32.mrb[52].mxu1 }
 0x198   : > { %v11637_v17 = vadd.f32 %v2153_v33, %v1833_v22  ;;  %v1660_v12 = vpop.f32.mrb[39].mxu0  ;;  %v1836_v58 = vadd.f32 %v11449_v28, %v1658_v11  ;;  %v2163_v15 = vpop.f32.mrb[53].mxu1  ;;  %v2886_v28 = vrot.slane %v11356_v49, 1  ;;  %v2884_v25 = vsel %vm709_vm0, %v2882_v40, %v2883_v50 }
 0x199   : > { %v2164_v31 = vpop.f32.mrb[54].mxu1  ;;  %v2897_v15 = vrot.slane %v11488_v2, 1 }
 0x19a   : > { %v11641_v59 = vadd.f32 %v2156_v39, %v1836_v58  ;;  %9420 = vmatmul.mubr.bf16.gmra.mrb[144].mxu0 %v2878_v42  ;;  %v2166_v27 = vpop.f32.mrb[55].mxu1  ;;  %v2887_v9 = vsel %vm709_vm0, %v2885_v18, %v2886_v28  ;;  %v10034_v28 = vld [vmem:[#allocation3 + $0x158] sm:$0xff]  }
 0x19b   : > { %9423 = vmatprep.mubr.bf16.mxu0 %v2881_v36  ;;  %9449 = vmatprep.subr.bf16.mxu1 %v10034_v28 }
 0x19c   : > { %9450 = vmatpush3.bf16.msra.mxu1 %v10034_v28 }
 0x19d   : > { %v1663_v1 = vpop.f32.mrb[40].mxu0 }
 0x19e   : > { %v1841_v45 = vadd.f32 %v11474_v20, %v1663_v1  ;;  %v1665_v55 = vpop.f32.mrb[41].mxu0  ;;  %v2888_v20 = vrot.slane %v11378_v48, 1 }
 0x19f   : > { %v1666_v21 = vpop.f32.mrb[42].mxu0  ;;  %v2169_v39 = vpop.f32.mrb[56].mxu1 }
 0x1a0   : > { %v1844_v33 = vadd.f32 %v11482_v38, %v1666_v21  ;;  %v11650_v13 = vadd.f32 %v2161_v4, %v1841_v45  ;;  %v1668_v51 = vpop.f32.mrb[43].mxu0  ;;  %v2171_v5 = vpop.f32.mrb[57].mxu1  ;;  %v2892_v38 = vrot.slane %v11438_v16, 1  ;;  %v2890_v11 = vsel %vm709_vm0, %v2888_v20, %v2889_v26 }
 0x1a1   : > { %v2172_v49 = vpop.f32.mrb[58].mxu1  ;;  %v2895_v4 = vrot.slane %v11466_v14, 1  ;;  %v2900_v21 = vrot.slane %v11519_v61, 1  ;;  %v2904_v51 = vrot.slane %v11559_v19, 1 }
 0x1a2   : > { %v11653_v41 = vadd.f32 %v2164_v31, %v1844_v33  ;;  %9424 = vmatmul.mubr.bf16.gmra.mrb[148].mxu0 %v2884_v25  ;;  %v2174_v7 = vpop.f32.mrb[59].mxu1  ;;  %v2893_v48 = vsel %vm709_vm0, %v2891_v29, %v2892_v38  ;;  %v2901_v25 = vrot.slane %v11528_v43, 1 }
 0x1a3   : > { %9427 = vmatprep.mubr.bf16.mxu0 %v2887_v9  ;;  %v13505_v7 = vld [vmem:[#allocation16_spill] sm:$0xff] }
 0x1a4   : > { %v2902_v26 = vsel %vm709_vm0, %v2900_v21, %v2901_v25 }
 0x1a5   : > { %v1671_v3 = vpop.f32.mrb[44].mxu0 }
 0x1a6   : > { %v1849_v60 = vadd.f32 %v11472_v53, %v1671_v3  ;;  %v1673_v52 = vpop.f32.mrb[45].mxu0  ;;  %v2894_v53 = vrot.slane %v11457_v44, 1 }
 0x1a7   : > { %v1674_v22 = vpop.f32.mrb[46].mxu0  ;;  %v2177_v37 = vpop.f32.mrb[60].mxu1  ;;  %v2906_v52 = vrot.slane %v11579_v56, 1 }
 0x1a8   : > { %v1852_v42 = vadd.f32 %v11480_v30, %v1674_v22  ;;  %v11662_v12 = vadd.f32 %v2169_v39, %v1849_v60  ;;  %v1676_v58 = vpop.f32.mrb[47].mxu0  ;;  %v2179_v32 = vpop.f32.mrb[61].mxu1  ;;  %v2898_v30 = vrot.slane %v11500_v24, 1  ;;  %v2896_v18 = vsel %vm709_vm0, %v2894_v53, %v2895_v4  ;;  %v13504_v39 = vld [vmem:[#allocation15_spill] sm:$0xff]  ;;  %v13507_v53 = vld [vmem:[#allocation22_spill] sm:$0xff] }
 0x1a9   : > { %v2180_v16 = vpop.f32.mrb[62].mxu1  ;;  %v2907_v22 = vrot.slane %v11587_v57, 1  ;;  %v13506_v58 = vld [vmem:[#allocation20_spill] sm:$0xff] }
 0x1aa   : > { %v11665_v36 = vadd.f32 %v2172_v49, %v1852_v42  ;;  %9428 = vmatmul.mubr.bf16.gmra.mrb[152].mxu0 %v2890_v11  ;;  %v2182_v35 = vpop.f32.mrb[63].mxu1  ;;  %v2899_v14 = vsel %vm709_vm0, %v2897_v15, %v2898_v30 }
 0x1ab   : > { %9431 = vmatprep.mubr.bf16.mxu0 %v2893_v48 }
 0x1ad   : > { %v1679_v31 = vpop.f32.mrb[48].mxu0 }
 0x1ae   : > { %v1857_v40 = vadd.f32 %v11505_v46, %v1679_v31  ;;  %v1681_v50 = vpop.f32.mrb[49].mxu0  ;;  %v10035_v31 = vld [vmem:[#allocation3 + $0x160] sm:$0xff]  }
 0x1af   : > { %v1682_v27 = vpop.f32.mrb[50].mxu0  ;;  %v2185_v55 = vpop.f32.mrb[64].mxu1  ;;  %9451 = vmatprep.subr.bf16.mxu1 %v10035_v31 }
 0x1b0   : > { %v1860_v1 = vadd.f32 %v11513_v47, %v1682_v27  ;;  %v11674_v45 = vadd.f32 %v2177_v37, %v1857_v40  ;;  %v1684_v44 = vpop.f32.mrb[51].mxu0  ;;  %v2187_v24 = vpop.f32.mrb[65].mxu1  ;;  %v2903_v47 = vrot.slane %v11550_v34, 1  ;;  %9452 = vmatpush3.bf16.msra.mxu1 %v10035_v31 }
 0x1b1   : > { %v2188_v46 = vpop.f32.mrb[66].mxu1 }
 0x1b2   : > { %v11677_v2 = vadd.f32 %v2180_v16, %v1860_v1  ;;  %9432 = vmatmul.mubr.bf16.gmra.mrb[156].mxu0 %v2896_v18  ;;  %v2190_v33 = vpop.f32.mrb[67].mxu1  ;;  %v2905_v61 = vsel %vm709_vm0, %v2903_v47, %v2904_v51  ;;  %v2908_v16 = vsel %vm709_vm0, %v2906_v52, %v2907_v22  ;;  %v13508_v18 = vld [vmem:[#allocation19_spill] sm:$0xff] }
 0x1b3   : > { %9435 = vmatprep.mubr.bf16.mxu0 %v2899_v14  ;;  %v13509_v14 = vld [vmem:[#allocation21_spill] sm:$0xff] }
 0x1b5   : > { %v1687_v9 = vpop.f32.mrb[52].mxu0 }
 0x1b6   : > { %v1865_v5 = vadd.f32 %v13504_v39, %v1687_v9  ;;  %v1689_v49 = vpop.f32.mrb[53].mxu0  ;;  %v13510_v39 = vld [vmem:[#allocation26_spill] sm:$0xff] }
 0x1b7   : > { %v1690_v20 = vpop.f32.mrb[54].mxu0  ;;  %v2193_v43 = vpop.f32.mrb[68].mxu1 }
 0x1b8   : > { %v1868_v29 = vadd.f32 %v13505_v7, %v1690_v20  ;;  %v11686_v38 = vadd.f32 %v2185_v55, %v1865_v5  ;;  %v1692_v3 = vpop.f32.mrb[55].mxu0  ;;  %v2195_v34 = vpop.f32.mrb[69].mxu1 }
 0x1b9   : > { %v2196_v19 = vpop.f32.mrb[70].mxu1 }
 0x1ba   : > { %v11689_v60 = vadd.f32 %v2188_v46, %v1868_v29  ;;  %9436 = vmatmul.mubr.bf16.gmra.mrb[160].mxu0 %v2902_v26  ;;  %v2198_v11 = vpop.f32.mrb[71].mxu1  ;;  %v13511_v26 = vld [vmem:[#allocation28_spill] sm:$0xff] }
 0x1bb   : > { %9439 = vmatprep.mubr.bf16.mxu0 %v2905_v61 }
 0x1bd   : > { %v1695_v42 = vpop.f32.mrb[56].mxu0 }
 0x1be   : > { %v1873_v48 = vadd.f32 %v13506_v58, %v1695_v42  ;;  %v1697_v37 = vpop.f32.mrb[57].mxu0  ;;  %v13512_v42 = vld [vmem:[#allocation25_spill] sm:$0xff] }
 0x1bf   : > { %v1698_v32 = vpop.f32.mrb[58].mxu0  ;;  %v2201_v30 = vpop.f32.mrb[72].mxu1 }
 0x1c0   : > { %v1876_v4 = vadd.f32 %v13507_v53, %v1698_v32  ;;  %v11696_v35 = vadd.f32 %v2193_v43, %v1873_v48  ;;  %v1700_v15 = vpop.f32.mrb[59].mxu0  ;;  %v2203_v56 = vpop.f32.mrb[73].mxu1  ;;  %v10036_v43 = vld [vmem:[#allocation3 + $0x168] sm:$0xff]   ;;  %v13513_v32 = vld [vmem:[#allocation27_spill] sm:$0xff] }
 0x1c1   : > { %v2204_v57 = vpop.f32.mrb[74].mxu1  ;;  %9453 = vmatprep.subr.bf16.mxu1 %v10036_v43 }
 0x1c2   : > { %v11698_v40 = vadd.f32 %v2196_v19, %v1876_v4  ;;  %9440 = vmatmul.mubr.bf16.gmra.mrb[164].mxu0 %v2908_v16  ;;  %v2206_v50 = vpop.f32.mrb[75].mxu1  ;;  %9454 = vmatpush3.bf16.msra.mxu1 %v10036_v43 }
 0x1c5   : > { %v1703_v27 = vpop.f32.mrb[60].mxu0 }
 0x1c6   : > { %v1881_v28 = vadd.f32 %v13508_v18, %v1703_v27  ;;  %v1705_v1 = vpop.f32.mrb[61].mxu0  ;;  %v13514_v27 = vld [vmem:[#allocation9_spill] sm:$0xff] }
 0x1c7   : > { %v1706_v44 = vpop.f32.mrb[62].mxu0  ;;  %v2209_v21 = vpop.f32.mrb[76].mxu1 }
 0x1c8   : > { %v1884_v55 = vadd.f32 %v13509_v14, %v1706_v44  ;;  %v11702_v24 = vadd.f32 %v2201_v30, %v1881_v28  ;;  %v1708_v46 = vpop.f32.mrb[63].mxu0  ;;  %v2211_v33 = vpop.f32.mrb[77].mxu1  ;;  %v13515_v44 = vld [vmem:[#allocation10_spill] sm:$0xff] }
 0x1c9   : > { %v2212_v47 = vpop.f32.mrb[78].mxu1 }
 0x1ca   : > { %v11704_v25 = vadd.f32 %v2204_v57, %v1884_v55  ;;  %v2214_v51 = vpop.f32.mrb[79].mxu1 }
 0x1cd   : > { %v1711_v9 = vpop.f32.mrb[64].mxu0 }
 0x1ce   : > { %v1889_v5 = vadd.f32 %v13510_v39, %v1711_v9  ;;  %v1713_v49 = vpop.f32.mrb[65].mxu0  ;;  %v13516_v9 = vld [vmem:[#allocation11_spill] sm:$0xff] }
 0x1cf   : > { %v1714_v20 = vpop.f32.mrb[66].mxu0  ;;  %v2217_v61 = vpop.f32.mrb[80].mxu1 }
 0x1d0   : > { %v1892_v7 = vadd.f32 %v13511_v26, %v1714_v20  ;;  %v11708_v29 = vadd.f32 %v2209_v21, %v1889_v5  ;;  %v1716_v3 = vpop.f32.mrb[67].mxu0  ;;  %v2219_v19 = vpop.f32.mrb[81].mxu1  ;;  %v13517_v20 = vld [vmem:[#allocation12_spill] sm:$0xff] }
 0x1d1   : > { %v2220_v52 = vpop.f32.mrb[82].mxu1  ;;  %v10038_v19 = vld [vmem:[#allocation3 + $0xc0] sm:$0xff]  }
 0x1d2   : > { %v11710_v34 = vadd.f32 %v2212_v47, %v1892_v7  ;;  %v2222_v22 = vpop.f32.mrb[83].mxu1 }
 0x1d5   : > { %v1719_v11 = vpop.f32.mrb[68].mxu0 }
 0x1d6   : > { %v1897_v58 = vadd.f32 %v13512_v42, %v1719_v11  ;;  %v1721_v48 = vpop.f32.mrb[69].mxu0  ;;  %v10040_v42 = vld [vmem:[#allocation3 + $0x108] sm:$0xff]  }
 0x1d7   : > { %v1722_v37 = vpop.f32.mrb[70].mxu0  ;;  %v11716_v15 = vpop.f32.mrb[84].mxu1 }
 0x1d8   : > { %v1900_v16 = vadd.f32 %v13513_v32, %v1722_v37  ;;  %v11714_v53 = vadd.f32 %v2217_v61, %v1897_v58  ;;  %v1724_v4 = vpop.f32.mrb[71].mxu0  ;;  %v3156_v31 = vpop.f32.mrb[85].mxu1  ;;  %v10037_v61 = vld [vmem:[#allocation3 + $0x100] sm:$0xff]   ;;  %v10041_v32 = vld [vmem:[#allocation3 + $0xc8] sm:$0xff]  }
 0x1d9   : > { %v11720_v56 = vpop.f32.mrb[86].mxu1  ;;  %8879 = vmatprep.subr.bf16.mxu0 %v10037_v61  ;;  %v13518_v58 = vld [vmem:[#allocation13_spill] sm:$0xff]  ;;  %v13519_v4 = vld [vmem:[#allocation14_spill] sm:$0xff] }
 0x1da   : > { %v11718_v30 = vadd.f32 %v2220_v52, %v1900_v16  ;;  %v3159_v57 = vpop.f32.mrb[87].mxu1  ;;  %8880 = vmatpush3.bf16.msra.mxu0 %v10038_v19 }
 0x1db   : > { %8881 = vmatprep.subr.bf16.mxu0 %v10040_v42  ;;  %v10045_v42 = vld [vmem:[#allocation3 + $0xd8] sm:$0xff]  }
 0x1dd   : > { %v2081_v50 = vpop.f32.mrb[72].mxu0 }
 0x1de   : > { %v11723_v18 = vadd.f32 %v2081_v50, %v13514_v27  ;;  %v2083_v28 = vpop.f32.mrb[73].mxu0  ;;  %8882 = vmatpush3.bf16.msra.mxu0 %v10041_v32 }
 0x1df   : > { %v2084_v1 = vpop.f32.mrb[74].mxu0  ;;  %v11728_v46 = vpop.f32.mrb[88].mxu1  ;;  %v10042_v28 = vld [vmem:[#allocation3 + $0x110] sm:$0xff]  }
 0x1e0   : > { %v11726_v14 = vadd.f32 %v2084_v1, %v13515_v44  ;;  %v2086_v55 = vpop.f32.mrb[75].mxu0  ;;  %v3164_v21 = vpop.f32.mrb[89].mxu1  ;;  %v10043_v44 = vld [vmem:[#allocation3 + $0xd0] sm:$0xff]   ;;  %8883 = vmatprep.subr.bf16.mxu0 %v10042_v28 }
 0x1e1   : > { %v11730_v33 = vpop.f32.mrb[90].mxu1 }
 0x1e2   : > { %v3167_v47 = vpop.f32.mrb[91].mxu1  ;;  %8884 = vmatpush3.bf16.msra.mxu0 %v10043_v44 }
 0x1e3   : > { %v13520_v47 = vld [vmem:[#allocation17_spill] sm:$0xff] }
 0x1e5   : > { %v2089_v51 = vpop.f32.mrb[76].mxu0 }
 0x1e6   : > { %v11733_v39 = vadd.f32 %v2089_v51, %v13516_v9  ;;  %v2091_v5 = vpop.f32.mrb[77].mxu0 }
 0x1e7   : > { %v2092_v49 = vpop.f32.mrb[78].mxu0  ;;  %v11738_v3 = vpop.f32.mrb[92].mxu1 }
 0x1e8   : > { %v11736_v26 = vadd.f32 %v2092_v49, %v13517_v20  ;;  %v2094_v7 = vpop.f32.mrb[79].mxu0  ;;  %v3172_v43 = vpop.f32.mrb[93].mxu1  ;;  %v13521_v49 = vld [vmem:[#allocation18_spill] sm:$0xff] }
 0x1e9   : > { %v11740_v52 = vpop.f32.mrb[94].mxu1  ;;  %v10044_v43 = vld [vmem:[#allocation3 + $0x118] sm:$0xff]  }
 0x1ea   : > { %v3175_v22 = vpop.f32.mrb[95].mxu1  ;;  %8885 = vmatprep.subr.bf16.mxu0 %v10044_v43  ;;  %v10039_v43 = vld [vmem:[#allocation3 + $0x170] sm:$0xff]  }
 0x1eb   : > { %8886 = vmatpush3.bf16.msra.mxu0 %v10045_v42  ;;  %9455 = vmatprep.subr.bf16.mxu1 %v10039_v43 }
 0x1ec   : > { %9456 = vmatpush3.bf16.msra.mxu1 %v10039_v43 }
 0x1ed   : > { %v2097_v11 = vpop.f32.mrb[80].mxu0 }
 0x1ee   : > { %v11743_v48 = vadd.f32 %v2097_v11, %v13518_v58  ;;  %v2099_v37 = vpop.f32.mrb[81].mxu0 }
 0x1ef   : > { %v2100_v16 = vpop.f32.mrb[82].mxu0  ;;  %v11748_v50 = vpop.f32.mrb[96].mxu1  ;;  %v13522_v37 = vld [vmem:[#allocation23_spill] sm:$0xff] }
 0x1f0   : > { %v11746_v31 = vadd.f32 %v2100_v16, %v13519_v4  ;;  %v2102_v57 = vpop.f32.mrb[83].mxu0  ;;  %v3180_v27 = vpop.f32.mrb[97].mxu1 }
 0x1f1   : > { %v11750_v1 = vpop.f32.mrb[98].mxu1  ;;  %v10046_v57 = vld [vmem:[#allocation3 + $0x120] sm:$0xff]   ;;  %v13523_v27 = vld [vmem:[#allocation24_spill] sm:$0xff] }
 0x1f2   : > { %v3183_v55 = vpop.f32.mrb[99].mxu1  ;;  %8887 = vmatprep.subr.bf16.mxu0 %v10046_v57 }
 0x1f3   : > { %v10047_v55 = vld [vmem:[#allocation3 + $0xe0] sm:$0xff]  }
 0x1f4   : > { %8888 = vmatpush3.bf16.msra.mxu0 %v10047_v55 }
 0x1f5   : > { %v2105_v21 = vpop.f32.mrb[84].mxu0 }
 0x1f6   : > { %v11753_v51 = vadd.f32 %v2105_v21, %v13520_v47  ;;  %v2107_v9 = vpop.f32.mrb[85].mxu0 }
 0x1f7   : > { %v2108_v5 = vpop.f32.mrb[86].mxu0  ;;  %v11758_v61 = vpop.f32.mrb[100].mxu1 }
 0x1f8   : > { %v11756_v20 = vadd.f32 %v2108_v5, %v13521_v49  ;;  %v2110_v7 = vpop.f32.mrb[87].mxu0  ;;  %v3188_v19 = vpop.f32.mrb[101].mxu1  ;;  %v10048_v5 = vld [vmem:[#allocation3 + $0x128] sm:$0xff]  }
 0x1f9   : > { %v11760_v22 = vpop.f32.mrb[102].mxu1  ;;  %8889 = vmatprep.subr.bf16.mxu0 %v10048_v5  ;;  %v10050_v19 = vld [vmem:[#allocation3 + $0xe8] sm:$0xff]  }
 0x1fa   : > { %v3191_v11 = vpop.f32.mrb[103].mxu1  ;;  %8890 = vmatpush3.bf16.msra.mxu0 %v10050_v19  ;;  %v10052_v19 = vld [vmem:[#allocation3 + $0xf0] sm:$0xff]  }
 0x1fd   : > { %v2113_v58 = vpop.f32.mrb[88].mxu0 }
 0x1fe   : > { %v11763_v32 = vadd.f32 %v2113_v58, %v13522_v37  ;;  %v2115_v16 = vpop.f32.mrb[89].mxu0 }
 0x1ff   : > { %v2116_v4 = vpop.f32.mrb[90].mxu0  ;;  %v11768_v21 = vpop.f32.mrb[104].mxu1 }
 0x200   : > { %v11766_v28 = vadd.f32 %v2116_v4, %v13523_v27  ;;  %v2118_v44 = vpop.f32.mrb[91].mxu0  ;;  %v3196_v47 = vpop.f32.mrb[105].mxu1 }
 0x201   : > { %v11770_v9 = vpop.f32.mrb[106].mxu1 }
 0x202   : > { %v3199_v49 = vpop.f32.mrb[107].mxu1 }
 0x205   : > { %v2121_v7 = vpop.f32.mrb[92].mxu0 }
 0x206   : > { %v2122_v11 = vadd.f32 %v2121_v7, %v11583_v23  ;;  %v2123_v42 = vpop.f32.mrb[93].mxu0  ;;  %v10051_v23 = vld [vmem:[#allocation3 + $0x130] sm:$0xff]  }
 0x207   : > { %v2124_v58 = vpop.f32.mrb[94].mxu0  ;;  %v11774_v4 = vpop.f32.mrb[108].mxu1  ;;  %8891 = vmatprep.subr.bf16.mxu0 %v10051_v23 }
 0x208   : > { %v2125_v37 = vadd.f32 %v2124_v58, %v11591_v0  ;;  %v2126_v16 = vpop.f32.mrb[95].mxu0  ;;  %v3204_v57 = vpop.f32.mrb[109].mxu1  ;;  %8892 = vmatpush3.bf16.msra.mxu0 %v10052_v19 }
 0x209   : > { %v11776_v27 = vpop.f32.mrb[110].mxu1  ;;  %v10049_v16 = vld [vmem:[#allocation3 + $0x178] sm:$0xff]  }
 0x20a   : > { %13524 = vst [vmem:[#allocation15_spill] sm:$0xff] %v11776_v27  ;;  %v3207_v44 = vpop.f32.mrb[111].mxu1  ;;  %v10053_v57 = vld [vmem:[#allocation3 + $0x138] sm:$0xff]   ;;  %9457 = vmatprep.subr.bf16.mxu1 %v10049_v16 }
 0x20b   : > { %9458 = vmatpush3.bf16.msra.mxu1 %v10049_v16  ;;  %8893 = vmatprep.subr.bf16.mxu0 %v10053_v57 }
 0x20d   : > { %v9357_v55 = vpop.f32.mrb[96].mxu0 }
 0x20e   : > { %v11779_v47 = vadd.f32 %v9357_v55, %v11733_v39  ;;  %v2258_v5 = vpop.f32.mrb[97].mxu0 }
 0x20f   : > { %v11782_v49 = vadd.f32 %v2258_v5, %v11723_v18  ;;  %v9358_v7 = vpop.f32.mrb[98].mxu0  ;;  %v11790_v58 = vpop.f32.mrb[112].mxu1  ;;  %v10054_v18 = vld [vmem:[#allocation3 + $0xf8] sm:$0xff]  }
 0x210   : > { %v11785_v0 = vadd.f32 %v9358_v7, %v11736_v26  ;;  %v2261_v43 = vpop.f32.mrb[99].mxu0  ;;  %v3212_v39 = vpop.f32.mrb[113].mxu1  ;;  %8894 = vmatpush3.bf16.msra.mxu0 %v10054_v18 }
 0x211   : > { %v11788_v42 = vadd.f32 %v2261_v43, %v11726_v14  ;;  %v11792_v44 = vpop.f32.mrb[114].mxu1 }
 0x212   : > { %v3215_v55 = vpop.f32.mrb[115].mxu1 }
 0x215   : > { %v9361_v26 = vpop.f32.mrb[100].mxu0 }
 0x216   : > { %v11795_v5 = vadd.f32 %v9361_v26, %v11753_v51  ;;  %v2274_v14 = vpop.f32.mrb[101].mxu0 }
 0x217   : > { %v11798_v23 = vadd.f32 %v2274_v14, %v11743_v48  ;;  %v9362_v7 = vpop.f32.mrb[102].mxu0  ;;  %v11806_v55 = vpop.f32.mrb[116].mxu1 }
 0x218   : > { %v11801_v19 = vadd.f32 %v9362_v7, %v11756_v20  ;;  %v2277_v43 = vpop.f32.mrb[103].mxu0  ;;  %13525 = vst [vmem:[#allocation16_spill] sm:$0xff] %v11806_v55  ;;  %v3220_v16 = vpop.f32.mrb[117].mxu1 }
 0x219   : > { %v11804_v39 = vadd.f32 %v2277_v43, %v11746_v31  ;;  %v11808_v57 = vpop.f32.mrb[118].mxu1 }
 0x21a   : > { %13526 = vst [vmem:[#allocation20_spill] sm:$0xff] %v11808_v57  ;;  %v3223_v18 = vpop.f32.mrb[119].mxu1 }
 0x21d   : > { %v9365_v51 = vpop.f32.mrb[104].mxu0 }
 0x21e   : > { %v11810_v26 = vadd.f32 %v9365_v51, %v2122_v11  ;;  %v2290_v27 = vpop.f32.mrb[105].mxu0 }
 0x21f   : > { %v11813_v48 = vadd.f32 %v2290_v27, %v11763_v32  ;;  %v9366_v14 = vpop.f32.mrb[106].mxu0  ;;  %v11820_v43 = vpop.f32.mrb[120].mxu1 }
 0x220   : > { %v11815_v20 = vadd.f32 %v9366_v14, %v2125_v37  ;;  %v2293_v7 = vpop.f32.mrb[107].mxu0  ;;  %v3228_v16 = vpop.f32.mrb[121].mxu1 }
 0x221   : > { %v11818_v31 = vadd.f32 %v2293_v7, %v11766_v28  ;;  %v11822_v55 = vpop.f32.mrb[122].mxu1 }
 0x222   : > { %13527 = vst [vmem:[#allocation22_spill] sm:$0xff] %v11822_v55  ;;  %v3231_v18 = vpop.f32.mrb[123].mxu1 }
 0x225   : > { %v9369_v57 = vpop.f32.mrb[108].mxu0 }
 0x226   : > { %v11825_v11 = vadd.f32 %v9369_v57, %v11611_v54  ;;  %v2306_v51 = vpop.f32.mrb[109].mxu0 }
 0x227   : > { %v11828_v32 = vadd.f32 %v2306_v51, %v11599_v10  ;;  %v9370_v37 = vpop.f32.mrb[110].mxu0  ;;  %v11836_v7 = vpop.f32.mrb[124].mxu1 }
 0x228   : > { %v11831_v27 = vadd.f32 %v9370_v37, %v11615_v6  ;;  %v2309_v28 = vpop.f32.mrb[111].mxu0  ;;  %13528 = vst [vmem:[#allocation19_spill] sm:$0xff] %v11836_v7  ;;  %v3236_v16 = vpop.f32.mrb[125].mxu1 }
 0x229   : > { %v11834_v14 = vadd.f32 %v2309_v28, %v11602_v8  ;;  %v11838_v18 = vpop.f32.mrb[126].mxu1 }
 0x22a   : > { %13529 = vst [vmem:[#allocation21_spill] sm:$0xff] %v11838_v18  ;;  %v3239_v55 = vpop.f32.mrb[127].mxu1 }
 0x22d   : > { %v9373_v54 = vpop.f32.mrb[112].mxu0 }
 0x22e   : > { %v11841_v57 = vadd.f32 %v9373_v54, %v11637_v17  ;;  %v2322_v10 = vpop.f32.mrb[113].mxu0 }
 0x22f   : > { %v11844_v51 = vadd.f32 %v2322_v10, %v11625_v63  ;;  %v9374_v6 = vpop.f32.mrb[114].mxu0  ;;  %v11852_v16 = vpop.f32.mrb[128].mxu1 }
 0x230   : > { %v11847_v37 = vadd.f32 %v9374_v6, %v11641_v59  ;;  %v2325_v8 = vpop.f32.mrb[115].mxu0  ;;  %13530 = vst [vmem:[#allocation26_spill] sm:$0xff] %v11852_v16  ;;  %v3244_v18 = vpop.f32.mrb[129].mxu1 }
 0x231   : > { %v11850_v28 = vadd.f32 %v2325_v8, %v11629_v62  ;;  %v11854_v55 = vpop.f32.mrb[130].mxu1 }
 0x232   : > { %13531 = vst [vmem:[#allocation28_spill] sm:$0xff] %v11854_v55  ;;  %v3247_v7 = vpop.f32.mrb[131].mxu1 }
 0x235   : > { %v9377_v17 = vpop.f32.mrb[116].mxu0 }
 0x236   : > { %v11857_v54 = vadd.f32 %v9377_v17, %v11662_v12  ;;  %v2338_v63 = vpop.f32.mrb[117].mxu0 }
 0x237   : > { %v11860_v10 = vadd.f32 %v2338_v63, %v11650_v13  ;;  %v9378_v59 = vpop.f32.mrb[118].mxu0  ;;  %v11868_v18 = vpop.f32.mrb[132].mxu1 }
 0x238   : > { %v11863_v6 = vadd.f32 %v9378_v59, %v11665_v36  ;;  %v2341_v62 = vpop.f32.mrb[119].mxu0  ;;  %13532 = vst [vmem:[#allocation25_spill] sm:$0xff] %v11868_v18  ;;  %v3252_v55 = vpop.f32.mrb[133].mxu1 }
 0x239   : > { %v11866_v8 = vadd.f32 %v2341_v62, %v11653_v41  ;;  %v11870_v7 = vpop.f32.mrb[134].mxu1 }
 0x23a   : > { %13533 = vst [vmem:[#allocation27_spill] sm:$0xff] %v11870_v7  ;;  %v3255_v16 = vpop.f32.mrb[135].mxu1 }
 0x23b   : > { %v10059_v16 = vld [vmem:[#allocation3 + $0x40] sm:$0xff]  }
 0x23c   : > { %9015 = vmatprep.subr.bf16.mxu1 %v10059_v16 }
 0x23d   : > { %v9381_v12 = vpop.f32.mrb[120].mxu0 }
 0x23e   : > { %v11873_v17 = vadd.f32 %v9381_v12, %v11686_v38  ;;  %v2354_v13 = vpop.f32.mrb[121].mxu0 }
 0x23f   : > { %v11876_v63 = vadd.f32 %v2354_v13, %v11674_v45  ;;  %v9382_v36 = vpop.f32.mrb[122].mxu0  ;;  %v11884_v55 = vpop.f32.mrb[136].mxu1 }
 0x240   : > { %v11879_v59 = vadd.f32 %v9382_v36, %v11689_v60  ;;  %v2357_v41 = vpop.f32.mrb[123].mxu0  ;;  %v3260_v7 = vpop.f32.mrb[137].mxu1 }
 0x241   : > { %13534 = vst [vmem:[#allocation9_spill] sm:$0xff] %v11876_v63  ;;  %v11882_v62 = vadd.f32 %v2357_v41, %v11677_v2  ;;  %v11886_v18 = vpop.f32.mrb[138].mxu1 }
 0x242   : > { %13535 = vst [vmem:[#allocation10_spill] sm:$0xff] %v11879_v59  ;;  %v3263_v38 = vpop.f32.mrb[139].mxu1 }
 0x243   : > { %13536 = vst [vmem:[#allocation11_spill] sm:$0xff] %v11882_v62 }
 0x245   : > { %v9385_v12 = vpop.f32.mrb[124].mxu0 }
 0x246   : > { %v11889_v45 = vadd.f32 %v9385_v12, %v11702_v24  ;;  %v2370_v13 = vpop.f32.mrb[125].mxu0 }
 0x247   : > { %v11892_v60 = vadd.f32 %v2370_v13, %v11696_v35  ;;  %v9386_v36 = vpop.f32.mrb[126].mxu0  ;;  %v11900_v62 = vpop.f32.mrb[140].mxu1 }
 0x248   : > { %13537 = vst [vmem:[#allocation12_spill] sm:$0xff] %v11889_v45  ;;  %v11895_v2 = vadd.f32 %v9386_v36, %v11704_v25  ;;  %v2373_v41 = vpop.f32.mrb[127].mxu0  ;;  %13541 = vst [vmem:[#allocation18_spill] sm:$0xff] %v11900_v62  ;;  %v3268_v38 = vpop.f32.mrb[141].mxu1 }
 0x249   : > { %13538 = vst [vmem:[#allocation13_spill] sm:$0xff] %v11892_v60  ;;  %v11898_v7 = vadd.f32 %v2373_v41, %v11698_v40  ;;  %v11902_v16 = vpop.f32.mrb[142].mxu1 }
 0x24a   : > { %13539 = vst [vmem:[#allocation14_spill] sm:$0xff] %v11895_v2  ;;  %13542 = vst [vmem:[#allocation23_spill] sm:$0xff] %v11902_v16  ;;  %v3271_v59 = vpop.f32.mrb[143].mxu1 }
 0x24b   : > { %13540 = vst [vmem:[#allocation17_spill] sm:$0xff] %v11898_v7 }
 0x24d   : > { %v9389_v24 = vpop.f32.mrb[128].mxu0 }
 0x24e   : > { %v11905_v12 = vadd.f32 %v9389_v24, %v11714_v53  ;;  %v2386_v35 = vpop.f32.mrb[129].mxu0 }
 0x24f   : > { %v11908_v13 = vadd.f32 %v2386_v35, %v11708_v29  ;;  %v9390_v25 = vpop.f32.mrb[130].mxu0  ;;  %v11916_v38 = vpop.f32.mrb[144].mxu1  ;;  %v11924_v29 = vld [vmem:[%s13466_s3] ss:$0 sm:$0xff] }
 0x250   : > { %13543 = vst [vmem:[#allocation24_spill] sm:$0xff] %v11905_v12  ;;  %v11911_v36 = vadd.f32 %v9390_v25, %v11718_v30  ;;  %v2389_v40 = vpop.f32.mrb[131].mxu0  ;;  %13547 = vst [vmem:[#allocation32_spill] sm:$0xff] %v11916_v38  ;;  %v3276_v7 = vpop.f32.mrb[145].mxu1 }
 0x251   : > { %13544 = vst [vmem:[#allocation29_spill] sm:$0xff] %v11908_v13  ;;  %v11914_v41 = vadd.f32 %v2389_v40, %v11710_v34  ;;  %v11918_v59 = vpop.f32.mrb[146].mxu1 }
 0x252   : > { %13545 = vst [vmem:[#allocation30_spill] sm:$0xff] %v11911_v36  ;;  %13548 = vst [vmem:[#allocation33_spill] sm:$0xff] %v11918_v59  ;;  %v3279_v16 = vpop.f32.mrb[147].mxu1 }
 0x253   : > { %13546 = vst [vmem:[#allocation31_spill] sm:$0xff] %v11914_v41 }
 0x255   : > { %v9409_v53 = vpop.f32.mrb[132].mxu0 }
 0x256   : > { %v3340_v24 = vadd.f32 %v9409_v53, %v11728_v46  ;;  %v3331_v12 = vpop.f32.mrb[133].mxu0 }
 0x257   : > { %v3332_v30 = vadd.f32 %v3331_v12, %v11716_v15  ;;  %v9410_v35 = vpop.f32.mrb[134].mxu0  ;;  %v11931_v41 = vpop.f32.mrb[148].mxu1 }
 0x258   : > { %v3476_v34 = vadd.f32 %v3340_v24, %v11779_v47  ;;  %v3343_v25 = vadd.f32 %v9410_v35, %v11730_v33  ;;  %v3334_v7 = vpop.f32.mrb[135].mxu0  ;;  %13549 = vst [vmem:[#allocation34_spill] sm:$0xff] %v11931_v41  ;;  %v3284_v36 = vpop.f32.mrb[149].mxu1 }
 0x259   : > { %v3474_v40 = vadd.f32 %v3332_v30, %v11782_v49  ;;  %v3335_v16 = vadd.f32 %v3334_v7, %v11720_v56  ;;  %v11937_v12 = vpop.f32.mrb[150].mxu1 }
 0x25a   : > { %v3519_v46 = vadd.f32 %v11924_v29, %v3476_v34  ;;  %v3477_v53 = vadd.f32 %v3343_v25, %v11785_v0  ;;  %13550 = vst [vmem:[#allocation35_spill] sm:$0xff] %v11937_v12  ;;  %v3287_v49 = vpop.f32.mrb[151].mxu1 }
 0x25b   : > { %v3517_v13 = vadd.f32 %v11924_v29, %v3474_v40  ;;  %v3475_v15 = vadd.f32 %v3335_v16, %v11788_v42 }
 0x25c   : > { %v3555_v47 = vmax.f32 %v3519_v46, 0.0  ;;  %v3520_v33 = vadd.f32 %v11924_v29, %v3477_v53 }
 0x25d   : > { %v3553_v56 = vmax.f32 %v3517_v13, 0.0  ;;  %v3518_v24 = vadd.f32 %v11924_v29, %v3475_v15  ;;  %v9413_v30 = vpop.f32.mrb[136].mxu0 }
 0x25e   : > { %v8599_v35 = vpack.c.bf16 %v3555_v47, %v3555_v47  ;;  %v3556_v0 = vmax.f32 %v3520_v33, 0.0  ;;  %v3356_v36 = vadd.f32 %v9413_v30, %v11748_v50  ;;  %v3347_v34 = vpop.f32.mrb[137].mxu0 }
 0x25f   : > { %v8597_v42 = vpack.c.bf16 %v3553_v56, %v3553_v56  ;;  %v3554_v25 = vmax.f32 %v3518_v24, 0.0  ;;  %v3348_v7 = vadd.f32 %v3347_v34, %v11738_v3  ;;  %v11943_v40 = vpop.f32.mrb[138].mxu0  ;;  %v11947_v50 = vpop.f32.mrb[152].mxu1 }
 0x260   : > { %v3718_v16 = vshrl.u32 %v8599_v35, 16  ;;  %v3721_v46 = vshll.u32 %v8599_v35, 16  ;;  %v8600_v53 = vpack.c.bf16 %v3556_v0, %v3556_v0  ;;  %v3480_v13 = vadd.f32 %v3356_v36, %v11795_v5  ;;  %v3350_v15 = vpop.f32.mrb[139].mxu0  ;;  %13551 = vst [vmem:[#allocation36_spill] sm:$0xff] %v11947_v50  ;;  %v3292_v34 = vpop.f32.mrb[153].mxu1 }
 0x261   : > { %v3701_v49 = vshrl.u32 %v8597_v42, 16  ;;  %v3704_v47 = vshll.u32 %v8597_v42, 16  ;;  %v8598_v12 = vpack.c.bf16 %v3554_v25, %v3554_v25  ;;  %v3478_v33 = vadd.f32 %v3348_v7, %v11798_v23  ;;  %v4072_v5 = vld [vmem:[#allocation2 + $0xc] sm:$0xf]  ;;  %v11957_v25 = vpop.f32.mrb[154].mxu1 }
 0x262   : > { %v3720_v56 = vrot.slane %v3718_v16, 7  ;;  %v3726_v30 = vshrl.u32 %v8600_v53, 16  ;;  %v3729_v24 = vshll.u32 %v8600_v53, 16  ;;  %v3523_v3 = vadd.f32 %v11924_v29, %v3480_v13  ;;  %13554 = vst [vmem:[#allocation37_spill] sm:$0xff] %v11957_v25  ;;  %v4063_v13 = vld [vmem:[#allocation2] sm:$0xf] }
 0x263   : > { %v3703_v0 = vrot.slane %v3701_v49, 7  ;;  %v3709_v36 = vshrl.u32 %v8598_v12, 16  ;;  %v3712_v42 = vshll.u32 %v8598_v12, 16  ;;  %v3521_v23 = vadd.f32 %v11924_v29, %v3478_v33  ;;  %v3295_v50 = vpop.f32.mrb[155].mxu1 }
 0x264   : > { %v3723_v7 = vor.u32 %v3721_v46, %v3720_v56  ;;  %v3724_v16 = vrot.slane %v3720_v56, 4  ;;  %v3728_v34 = vrot.slane %v3726_v30, 7  ;;  %v3559_v41 = vmax.f32 %v3523_v3, 0.0  ;;  %v4076_v46 = vld [vmem:[#allocation2 + $0x14] sm:$0x1] }
 0x265   : > { %v3706_v2 = vor.u32 %v3704_v47, %v3703_v0  ;;  %v3707_v49 = vrot.slane %v3703_v0, 4  ;;  %v3711_v33 = vrot.slane %v3709_v36, 7  ;;  %v3557_v56 = vmax.f32 %v3521_v23, 0.0  ;;  %v9417_v25 = vpop.f32.mrb[140].mxu0  ;;  %v4069_v30 = vld [vmem:[#allocation2 + $0x8] sm:$0x1] }
 0x266   : > { %v4073_v60 = vsel %vm11952_vm7, %v3723_v7, %v4072_v5  ;;  %v3731_v45 = vor.u32 %v3729_v24, %v3728_v34  ;;  %v3733_v59 = vrot.slane %v3728_v34, 4  ;;  %v8603_v3 = vpack.c.bf16 %v3559_v41, %v3559_v41  ;;  %v3363_v50 = vpop.f32.mrb[141].mxu0 }
 0x267   : > { %4074 = vst [vmem:[#allocation2 + $0xc] sm:$0xf] %v4073_v60  ;;  %v4064_v47 = vsel %vm11952_vm7, %v3706_v2, %v4063_v13  ;;  %v3714_v0 = vor.u32 %v3712_v42, %v3711_v33  ;;  %v3716_v62 = vrot.slane %v3711_v33, 4  ;;  %v8601_v38 = vpack.c.bf16 %v3557_v56, %v3557_v56  ;;  %v9418_v63 = vpop.f32.mrb[142].mxu0 }
 0x268   : > { %4065 = vst [vmem:[#allocation2] sm:$0xf] %v4064_v47  ;;  %v3732_v36 = vsel %vm11967_vm9, %v3724_v16, %v3731_v45  ;;  %v4077_v5 = vsel %vm11961_vm8, %v3733_v59, %v4076_v46  ;;  %v3752_v24 = vshrl.u32 %v8603_v3, 16  ;;  %v3755_v23 = vshll.u32 %v8603_v3, 16  ;;  %v3366_v7 = vpop.f32.mrb[143].mxu0 }
 0x269   : > { %4075 = vst [vmem:[#allocation2 + $0x10] sm:$0xf] %v3732_v36  ;;  %4078 = vst [vmem:[#allocation2 + $0x14] sm:$0x1] %v4077_v5  ;;  %v3715_v60 = vsel %vm11967_vm9, %v3707_v49, %v3714_v0  ;;  %v4070_v2 = vsel %vm11961_vm8, %v3716_v62, %v4069_v30  ;;  %v3735_v41 = vshrl.u32 %v8601_v38, 16  ;;  %v3738_v42 = vshll.u32 %v8601_v38, 16 }
 0x26a   : > { %4066 = vst [vmem:[#allocation2 + $0x4] sm:$0xf] %v3715_v60  ;;  %4071 = vst [vmem:[#allocation2 + $0x8] sm:$0x1] %v4070_v2  ;;  %v11983_v13 = vrot.slane %v3752_v24, 7  ;;  %v3359_v45 = vadd.f32 %v11943_v40, %v11750_v1  ;;  %v3351_v59 = vadd.f32 %v3350_v15, %v11740_v52  ;;  %v3372_v16 = vadd.f32 %v9417_v25, %v11768_v21 }
 0x26b   : > { %v13559_v34 = vmov 0   ;;  %v4086_v46 = vld [vmem:[#allocation2 + $0x24] sm:$0xf]  ;;  %v11990_v49 = vrot.slane %v3735_v41, 7  ;;  %v3364_v62 = vadd.f32 %v3363_v50, %v11758_v61  ;;  %v3375_v38 = vadd.f32 %v9418_v63, %v11770_v9  ;;  %v4079_v1 = vld [vmem:[#allocation2 + $0x18] sm:$0xf] }
 0x26c   : > { %4305 = vst [vmem:[#allocation2 + $0x4] sm:$0xf] %v13559_v34  ;;  %v3367_v33 = vadd.f32 %v3366_v7, %v11760_v22  ;;  %v3757_v56 = vor.u32 %v3755_v23, %v11983_v13  ;;  %v3758_v30 = vrot.slane %v11983_v13, 4  ;;  %v3481_v52 = vadd.f32 %v3359_v45, %v11801_v19 }
 0x26d   : > { %v3479_v21 = vadd.f32 %v3351_v59, %v11804_v39  ;;  %v3740_v40 = vor.u32 %v3738_v42, %v11990_v49  ;;  %v3741_v15 = vrot.slane %v11990_v49, 4  ;;  %v3484_v25 = vadd.f32 %v3372_v16, %v11810_v26  ;;  %v9421_v9 = vpop.f32.mrb[144].mxu0 }
 0x26e   : > { %v3482_v61 = vadd.f32 %v3364_v62, %v11813_v48  ;;  %v4194_v63 = vld [vmem:[#allocation2 + $0xc] sm:$0x1]  ;;  %v4087_v19 = vsel %vm11952_vm7, %v3757_v56, %v4086_v46  ;;  %v3524_v39 = vadd.f32 %v11924_v29, %v3481_v52  ;;  %v3485_v50 = vadd.f32 %v3375_v38, %v11815_v20  ;;  %v12014_v26 = vpop.f32.mrb[145].mxu0 }
 0x26f   : > { %v3522_v3 = vadd.f32 %v11924_v29, %v3479_v21  ;;  %v4195_v48 = vsel %vm11961_vm8, 0, %v4194_v63  ;;  %v4191_v47 = vld [vmem:[#allocation2] sm:$0x1]  ;;  %4088 = vst [vmem:[#allocation2 + $0x24] sm:$0xf] %v4087_v19  ;;  %v4080_v0 = vsel %vm11952_vm7, %v3740_v40, %v4079_v1  ;;  %v3527_v36 = vadd.f32 %v11924_v29, %v3484_v25  ;;  %v12022_v24 = vpop.f32.mrb[146].mxu0 }
 0x270   : > { %v3525_v5 = vadd.f32 %v11924_v29, %v3482_v61  ;;  %4196 = vst [vmem:[#allocation2 + $0xc] sm:$0x1] %v4195_v48  ;;  %v4192_v20 = vsel %vm11961_vm8, 0, %v4191_v47  ;;  %v4249_v23 = vld [vmem:[#allocation2 + $0x14] sm:$0x1]  ;;  %v3560_v7 = vmax.f32 %v3524_v39, 0.0  ;;  %v3528_v2 = vadd.f32 %v11924_v29, %v3485_v50 }
 0x271   : > { %4081 = vst [vmem:[#allocation2 + $0x18] sm:$0xf] %v4080_v0  ;;  %v3558_v60 = vmax.f32 %v3522_v3, 0.0  ;;  %v12027_v41 = vpop.f32.mrb[147].mxu0  ;;  %4193 = vst [vmem:[#allocation2] sm:$0x1] %v4192_v20  ;;  %v3483_v46 = vadd.f32 %v3367_v33, %v11818_v31  ;;  %v3388_v25 = vadd.f32 %v9421_v9, %v11790_v58 }
 0x272   : > { %v4250_v42 = vsel %vm12005_vm10, 0, %v4249_v23  ;;  %v4246_v45 = vld [vmem:[#allocation2 + $0x8] sm:$0x1]  ;;  %v3563_v59 = vmax.f32 %v3527_v36, 0.0  ;;  %v3561_v16 = vmax.f32 %v3525_v5, 0.0  ;;  %v8604_v38 = vpack.c.bf16 %v3560_v7, %v3560_v7 }
 0x273   : > { %4304 = vst [vmem:[#allocation2] sm:$0xf] %v13559_v34  ;;  %4251 = vst [vmem:[#allocation2 + $0x14] sm:$0x1] %v4250_v42  ;;  %v4247_v62 = vsel %vm12005_vm10, 0, %v4246_v45  ;;  %v8602_v56 = vpack.c.bf16 %v3558_v60, %v3558_v60  ;;  %v3564_v1 = vmax.f32 %v3528_v2, 0.0  ;;  %v3526_v40 = vadd.f32 %v11924_v29, %v3483_v46 }
 0x274   : > { %4248 = vst [vmem:[#allocation2 + $0x8] sm:$0x1] %v4247_v62  ;;  %v8607_v52 = vpack.c.bf16 %v3563_v59, %v3563_v59  ;;  %v8605_v21 = vpack.c.bf16 %v3561_v16, %v3561_v16  ;;  %v3760_v61 = vshrl.u32 %v8604_v38, 16  ;;  %v3763_v31 = vshll.u32 %v8604_v38, 16  ;;  %v4090_v19 = vld [vmem:[#allocation2 + $0x2c] sm:$0x1] }
 0x275   : > { %4306 = vst [vmem:[#allocation2 + $0x8] sm:$0x1] %v13559_v34  ;;  %v3743_v33 = vshrl.u32 %v8602_v56, 16  ;;  %v3746_v63 = vshll.u32 %v8602_v56, 16  ;;  %v9425_v47 = vpop.f32.mrb[148].mxu0  ;;  %v8608_v60 = vpack.c.bf16 %v3564_v1, %v3564_v1  ;;  %v3562_v58 = vmax.f32 %v3526_v40, 0.0 }
 0x276   : > { %v3786_v39 = vshrl.u32 %v8607_v52, 16  ;;  %v3789_v3 = vshll.u32 %v8607_v52, 16  ;;  %v3769_v50 = vshrl.u32 %v8605_v21, 16  ;;  %v3772_v48 = vshll.u32 %v8605_v21, 16  ;;  %v4200_v0 = vld [vmem:[#allocation2 + $0x24] sm:$0x1] }
 0x277   : > { %v3762_v36 = vrot.slane %v3760_v61, 7  ;;  %v3745_v5 = vrot.slane %v3743_v33, 7  ;;  %v4083_v20 = vld [vmem:[#allocation2 + $0x20] sm:$0x1]  ;;  %v4100_v23 = vld [vmem:[#allocation2 + $0x3c] sm:$0xf]  ;;  %v3488_v16 = vadd.f32 %v3388_v25, %v11825_v11 }
 0x278   : > { %v4093_v7 = vld [vmem:[#allocation2 + $0x30] sm:$0xf]  ;;  %v12038_v9 = vpop.f32.mrb[149].mxu0  ;;  %v4201_v2 = vsel %vm11961_vm8, 0, %v4200_v0  ;;  %v4197_v42 = vld [vmem:[#allocation2 + $0x18] sm:$0x1] }
 0x279   : > { %v3788_v45 = vrot.slane %v3786_v39, 7  ;;  %v12042_v59 = vrot.slane %v3769_v50, 7  ;;  %v12045_v46 = vpop.f32.mrb[150].mxu0  ;;  %4202 = vst [vmem:[#allocation2 + $0x24] sm:$0x1] %v4201_v2  ;;  %v4198_v62 = vsel %vm11961_vm8, 0, %v4197_v42  ;;  %v3765_v38 = vor.u32 %v3763_v31, %v3762_v36 }
 0x27a   : > { %v3767_v56 = vrot.slane %v3762_v36, 4  ;;  %v3748_v1 = vor.u32 %v3746_v63, %v3745_v5  ;;  %v12049_v52 = vpop.f32.mrb[151].mxu0  ;;  %4199 = vst [vmem:[#allocation2 + $0x18] sm:$0x1] %v4198_v62  ;;  %v3750_v21 = vrot.slane %v3745_v5, 4  ;;  %v10103_v39 = vld [vmem:[#allocation3 + $0x1c0] sm:$0xff]   ;;  %v3531_v50 = vadd.f32 %v11924_v29, %v3488_v16 }
 0x27b   : > { %v3791_v40 = vor.u32 %v3789_v3, %v3788_v45  ;;  %v3792_v61 = vrot.slane %v3788_v45, 4  ;;  %v3774_v33 = vor.u32 %v3772_v48, %v12042_v59  ;;  %v3766_v11 = vsel %vm11967_vm9, %v3758_v30, %v3765_v38  ;;  %9151 = vmatprep.subr.bf16.mxu0 %v10103_v39  ;;  %v13562_v5 = vld [vmem:[#allocation15_spill] sm:$0xff]  ;;  %v4104_v2 = vld [vmem:[#allocation2 + $0x44] sm:$0x1] }
 0x27c   : > { %v4091_v25 = vsel %vm11961_vm8, %v3767_v56, %v4090_v19  ;;  %v3749_v31 = vsel %vm11967_vm9, %v3741_v15, %v3748_v1  ;;  %v3775_v63 = vrot.slane %v12042_v59, 4  ;;  %4089 = vst [vmem:[#allocation2 + $0x28] sm:$0xf] %v3766_v11  ;;  %v4084_v13 = vsel %vm11961_vm8, %v3750_v21, %v4083_v20  ;;  %v4097_v1 = vld [vmem:[#allocation2 + $0x38] sm:$0x1] }
 0x27d   : > { %4092 = vst [vmem:[#allocation2 + $0x2c] sm:$0x1] %v4091_v25  ;;  %4082 = vst [vmem:[#allocation2 + $0x1c] sm:$0xf] %v3749_v31  ;;  %v4101_v30 = vsel %vm11952_vm7, %v3791_v40, %v4100_v23  ;;  %v4094_v19 = vsel %vm11952_vm7, %v3774_v33, %v4093_v7  ;;  %v3794_v3 = vshrl.u32 %v8608_v60, 16  ;;  %v3797_v49 = vshll.u32 %v8608_v60, 16 }
 0x27e   : > { %4085 = vst [vmem:[#allocation2 + $0x20] sm:$0x1] %v4084_v13  ;;  %4102 = vst [vmem:[#allocation2 + $0x3c] sm:$0xf] %v4101_v30  ;;  %v8606_v15 = vpack.c.bf16 %v3562_v58, %v3562_v58  ;;  %v3380_v48 = vadd.f32 %v12014_v26, %v11774_v4  ;;  %v3391_v36 = vadd.f32 %v12022_v24, %v11792_v44  ;;  %v12077_v7 = vpop.f32.mrb[152].mxu0  ;;  %v3567_v42 = vmax.f32 %v3531_v50, 0.0 }
 0x27f   : > { %4095 = vst [vmem:[#allocation2 + $0x30] sm:$0xf] %v4094_v19  ;;  %v3796_v0 = vrot.slane %v3794_v3, 7  ;;  %v3383_v20 = vadd.f32 %v12027_v41, %v13562_v5  ;;  %v3404_v23 = vadd.f32 %v9425_v47, %v11820_v43  ;;  %v12080_v59 = vpop.f32.mrb[153].mxu0  ;;  %v13563_v30 = vld [vmem:[#allocation16_spill] sm:$0xff] }
 0x280   : > { %v3777_v60 = vshrl.u32 %v8606_v15, 16  ;;  %v3780_v58 = vshll.u32 %v8606_v15, 16  ;;  %v3486_v45 = vadd.f32 %v3380_v48, %v11828_v32  ;;  %v3489_v16 = vadd.f32 %v3391_v36, %v11831_v27  ;;  %v12084_v24 = vpop.f32.mrb[154].mxu0 }
 0x281   : > { %v3799_v4 = vor.u32 %v3797_v49, %v3796_v0  ;;  %v3801_v26 = vrot.slane %v3796_v0, 4  ;;  %v3487_v44 = vadd.f32 %v3383_v20, %v11834_v14  ;;  %v8611_v43 = vpack.c.bf16 %v3567_v42, %v3567_v42  ;;  %v12088_v38 = vpop.f32.mrb[155].mxu0  ;;  %v4114_v0 = vld [vmem:[#allocation2 + $0x54] sm:$0xf] }
 0x282   : > { %v3779_v41 = vrot.slane %v3777_v60, 7  ;;  %v3529_v47 = vadd.f32 %v11924_v29, %v3486_v45  ;;  %v3492_v62 = vadd.f32 %v3404_v23, %v11841_v57  ;;  %v3532_v27 = vadd.f32 %v11924_v29, %v3489_v16 }
 0x283   : > { %v3800_v32 = vsel %vm11967_vm9, %v3792_v61, %v3799_v4  ;;  %v4105_v56 = vsel %vm11961_vm8, %v3801_v26, %v4104_v2  ;;  %v3530_v14 = vadd.f32 %v11924_v29, %v3487_v44  ;;  %v3820_v11 = vshrl.u32 %v8611_v43, 16 }
 0x284   : > { %v4255_v21 = vld [vmem:[#allocation2 + $0x2c] sm:$0x1]  ;;  %4103 = vst [vmem:[#allocation2 + $0x40] sm:$0xf] %v3800_v32  ;;  %4106 = vst [vmem:[#allocation2 + $0x44] sm:$0x1] %v4105_v56  ;;  %v3782_v40 = vor.u32 %v3780_v58, %v3779_v41  ;;  %v3535_v13 = vadd.f32 %v11924_v29, %v3492_v62  ;;  %v3396_v19 = vadd.f32 %v12038_v9, %v13563_v30 }
 0x285   : > { %v3784_v33 = vrot.slane %v3779_v41, 4  ;;  %v3823_v57 = vshll.u32 %v8611_v43, 16  ;;  %v4256_v25 = vsel %vm12005_vm10, 0, %v4255_v21  ;;  %v4252_v31 = vld [vmem:[#allocation2 + $0x20] sm:$0x1]  ;;  %v3565_v39 = vmax.f32 %v3529_v47, 0.0 }
 0x286   : > { %v4206_v61 = vld [vmem:[#allocation2 + $0x3c] sm:$0x1]  ;;  %4257 = vst [vmem:[#allocation2 + $0x2c] sm:$0x1] %v4256_v25  ;;  %v4253_v3 = vsel %vm12005_vm10, 0, %v4252_v31  ;;  %v3783_v50 = vsel %vm11967_vm9, %v3775_v63, %v3782_v40  ;;  %v12111_v36 = vrot.slane %v3820_v11, 7  ;;  %v3490_v60 = vadd.f32 %v3396_v19, %v11844_v51 }
 0x287   : > { %v4207_v49 = vsel %vm11961_vm8, 0, %v4206_v61  ;;  %v4203_v15 = vld [vmem:[#allocation2 + $0x30] sm:$0x1]  ;;  %v4098_v48 = vsel %vm11961_vm8, %v3784_v33, %v4097_v1  ;;  %4254 = vst [vmem:[#allocation2 + $0x20] sm:$0x1] %v4253_v3  ;;  %v8609_v5 = vpack.c.bf16 %v3565_v39, %v3565_v39  ;;  %v3568_v20 = vmax.f32 %v3532_v27, 0.0 }
 0x288   : > { %4208 = vst [vmem:[#allocation2 + $0x3c] sm:$0x1] %v4207_v49  ;;  %v4204_v9 = vsel %vm11961_vm8, 0, %v4203_v15  ;;  %4096 = vst [vmem:[#allocation2 + $0x34] sm:$0xf] %v3783_v50  ;;  %v12113_v23 = vpop.f32.mrb[156].mxu0  ;;  %v3825_v4 = vor.u32 %v3823_v57, %v12111_v36  ;;  %v3533_v56 = vadd.f32 %v11924_v29, %v3490_v60 }
 0x289   : > { %4099 = vst [vmem:[#allocation2 + $0x38] sm:$0x1] %v4098_v48  ;;  %4205 = vst [vmem:[#allocation2 + $0x30] sm:$0x1] %v4204_v9  ;;  %v3566_v2 = vmax.f32 %v3530_v14, 0.0  ;;  %v3571_v63 = vmax.f32 %v3535_v13, 0.0  ;;  %v8612_v47 = vpack.c.bf16 %v3568_v20, %v3568_v20 }
 0x28a   : > { %v13564_v58 = vld [vmem:[#allocation22_spill] sm:$0xff]  ;;  %v12118_v45 = vpop.f32.mrb[157].mxu0  ;;  %v3826_v26 = vrot.slane %v12111_v36, 4  ;;  %v3803_v16 = vshrl.u32 %v8609_v5, 16  ;;  %v3806_v44 = vshll.u32 %v8609_v5, 16  ;;  %v13565_v21 = vld [vmem:[#allocation20_spill] sm:$0xff] }
 0x28b   : > { %v3407_v42 = vadd.f32 %v12045_v46, %v13564_v58  ;;  %v12122_v41 = vpop.f32.mrb[158].mxu0  ;;  %v4107_v43 = vld [vmem:[#allocation2 + $0x48] sm:$0xf]  ;;  %v8610_v62 = vpack.c.bf16 %v3566_v2, %v3566_v2  ;;  %v8615_v32 = vpack.c.bf16 %v3571_v63, %v3571_v63  ;;  %v4261_v1 = vld [vmem:[#allocation2 + $0x44] sm:$0x1]  ;;  %v4115_v46 = vsel %vm11952_vm7, %v3825_v4, %v4114_v0 }
 0x28c   : > { %v12125_v51 = vpop.f32.mrb[159].mxu0  ;;  %v3805_v27 = vrot.slane %v3803_v16, 7  ;;  %v3399_v40 = vadd.f32 %v12049_v52, %v13565_v21  ;;  %v4262_v33 = vsel %vm12005_vm10, 0, %v4261_v1  ;;  %4116 = vst [vmem:[#allocation2 + $0x54] sm:$0xf] %v4115_v46  ;;  %v3828_v11 = vshrl.u32 %v8612_v47, 16 }
 0x28d   : > { %v3493_v14 = vadd.f32 %v3407_v42, %v11847_v37  ;;  %v3831_v57 = vshll.u32 %v8612_v47, 16  ;;  %v3811_v25 = vshrl.u32 %v8610_v62, 16  ;;  %4263 = vst [vmem:[#allocation2 + $0x44] sm:$0x1] %v4262_v33  ;;  %v4118_v39 = vld [vmem:[#allocation2 + $0x5c] sm:$0x1] }
 0x28e   : > { %v3808_v31 = vor.u32 %v3806_v44, %v3805_v27  ;;  %v3809_v61 = vrot.slane %v3805_v27, 4  ;;  %v3814_v13 = vshll.u32 %v8610_v62, 16  ;;  %v4111_v30 = vld [vmem:[#allocation2 + $0x50] sm:$0x1]  ;;  %v3854_v19 = vshrl.u32 %v8615_v32, 16  ;;  %v12141_v36 = vpop.f32.mrb[160].mxu0 }
 0x28f   : > { %v3830_v49 = vrot.slane %v3828_v11, 7  ;;  %v3813_v37 = vrot.slane %v3811_v25, 7  ;;  %v3857_v15 = vshll.u32 %v8615_v32, 16  ;;  %v3569_v50 = vmax.f32 %v3533_v56, 0.0  ;;  %v4128_v60 = vld [vmem:[#allocation2 + $0x6c] sm:$0xf] }
 0x290   : > { %v4258_v3 = vld [vmem:[#allocation2 + $0x38] sm:$0x1]  ;;  %v4108_v48 = vsel %vm11952_vm7, %v3808_v31, %v4107_v43  ;;  %v12138_v0 = vrot.slane %v3854_v19, 7  ;;  %v3536_v9 = vadd.f32 %v11924_v29, %v3493_v14  ;;  %v12143_v58 = vpop.f32.mrb[161].mxu0  ;;  %v12157_v1 = vld [vmem:[#allocation2 + $0xc] sm:$0xff]   ;;  %v13566_v25 = vld [vmem:[#allocation26_spill] sm:$0xff] }
 0x291   : > { %v4259_v52 = vsel %vm12005_vm10, 0, %v4258_v3  ;;  %4109 = vst [vmem:[#allocation2 + $0x48] sm:$0xf] %v4108_v48  ;;  %v3833_v5 = vor.u32 %v3831_v57, %v3830_v49  ;;  %v3835_v20 = vrot.slane %v3830_v49, 4  ;;  %v3816_v2 = vor.u32 %v3814_v13, %v3813_v37  ;;  %v12147_v43 = vpop.f32.mrb[162].mxu0  ;;  %v13568_v3 = vld [vmem:[#allocation28_spill] sm:$0xff] }
 0x292   : > { %4260 = vst [vmem:[#allocation2 + $0x38] sm:$0x1] %v4259_v52  ;;  %v3818_v63 = vrot.slane %v3813_v37, 4  ;;  %v3859_v42 = vor.u32 %v3857_v15, %v12138_v0  ;;  %v3860_v4 = vrot.slane %v12138_v0, 4  ;;  %v8613_v16 = vpack.c.bf16 %v3569_v50, %v3569_v50  ;;  %v12159_v46 = vpop.f32.mrb[163].mxu0 }
 0x293   : > { %v3572_v44 = vmax.f32 %v3536_v9, 0.0  ;;  %v3834_v47 = vsel %vm11967_vm9, %v3826_v26, %v3833_v5  ;;  %v4119_v62 = vsel %vm11961_vm8, %v3835_v20, %v4118_v39  ;;  %v3817_v32 = vsel %vm11967_vm9, %v3809_v61, %v3816_v2  ;;  %v4212_v27 = vld [vmem:[#allocation2 + $0x54] sm:$0x1]  ;;  %v13567_v61 = vld [vmem:[#allocation19_spill] sm:$0xff]  ;;  %v4121_v37 = vld [vmem:[#allocation2 + $0x60] sm:$0xf] }
 0x294   : > { %v4112_v56 = vsel %vm11961_vm8, %v3818_v63, %v4111_v30  ;;  %4117 = vst [vmem:[#allocation2 + $0x58] sm:$0xf] %v3834_v47  ;;  %4120 = vst [vmem:[#allocation2 + $0x5c] sm:$0x1] %v4119_v62  ;;  %v4129_v26 = vsel %vm11952_vm7, %v3859_v42, %v4128_v60  ;;  %v3837_v14 = vshrl.u32 %v8613_v16, 16  ;;  %v3840_v21 = vshll.u32 %v8613_v16, 16 }
 0x295   : > { %4110 = vst [vmem:[#allocation2 + $0x4c] sm:$0xf] %v3817_v32  ;;  %4113 = vst [vmem:[#allocation2 + $0x50] sm:$0x1] %v4112_v56  ;;  %v8616_v33 = vpack.c.bf16 %v3572_v44, %v3572_v44  ;;  %v4213_v11 = vsel %vm11961_vm8, 0, %v4212_v27  ;;  %v3491_v57 = vadd.f32 %v3399_v40, %v11850_v28  ;;  %v3420_v31 = vadd.f32 %v12077_v7, %v13566_v25 }
 0x296   : > { %4130 = vst [vmem:[#allocation2 + $0x6c] sm:$0xf] %v4129_v26  ;;  %v3412_v39 = vadd.f32 %v12080_v59, %v13567_v61  ;;  %4214 = vst [vmem:[#allocation2 + $0x54] sm:$0x1] %v4213_v11  ;;  %v12170_v13 = vrot.slane %v3837_v14, 7  ;;  %v3423_v49 = vadd.f32 %v12084_v24, %v13568_v3  ;;  %v5224_v7 = vrot.slane %v12157_v1, 1 }
 0x297   : > { %v3862_v30 = vshrl.u32 %v8616_v33, 16  ;;  %v3865_v19 = vshll.u32 %v8616_v33, 16  ;;  %v4132_v15 = vld [vmem:[#allocation2 + $0x74] sm:$0x1]  ;;  %v3534_v50 = vadd.f32 %v11924_v29, %v3491_v57  ;;  %v3496_v28 = vadd.f32 %v3420_v31, %v11857_v54  ;;  %v13569_v26 = vld [vmem:[#allocation21_spill] sm:$0xff] }
 0x298   : > { %v3494_v40 = vadd.f32 %v3412_v39, %v11860_v10  ;;  %v4209_v52 = vld [vmem:[#allocation2 + $0x48] sm:$0x1]  ;;  %v3842_v59 = vor.u32 %v3840_v21, %v12170_v13  ;;  %v3843_v48 = vrot.slane %v12170_v13, 4  ;;  %v3497_v5 = vadd.f32 %v3423_v49, %v11863_v6  ;;  %v12185_v63 = vld [vmem:[#allocation2 + $0x14] ss:$0 sps:$4 sm:$0x11]  }
 0x299   : > { %v3864_v9 = vrot.slane %v3862_v30, 7  ;;  %v4210_v24 = vsel %vm11961_vm8, 0, %v4209_v52  ;;  %v3570_v20 = vmax.f32 %v3534_v50, 0.0  ;;  %v3539_v2 = vadd.f32 %v11924_v29, %v3496_v28  ;;  %v12187_v10 = vpop.f32.mrb[164].mxu0  ;;  %v4142_v52 = vld [vmem:[#allocation2 + $0x84] sm:$0xf] }
 0x29a   : > { %v3537_v54 = vadd.f32 %v11924_v29, %v3494_v40  ;;  %4211 = vst [vmem:[#allocation2 + $0x48] sm:$0x1] %v4210_v24  ;;  %v4122_v60 = vsel %vm11952_vm7, %v3842_v59, %v4121_v37  ;;  %v3540_v6 = vadd.f32 %v11924_v29, %v3497_v5  ;;  %v12192_v44 = vpop.f32.mrb[165].mxu0  ;;  %v3415_v14 = vadd.f32 %v12088_v38, %v13569_v26  ;;  %v4125_v40 = vld [vmem:[#allocation2 + $0x68] sm:$0x1] }
 0x29b   : > { %v3867_v42 = vor.u32 %v3865_v19, %v3864_v9  ;;  %v3869_v16 = vrot.slane %v3864_v9, 4  ;;  %v4267_v47 = vld [vmem:[#allocation2 + $0x5c] sm:$0x1]  ;;  %4123 = vst [vmem:[#allocation2 + $0x60] sm:$0xf] %v4122_v60  ;;  %v8614_v32 = vpack.c.bf16 %v3570_v20, %v3570_v20  ;;  %v3575_v56 = vmax.f32 %v3539_v2, 0.0 }
 0x29c   : > { %v4264_v62 = vld [vmem:[#allocation2 + $0x50] sm:$0x1]  ;;  %v3573_v27 = vmax.f32 %v3537_v54, 0.0  ;;  %v4268_v21 = vsel %vm12005_vm10, 0, %v4267_v47  ;;  %v12206_v31 = vpop.f32.mrb[166].mxu0  ;;  %v5225_v3 = vrot.slane %v12185_v63, 1  ;;  %v3495_v49 = vadd.f32 %v3415_v14, %v11866_v8 }
 0x29d   : > { %v4265_v33 = vsel %vm12005_vm10, 0, %v4264_v62  ;;  %v4218_v11 = vld [vmem:[#allocation2 + $0x6c] sm:$0x1]  ;;  %v3868_v57 = vsel %vm11967_vm9, %v3860_v4, %v3867_v42  ;;  %v4133_v25 = vsel %vm11961_vm8, %v3869_v16, %v4132_v15  ;;  %4269 = vst [vmem:[#allocation2 + $0x5c] sm:$0x1] %v4268_v21  ;;  %v3845_v61 = vshrl.u32 %v8614_v32, 16 }
 0x29e   : > { %4266 = vst [vmem:[#allocation2 + $0x50] sm:$0x1] %v4265_v33  ;;  %v4219_v38 = vsel %vm11961_vm8, 0, %v4218_v11  ;;  %4131 = vst [vmem:[#allocation2 + $0x70] sm:$0xf] %v3868_v57  ;;  %v3848_v39 = vshll.u32 %v8614_v32, 16  ;;  %v8619_v30 = vpack.c.bf16 %v3575_v56, %v3575_v56  ;;  %v8617_v0 = vpack.c.bf16 %v3573_v27, %v3573_v27 }
 0x29f   : > { %4134 = vst [vmem:[#allocation2 + $0x74] sm:$0x1] %v4133_v25  ;;  %v12210_v19 = vpop.f32.mrb[167].mxu0  ;;  %4220 = vst [vmem:[#allocation2 + $0x6c] sm:$0x1] %v4219_v38  ;;  %v3576_v4 = vmax.f32 %v3540_v6, 0.0  ;;  %v5226_v24 = vsel %vm709_vm0, %v5224_v7, %v5225_v3  ;;  %v3538_v42 = vadd.f32 %v11924_v29, %v3495_v49  ;;  %v3436_v49 = vadd.f32 %v12113_v23, %v11884_v55 }
 0x2a0   : > { %v3847_v37 = vrot.slane %v3845_v61, 7  ;;  %v3888_v15 = vshrl.u32 %v8619_v30, 16  ;;  %v3891_v50 = vshll.u32 %v8619_v30, 16  ;;  %v5017_v28 = vshrl.u32 %v12157_v1, 16  ;;  %v4135_v60 = vld [vmem:[#allocation2 + $0x78] sm:$0xf]  ;;  %9459 = vmatprep.mubr.bf16.mxu1 %v5226_v24 }
 0x2a1   : > { %v3871_v59 = vshrl.u32 %v8617_v0, 16  ;;  %v3874_v9 = vshll.u32 %v8617_v0, 16  ;;  %v8620_v5 = vpack.c.bf16 %v3576_v4, %v3576_v4  ;;  %v5019_v62 = vshll.u32 %v12157_v1, 16  ;;  %v4146_v29 = vld [vmem:[#allocation2 + $0x8c] sm:$0x1]  ;;  %v12237_v0 = vld [vmem:[#allocation2 + $0x18] sm:$0xff]  }
 0x2a2   : > { %v3850_v20 = vor.u32 %v3848_v39, %v3847_v37  ;;  %v3852_v2 = vrot.slane %v3847_v37, 4  ;;  %v3890_v54 = vrot.slane %v3888_v15, 7  ;;  %v4215_v8 = vld [vmem:[#allocation2 + $0x60] sm:$0x1]  ;;  %v3574_v57 = vmax.f32 %v3538_v42, 0.0  ;;  %v13570_v37 = vld [vmem:[#allocation25_spill] sm:$0xff] }
 0x2a3   : > { %v12217_v16 = vrot.slane %v3871_v59, 7  ;;  %v3896_v6 = vshrl.u32 %v8620_v5, 16  ;;  %v3899_v47 = vshll.u32 %v8620_v5, 16  ;;  %v4216_v32 = vsel %vm11961_vm8, 0, %v4215_v8  ;;  %v10104_v24 = vld [vmem:[#allocation3 + $0x180] sm:$0xff]   ;;  %v13573_v42 = vld [vmem:[#allocation27_spill] sm:$0xff] }
 0x2a4   : > { %v3851_v7 = vsel %vm11967_vm9, %v3843_v48, %v3850_v20  ;;  %v4126_v56 = vsel %vm11961_vm8, %v3852_v2, %v4125_v40  ;;  %v3893_v27 = vor.u32 %v3891_v50, %v3890_v54  ;;  %4217 = vst [vmem:[#allocation2 + $0x60] sm:$0x1] %v4216_v32  ;;  %v3894_v14 = vrot.slane %v3890_v54, 4  ;;  %v12243_v50 = vld [vmem:[#allocation2 + $0x20] ss:$0 sps:$4 sm:$0x11]  }
 0x2a5   : > { %4124 = vst [vmem:[#allocation2 + $0x64] sm:$0xf] %v3851_v7  ;;  %4127 = vst [vmem:[#allocation2 + $0x68] sm:$0x1] %v4126_v56  ;;  %v3876_v21 = vor.u32 %v3874_v9, %v12217_v16  ;;  %v3877_v33 = vrot.slane %v12217_v16, 4  ;;  %v3898_v11 = vrot.slane %v3896_v6, 7  ;;  %v8618_v4 = vpack.c.bf16 %v3574_v57, %v3574_v57 }
 0x2a6   : > { %v4273_v26 = vld [vmem:[#allocation2 + $0x74] sm:$0x1]  ;;  %v4143_v48 = vsel %vm11952_vm7, %v3893_v27, %v4142_v52  ;;  %v5021_v25 = vrot.slane %v5019_v62, 1  ;;  %v5024_v30 = vshll.u32 %v12185_v63, 16  ;;  %v3428_v15 = vadd.f32 %v12118_v45, %v13570_v37  ;;  %v12251_v9 = vld [vmem:[#allocation2 + $0x24] sm:$0xff]   ;;  %v10062_v6 = vld [vmem:[#allocation3] sm:$0xff]  }
 0x2a7   : > { %v4274_v13 = vsel %vm12005_vm10, 0, %v4273_v26  ;;  %4144 = vst [vmem:[#allocation2 + $0x84] sm:$0xf] %v4143_v48  ;;  %v4136_v38 = vsel %vm11952_vm7, %v3876_v21, %v4135_v60  ;;  %v3901_v61 = vor.u32 %v3899_v47, %v3898_v11  ;;  %v3903_v39 = vrot.slane %v3898_v11, 4  ;;  %v4139_v20 = vld [vmem:[#allocation2 + $0x80] sm:$0x1] }
 0x2a8   : > { %4275 = vst [vmem:[#allocation2 + $0x74] sm:$0x1] %v4274_v13  ;;  %4137 = vst [vmem:[#allocation2 + $0x78] sm:$0xf] %v4136_v38  ;;  %v5022_v3 = vor.u32 %v5021_v25, %v5017_v28  ;;  %v5026_v63 = vrot.slane %v5024_v30, 1  ;;  %v3439_v59 = vadd.f32 %v12122_v41, %v11886_v18  ;;  %v3879_v55 = vshrl.u32 %v8618_v4, 16 }
 0x2a9   : > { %v3902_v40 = vsel %vm11967_vm9, %v3894_v14, %v3901_v61  ;;  %v4147_v52 = vsel %vm11961_vm8, %v3903_v39, %v4146_v29  ;;  %v3882_v23 = vshll.u32 %v8618_v4, 16  ;;  %v3500_v45 = vadd.f32 %v3436_v49, %v11873_v17  ;;  %v13571_v28 = vld [vmem:[#allocation9_spill] sm:$0xff]  ;;  %v13572_v54 = vld [vmem:[#allocation10_spill] sm:$0xff]  ;;  %v12260_v41 = vld [vmem:[#allocation2 + $0x2c] ss:$0 sps:$4 sm:$0x11]  }
 0x2aa   : > { %4145 = vst [vmem:[#allocation2 + $0x88] sm:$0xf] %v3902_v40  ;;  %4148 = vst [vmem:[#allocation2 + $0x8c] sm:$0x1] %v4147_v52  ;;  %v3498_v5 = vadd.f32 %v3428_v15, %v13571_v28  ;;  %v5027_v2 = vsel %vm474_vm1, %v5022_v3, %v5026_v63  ;;  %v3501_v60 = vadd.f32 %v3439_v59, %v13572_v54  ;;  %v5227_v18 = vrot.slane %v12237_v0, 1  ;;  %v10112_v47 = vld [vmem:[#allocation3 + $0x1c8] sm:$0xff]  }
 0x2ab   : > { %v3431_v8 = vadd.f32 %v12125_v51, %v13573_v42  ;;  %v3881_v32 = vrot.slane %v3879_v55, 7  ;;  %5513 = vmatprep.mubr.bf16.mxu0 %v5027_v2  ;;  %v12265_v17 = vld [vmem:[%s13466_s3] ss:$0 sm:$0xff]  ;;  %v5228_v51 = vrot.slane %v12243_v50, 1  ;;  %v13574_v26 = vld [vmem:[#allocation11_spill] sm:$0xff]  ;;  %v5230_v21 = vrot.slane %v12251_v9, 1 }
 0x2ac   : > { %v4270_v62 = vld [vmem:[#allocation2 + $0x68] sm:$0x1]  ;;  %v3543_v7 = vadd.f32 %v12265_v17, %v3500_v45  ;;  %v3541_v56 = vadd.f32 %v12265_v17, %v3498_v5  ;;  %5514 = vmatmul.mubr.bf16.vlgmr.msra.gmra.mrb[168].mxu0 %v12157_v1  ;;  %v3544_v29 = vadd.f32 %v12265_v17, %v3501_v60  ;;  %v10065_v11 = vld [vmem:[#allocation3 + $0x48] sm:$0xff]   ;;  %v10124_v16 = vld [vmem:[#allocation3 + $0x1d8] sm:$0xff]   ;;  %v5029_v54 = vshrl.u32 %v12237_v0, 16 }
 0x2ad   : > { %v4271_v27 = vsel %vm12005_vm10, 0, %v4270_v62  ;;  %v3499_v14 = vadd.f32 %v3431_v8, %v13574_v26  ;;  %v10113_v13 = vld [vmem:[#allocation3 + $0x188] sm:$0xff]   ;;  %v3884_v57 = vor.u32 %v3882_v23, %v3881_v32  ;;  %v3886_v25 = vrot.slane %v3881_v32, 4  ;;  %9152 = vmatpush3.bf16.msra.mxu0 %v10104_v24  ;;  %v10119_v39 = vld [vmem:[#allocation3 + $0x1d0] sm:$0xff]   ;;  %v4156_v60 = vld [vmem:[#allocation2 + $0x9c] sm:$0xf] }
 0x2ae   : > { %4272 = vst [vmem:[#allocation2 + $0x68] sm:$0x1] %v4271_v27  ;;  %v4224_v48 = vld [vmem:[#allocation2 + $0x84] sm:$0x1]  ;;  %v3579_v38 = vmax.f32 %v3543_v7, 0.0  ;;  %v3577_v61 = vmax.f32 %v3541_v56, 0.0  ;;  %v5229_v49 = vsel %vm709_vm0, %v5227_v18, %v5228_v51  ;;  %9153 = vmatprep.subr.bf16.mxu0 %v10112_v47 }
 0x2af   : > { %v4225_v30 = vsel %vm11961_vm8, 0, %v4224_v48  ;;  %v4221_v1 = vld [vmem:[#allocation2 + $0x78] sm:$0x1]  ;;  %v3580_v4 = vmax.f32 %v3544_v29, 0.0  ;;  %v3542_v3 = vadd.f32 %v12265_v17, %v3499_v14  ;;  %v10068_v37 = vld [vmem:[#allocation3 + $0x8] sm:$0xff]   ;;  %v3885_v40 = vsel %vm11967_vm9, %v3877_v33, %v3884_v57  ;;  %9460 = vmatmul.mubr.bf16.vlgmr.msra.gmra.mrb[156].mxu1 %v5229_v49  ;;  %v10071_v59 = vld [vmem:[#allocation3 + $0x50] sm:$0xff]  }
 0x2b0   : > { %4226 = vst [vmem:[#allocation2 + $0x84] sm:$0x1] %v4225_v30  ;;  %v4222_v15 = vsel %vm11961_vm8, 0, %v4221_v1  ;;  %v4140_v52 = vsel %vm11961_vm8, %v3886_v25, %v4139_v20  ;;  %v8623_v63 = vpack.c.bf16 %v3579_v38, %v3579_v38  ;;  %v10120_v55 = vld [vmem:[#allocation3 + $0x190] sm:$0xff]   ;;  %4138 = vst [vmem:[#allocation2 + $0x7c] sm:$0xf] %v3885_v40  ;;  %v8621_v45 = vpack.c.bf16 %v3577_v61, %v3577_v61 }
 0x2b1   : > { %4223 = vst [vmem:[#allocation2 + $0x78] sm:$0x1] %v4222_v15  ;;  %v4279_v23 = vld [vmem:[#allocation2 + $0x8c] sm:$0x1]  ;;  %4141 = vst [vmem:[#allocation2 + $0x80] sm:$0x1] %v4140_v52  ;;  %v8624_v28 = vpack.c.bf16 %v3580_v4, %v3580_v4  ;;  %9016 = vmatpush3.bf16.msra.mxu1 %v10062_v6  ;;  %9154 = vmatpush3.bf16.msra.mxu0 %v10113_v13 }
 0x2b2   : > { %v3578_v5 = vmax.f32 %v3542_v3, 0.0  ;;  %v5231_v24 = vrot.slane %v12260_v41, 1  ;;  %v4280_v33 = vsel %vm12005_vm10, 0, %v4279_v23  ;;  %v3922_v2 = vshrl.u32 %v8623_v63, 16  ;;  %9017 = vmatprep.subr.bf16.mxu1 %v10065_v11  ;;  %9155 = vmatprep.subr.bf16.mxu0 %v10119_v39  ;;  %v4149_v32 = vld [vmem:[#allocation2 + $0x90] sm:$0xf] }
 0x2b3   : > { %v3925_v20 = vshll.u32 %v8623_v63, 16  ;;  %4281 = vst [vmem:[#allocation2 + $0x8c] sm:$0x1] %v4280_v33  ;;  %v3905_v42 = vshrl.u32 %v8621_v45, 16  ;;  %v3908_v8 = vshll.u32 %v8621_v45, 16  ;;  %v3930_v18 = vshrl.u32 %v8624_v28, 16 }
 0x2b4   : > { %v3933_v47 = vshll.u32 %v8624_v28, 16  ;;  %v3924_v62 = vrot.slane %v3922_v2, 7  ;;  %v4160_v6 = vld [vmem:[#allocation2 + $0xa4] sm:$0x1]  ;;  %v8622_v7 = vpack.c.bf16 %v3578_v5, %v3578_v5  ;;  %v5232_v56 = vsel %vm709_vm0, %v5230_v21, %v5231_v24  ;;  %v10074_v27 = vld [vmem:[#allocation3 + $0x10] sm:$0xff]   ;;  %v10077_v38 = vld [vmem:[#allocation3 + $0x58] sm:$0xff]  }
 0x2b5   : > { %v5031_v51 = vshll.u32 %v12237_v0, 16  ;;  %v3907_v29 = vrot.slane %v3905_v42, 7  ;;  %v3932_v26 = vrot.slane %v3930_v18, 7  ;;  %9463 = vmatprep.mubr.bf16.mxu1 %v5232_v56  ;;  %v5036_v14 = vshll.u32 %v12243_v50, 16  ;;  %9018 = vmatpush3.bf16.msra.mxu1 %v10068_v37  ;;  %v10125_v61 = vld [vmem:[#allocation3 + $0x198] sm:$0xff]   ;;  %v10128_v3 = vld [vmem:[#allocation3 + $0x1e0] sm:$0xff]  }
 0x2b6   : > { %v5041_v11 = vshrl.u32 %v12251_v9, 16  ;;  %v3927_v13 = vor.u32 %v3925_v20, %v3924_v62  ;;  %v3928_v48 = vrot.slane %v3924_v62, 4  ;;  %v3913_v57 = vshrl.u32 %v8622_v7, 16  ;;  %9019 = vmatprep.subr.bf16.mxu1 %v10071_v59  ;;  %9156 = vmatpush3.bf16.msra.mxu0 %v10120_v55  ;;  %v4153_v4 = vld [vmem:[#allocation2 + $0x98] sm:$0x1]  ;;  %v10080_v45 = vld [vmem:[#allocation3 + $0x18] sm:$0xff]  }
 0x2b7   : > { %v3916_v25 = vshll.u32 %v8622_v7, 16  ;;  %v3910_v21 = vor.u32 %v3908_v8, %v3907_v29  ;;  %v3911_v39 = vrot.slane %v3907_v29, 4  ;;  %v3935_v30 = vor.u32 %v3933_v47, %v3932_v26  ;;  %9157 = vmatprep.subr.bf16.mxu0 %v10124_v16  ;;  %v12298_v52 = vld [vmem:[#allocation2 + $0x38] ss:$0 sps:$4 sm:$0x11]   ;;  %v12309_v33 = vld [vmem:[#allocation2 + $0x30] sm:$0xff]  }
 0x2b8   : > { %v3937_v1 = vrot.slane %v3932_v26, 4  ;;  %v4276_v49 = vld [vmem:[#allocation2 + $0x80] sm:$0x1]  ;;  %v4157_v50 = vsel %vm11952_vm7, %v3927_v13, %v4156_v60  ;;  %v3915_v37 = vrot.slane %v3913_v57, 7  ;;  %v5033_v15 = vrot.slane %v5031_v51, 1  ;;  %v10083_v20 = vld [vmem:[#allocation3 + $0x60] sm:$0xff]  }
 0x2b9   : > { %v5038_v40 = vrot.slane %v5036_v14, 1  ;;  %v4277_v63 = vsel %vm12005_vm10, 0, %v4276_v49  ;;  %4158 = vst [vmem:[#allocation2 + $0x9c] sm:$0xf] %v4157_v50  ;;  %v4150_v59 = vsel %vm11952_vm7, %v3910_v21, %v4149_v32  ;;  %v3936_v55 = vsel %vm11967_vm9, %v3928_v48, %v3935_v30  ;;  %9020 = vmatpush3.bf16.msra.mxu1 %v10074_v27  ;;  %v13575_v42 = vld [vmem:[#allocation32_spill] sm:$0xff]  ;;  %v13576_v18 = vld [vmem:[#allocation18_spill] sm:$0xff] }
 0x2ba   : > { %v4161_v23 = vsel %vm11961_vm8, %v3937_v1, %v4160_v6  ;;  %4278 = vst [vmem:[#allocation2 + $0x80] sm:$0x1] %v4277_v63  ;;  %4151 = vst [vmem:[#allocation2 + $0x90] sm:$0xf] %v4150_v59  ;;  %v3918_v28 = vor.u32 %v3916_v25, %v3915_v37  ;;  %v3920_v5 = vrot.slane %v3915_v37, 4  ;;  %v5034_v24 = vor.u32 %v5033_v15, %v5029_v54  ;;  %v13577_v62 = vld [vmem:[#allocation33_spill] sm:$0xff] }
 0x2bb   : > { %4159 = vst [vmem:[#allocation2 + $0xa0] sm:$0xf] %v3936_v55  ;;  %4162 = vst [vmem:[#allocation2 + $0xa4] sm:$0x1] %v4161_v23  ;;  %v5043_v16 = vshll.u32 %v12251_v9, 16  ;;  %9021 = vmatprep.subr.bf16.mxu1 %v10077_v38  ;;  %9158 = vmatpush3.bf16.msra.mxu0 %v10125_v61  ;;  %v5048_v60 = vshll.u32 %v12260_v41, 16  ;;  %v3452_v8 = vadd.f32 %v12141_v36, %v13575_v42 }
 0x2bc   : > { %v12311_v2 = vld [vmem:[#allocation2 + $0x44] ss:$0 sps:$4 sm:$0x11]   ;;  %v3444_v47 = vadd.f32 %v12143_v58, %v13576_v18  ;;  %v3455_v54 = vadd.f32 %v12147_v43, %v13577_v62  ;;  %v12320_v32 = vld [vmem:[#allocation2 + $0x3c] sm:$0xff]   ;;  %9159 = vmatprep.subr.bf16.mxu0 %v10128_v3  ;;  %v3919_v7 = vsel %vm11967_vm9, %v3911_v39, %v3918_v28  ;;  %v4154_v56 = vsel %vm11961_vm8, %v3920_v5, %v4153_v4  ;;  %v13578_v27 = vld [vmem:[#allocation12_spill] sm:$0xff] }
 0x2bd   : > { %v10129_v6 = vld [vmem:[#allocation3 + $0x1a0] sm:$0xff]   ;;  %v5039_v41 = vsel %vm474_vm1, %v5034_v24, %v5038_v40  ;;  %v5045_v51 = vrot.slane %v5043_v16, 1  ;;  %v10130_v36 = vld [vmem:[#allocation3 + $0x1e8] sm:$0xff]   ;;  %4152 = vst [vmem:[#allocation2 + $0x94] sm:$0xf] %v3919_v7  ;;  %v5050_v58 = vrot.slane %v5048_v60, 1  ;;  %v3504_v43 = vadd.f32 %v3452_v8, %v13578_v27  ;;  %9022 = vmatpush3.bf16.msra.mxu1 %v10080_v45 }
 0x2be   : > { %4155 = vst [vmem:[#allocation2 + $0x98] sm:$0x1] %v4154_v56  ;;  %5521 = vmatprep.mubr.bf16.mxu0 %v5039_v41  ;;  %v13579_v29 = vld [vmem:[#allocation13_spill] sm:$0xff]  ;;  %v13580_v14 = vld [vmem:[#allocation14_spill] sm:$0xff]  ;;  %v13581_v57 = vld [vmem:[#allocation23_spill] sm:$0xff]  ;;  %v5233_v38 = vrot.slane %v12309_v33, 1  ;;  %9023 = vmatprep.subr.bf16.mxu1 %v10083_v20 }
 0x2bf   : > { %v3502_v26 = vadd.f32 %v3444_v47, %v13579_v29  ;;  %v3505_v13 = vadd.f32 %v3455_v54, %v13580_v14  ;;  %5522 = vmatmul.mubr.bf16.gmra.mrb[172].mxu0 %v12237_v0  ;;  %v5046_v48 = vor.u32 %v5045_v51, %v5041_v11  ;;  %v3447_v25 = vadd.f32 %v12159_v46, %v13581_v57  ;;  %v10086_v21 = vld [vmem:[#allocation3 + $0x20] sm:$0xff]   ;;  %v10089_v4 = vld [vmem:[#allocation3 + $0x68] sm:$0xff]   ;;  %v10135_v63 = vld [vmem:[#allocation3 + $0x1f0] sm:$0xff]  }
 0x2c0   : > { %v5234_v61 = vrot.slane %v12298_v52, 1  ;;  %v3547_v39 = vadd.f32 %v12265_v17, %v3504_v43  ;;  %v5236_v0 = vrot.slane %v12320_v32, 1  ;;  %9160 = vmatpush3.bf16.msra.mxu0 %v10129_v6  ;;  %v10132_v11 = vld [vmem:[#allocation3 + $0x1a8] sm:$0xff]   ;;  %v4230_v3 = vld [vmem:[#allocation2 + $0x9c] sm:$0x1]  ;;  %v5237_v15 = vrot.slane %v12311_v2, 1 }
 0x2c1   : > { %v3545_v30 = vadd.f32 %v12265_v17, %v3502_v26  ;;  %v3548_v1 = vadd.f32 %v12265_v17, %v3505_v13  ;;  %v5051_v46 = vsel %vm474_vm1, %v5046_v48, %v5050_v58  ;;  %v13582_v49 = vld [vmem:[#allocation17_spill] sm:$0xff]  ;;  %v10092_v40 = vld [vmem:[#allocation3 + $0x28] sm:$0xff]   ;;  %9161 = vmatprep.subr.bf16.mxu0 %v10130_v36  ;;  %v4231_v59 = vsel %vm11961_vm8, 0, %v4230_v3  ;;  %v4227_v55 = vld [vmem:[#allocation2 + $0x90] sm:$0x1]  ;;  %9024 = vmatpush3.bf16.msra.mxu1 %v10086_v21 }
 0x2c2   : > { %v3503_v50 = vadd.f32 %v3447_v25, %v13582_v49  ;;  %v5235_v37 = vsel %vm709_vm0, %v5233_v38, %v5234_v61  ;;  %v4285_v23 = vld [vmem:[#allocation2 + $0xa4] sm:$0x1]  ;;  %5529 = vmatprep.mubr.bf16.mxu0 %v5051_v46  ;;  %v3583_v45 = vmax.f32 %v3547_v39, 0.0  ;;  %v13583_v28 = vld [vmem:[#allocation36_spill] sm:$0xff]  ;;  %v10095_v20 = vld [vmem:[#allocation3 + $0x70] sm:$0xff]   ;;  %v4228_v60 = vsel %vm11961_vm8, 0, %v4227_v55  ;;  %9025 = vmatprep.subr.bf16.mxu1 %v10089_v4 }
 0x2c3   : > { %9464 = vmatmul.mubr.bf16.gmra.mrb[160].mxu1 %v5235_v37  ;;  %v3468_v5 = vadd.f32 %v12187_v10, %v13583_v28  ;;  %v13584_v24 = vld [vmem:[#allocation34_spill] sm:$0xff]  ;;  %4232 = vst [vmem:[#allocation2 + $0x9c] sm:$0x1] %v4231_v59  ;;  %v4286_v42 = vsel %vm12005_vm10, 0, %v4285_v23  ;;  %v3581_v8 = vmax.f32 %v3545_v30, 0.0  ;;  %v3584_v18 = vmax.f32 %v3548_v1, 0.0 }
 0x2c4   : > { %v3460_v16 = vadd.f32 %v12192_v44, %v13584_v24  ;;  %4229 = vst [vmem:[#allocation2 + $0x90] sm:$0x1] %v4228_v60  ;;  %4287 = vst [vmem:[#allocation2 + $0xa4] sm:$0x1] %v4286_v42  ;;  %v8627_v47 = vpack.c.bf16 %v3583_v45, %v3583_v45  ;;  %v3546_v62 = vadd.f32 %v12265_v17, %v3503_v50  ;;  %v5053_v44 = vshrl.u32 %v12309_v33, 16  ;;  %v10136_v54 = vld [vmem:[#allocation3 + $0x1b0] sm:$0xff]  }
 0x2c5   : > { %v5238_v10 = vsel %vm709_vm0, %v5236_v0, %v5237_v15  ;;  %9162 = vmatpush3.bf16.msra.mxu0 %v10132_v11  ;;  %v10139_v6 = vld [vmem:[#allocation3 + $0x1f8] sm:$0xff]   ;;  %v4282_v7 = vld [vmem:[#allocation2 + $0x98] sm:$0x1]  ;;  %v8625_v56 = vpack.c.bf16 %v3581_v8, %v3581_v8  ;;  %v8628_v41 = vpack.c.bf16 %v3584_v18, %v3584_v18  ;;  %v5055_v51 = vshll.u32 %v12309_v33, 16  ;;  %v10098_v58 = vld [vmem:[#allocation3 + $0x30] sm:$0xff]   ;;  %9026 = vmatpush3.bf16.msra.mxu1 %v10092_v40 }
 0x2c6   : > { %9467 = vmatprep.mubr.bf16.mxu1 %v5238_v10  ;;  %v5060_v36 = vshll.u32 %v12298_v52, 16  ;;  %9163 = vmatprep.subr.bf16.mxu0 %v10135_v63  ;;  %v4283_v27 = vsel %vm12005_vm10, 0, %v4282_v7  ;;  %v3956_v43 = vshrl.u32 %v8627_v47, 16  ;;  %v3959_v29 = vshll.u32 %v8627_v47, 16  ;;  %v10101_v14 = vld [vmem:[#allocation3 + $0x78] sm:$0xff]   ;;  %v13586_v49 = vld [vmem:[#allocation29_spill] sm:$0xff] }
 0x2c7   : > { %v3582_v26 = vmax.f32 %v3546_v62, 0.0  ;;  %4284 = vst [vmem:[#allocation2 + $0x98] sm:$0x1] %v4283_v27  ;;  %v4170_v13 = vld [vmem:[#allocation2 + $0xb4] sm:$0xf]  ;;  %v3939_v48 = vshrl.u32 %v8625_v56, 16  ;;  %5530 = vmatmul.mubr.bf16.gmra.mrb[176].mxu0 %v12251_v9  ;;  %9027 = vmatprep.subr.bf16.mxu1 %v10095_v20  ;;  %v3506_v50 = vadd.f32 %v3460_v16, %v13586_v49 }
 0x2c8   : > { %v3942_v57 = vshll.u32 %v8625_v56, 16  ;;  %v3964_v25 = vshrl.u32 %v8628_v41, 16  ;;  %v3967_v38 = vshll.u32 %v8628_v41, 16  ;;  %v3958_v61 = vrot.slane %v3956_v43, 7  ;;  %v10140_v30 = vld [vmem:[#allocation3 + $0x1b8] sm:$0xff]   ;;  %v12367_v20 = vld [vmem:[#allocation2 + $0x48] sm:$0xff]  }
 0x2c9   : > { %v8626_v52 = vpack.c.bf16 %v3582_v26, %v3582_v26  ;;  %v5057_v21 = vrot.slane %v5055_v51, 1  ;;  %v5062_v39 = vrot.slane %v5060_v36, 1  ;;  %9164 = vmatpush3.bf16.msra.mxu0 %v10136_v54  ;;  %v3941_v1 = vrot.slane %v3939_v48, 7  ;;  %v4163_v0 = vld [vmem:[#allocation2 + $0xa8] sm:$0xf]  ;;  %v13585_v3 = vld [vmem:[#allocation24_spill] sm:$0xff]  ;;  %9028 = vmatpush3.bf16.msra.mxu1 %v10098_v58 }
 0x2ca   : > { %v3966_v4 = vrot.slane %v3964_v25, 7  ;;  %v4174_v11 = vld [vmem:[#allocation2 + $0xbc] sm:$0x1]  ;;  %v3508_v46 = vadd.f32 %v3468_v5, %v13585_v3  ;;  %9165 = vmatprep.subr.bf16.mxu0 %v10139_v6  ;;  %v3961_v37 = vor.u32 %v3959_v29, %v3958_v61  ;;  %v3962_v15 = vrot.slane %v3958_v61, 4  ;;  %v10102_v59 = vld [vmem:[#allocation3 + $0x38] sm:$0xff]   ;;  %9029 = vmatprep.subr.bf16.mxu1 %v10101_v14  ;;  %v13588_v27 = vld [vmem:[#allocation35_spill] sm:$0xff] }
 0x2cb   : > { %v3947_v9 = vshrl.u32 %v8626_v52, 16  ;;  %v3950_v40 = vshll.u32 %v8626_v52, 16  ;;  %v12365_v63 = vld [vmem:[#allocation2 + $0x50] ss:$0 sps:$4 sm:$0x11]   ;;  %v3944_v55 = vor.u32 %v3942_v57, %v3941_v1  ;;  %v3945_v23 = vrot.slane %v3941_v1, 4 }
 0x2cc   : > { %v3969_v45 = vor.u32 %v3967_v38, %v3966_v4  ;;  %v3971_v28 = vrot.slane %v3966_v4, 4  ;;  %v4167_v24 = vld [vmem:[#allocation2 + $0xb0] sm:$0x1]  ;;  %v12369_v60 = vld [vmem:[#allocation3 + $0x80] sm:$0xff]   ;;  %v4171_v5 = vsel %vm11952_vm7, %v3961_v37, %v4170_v13  ;;  %v5058_v42 = vor.u32 %v5057_v21, %v5053_v44  ;;  %v13590_v25 = vld [vmem:[#allocation31_spill] sm:$0xff] }
 0x2cd   : > { %v3949_v16 = vrot.slane %v3947_v9, 7  ;;  %v3551_v8 = vadd.f32 %v12265_v17, %v3508_v46  ;;  %v12374_v18 = vld [vmem:[#allocation2 + $0x54] sm:$0xff]   ;;  %v12376_v47 = vld [vmem:[#allocation2 + $0x5c] ss:$0 sps:$4 sm:$0x11]   ;;  %9166 = vmatpush3.bf16.msra.mxu0 %v10140_v30  ;;  %v4164_v62 = vsel %vm11952_vm7, %v3944_v55, %v4163_v0  ;;  %v3549_v44 = vadd.f32 %v12265_v17, %v3506_v50  ;;  %9030 = vmatpush3.bf16.msra.mxu1 %v10102_v59 }
 0x2ce   : > { %4172 = vst [vmem:[#allocation2 + $0xb4] sm:$0xf] %v4171_v5  ;;  %v3970_v10 = vsel %vm11967_vm9, %v3962_v15, %v3969_v45  ;;  %v4175_v54 = vsel %vm11961_vm8, %v3971_v28, %v4174_v11  ;;  %4165 = vst [vmem:[#allocation2 + $0xa8] sm:$0xf] %v4164_v62  ;;  %v5063_v56 = vsel %vm474_vm1, %v5058_v42, %v5062_v39  ;;  %v13587_v36 = vld [vmem:[#allocation37_spill] sm:$0xff]  ;;  %v5239_v29 = vrot.slane %v12367_v20, 1 }
 0x2cf   : > { %4173 = vst [vmem:[#allocation2 + $0xb8] sm:$0xf] %v3970_v10  ;;  %4176 = vst [vmem:[#allocation2 + $0xbc] sm:$0x1] %v4175_v54  ;;  %v3952_v6 = vor.u32 %v3950_v40, %v3949_v16  ;;  %v3954_v7 = vrot.slane %v3949_v16, 4  ;;  %v3587_v41 = vmax.f32 %v3551_v8, 0.0  ;;  %5537 = vmatprep.mubr.bf16.mxu0 %v5063_v56  ;;  %v3471_v58 = vadd.f32 %v12206_v31, %v13587_v36 }
 0x2d0   : > { %v3585_v51 = vmax.f32 %v3549_v44, 0.0  ;;  %v3463_v43 = vadd.f32 %v12210_v19, %v13588_v27  ;;  %v5240_v48 = vrot.slane %v12365_v63, 1  ;;  %5538 = vmatmul.mubr.bf16.gmra.mrb[180].mxu0 %v12309_v33  ;;  %9491 = vmatprep.subr.bf16.mxu1 %v12369_v60  ;;  %v13589_v19 = vld [vmem:[#allocation30_spill] sm:$0xff]  ;;  %v5242_v21 = vrot.slane %v12374_v18, 1  ;;  %v4184_v1 = vld [vmem:[#allocation2 + $0xcc] sm:$0xf] }
 0x2d1   : > { %v3953_v26 = vsel %vm11967_vm9, %v3945_v23, %v3952_v6  ;;  %v4168_v14 = vsel %vm11961_vm8, %v3954_v7, %v4167_v24  ;;  %v8631_v13 = vpack.c.bf16 %v3587_v41, %v3587_v41  ;;  %v3509_v57 = vadd.f32 %v3471_v58, %v13589_v19  ;;  %v4177_v49 = vld [vmem:[#allocation2 + $0xc0] sm:$0xf]  ;;  %v12409_v15 = vld [vmem:[#allocation2 + $0x68] ss:$0 sps:$4 sm:$0x11]  }
 0x2d2   : > { %4166 = vst [vmem:[#allocation2 + $0xac] sm:$0xf] %v3953_v26  ;;  %4169 = vst [vmem:[#allocation2 + $0xb0] sm:$0x1] %v4168_v14  ;;  %v8629_v31 = vpack.c.bf16 %v3585_v51, %v3585_v51  ;;  %v3507_v38 = vadd.f32 %v3463_v43, %v13590_v25  ;;  %v5241_v52 = vsel %vm709_vm0, %v5239_v29, %v5240_v48  ;;  %v5243_v39 = vrot.slane %v12376_v47, 1  ;;  %v12423_v5 = vld [vmem:[#allocation2 + $0x60] sm:$0xff]  }
 0x2d3   : > { %v3990_v61 = vshrl.u32 %v8631_v13, 16  ;;  %v3993_v30 = vshll.u32 %v8631_v13, 16  ;;  %v3552_v33 = vadd.f32 %v12265_v17, %v3509_v57  ;;  %9468 = vmatmul.mubr.bf16.gmra.mrb[164].mxu1 %v5241_v52  ;;  %v5067_v37 = vshll.u32 %v12320_v32, 16  ;;  %v12427_v10 = vld [vmem:[#allocation2 + $0x74] ss:$0 sps:$4 sm:$0x11]  }
 0x2d4   : > { %v3973_v0 = vshrl.u32 %v8629_v31, 16  ;;  %v3550_v4 = vadd.f32 %v12265_v17, %v3507_v38  ;;  %v3976_v46 = vshll.u32 %v8629_v31, 16  ;;  %v5244_v50 = vsel %vm709_vm0, %v5242_v21, %v5243_v39  ;;  %v12415_v17 = vld [vmem:[#allocation2 + $0x6c] sm:$0xff]   ;;  %v12433_v41 = vld [vmem:[#allocation2 + $0x80] ss:$0 sps:$4 sm:$0x11]  }
 0x2d5   : > { %v4236_v11 = vld [vmem:[#allocation2 + $0xb4] sm:$0x1]  ;;  %v12405_v3 = vrot.slane %v3990_v61, 7  ;;  %v4233_v40 = vld [vmem:[#allocation2 + $0xa8] sm:$0x1]  ;;  %9471 = vmatprep.mubr.bf16.mxu1 %v5244_v50  ;;  %v5065_v24 = vshrl.u32 %v12320_v32, 16 }
 0x2d6   : > { %v4237_v9 = vsel %vm11961_vm8, 0, %v4236_v11  ;;  %v4291_v59 = vld [vmem:[#allocation2 + $0xbc] sm:$0x1]  ;;  %v12413_v55 = vrot.slane %v3973_v0, 7  ;;  %v4234_v23 = vsel %vm11961_vm8, 0, %v4233_v40  ;;  %v3588_v8 = vmax.f32 %v3552_v33, 0.0 }
 0x2d7   : > { %4238 = vst [vmem:[#allocation2 + $0xb4] sm:$0x1] %v4237_v9  ;;  %v4292_v45 = vsel %vm12005_vm10, 0, %v4291_v59  ;;  %v3995_v28 = vor.u32 %v3993_v30, %v12405_v3  ;;  %4235 = vst [vmem:[#allocation2 + $0xa8] sm:$0x1] %v4234_v23  ;;  %v3996_v16 = vrot.slane %v12405_v3, 4 }
 0x2d8   : > { %4293 = vst [vmem:[#allocation2 + $0xbc] sm:$0x1] %v4292_v45  ;;  %v3978_v42 = vor.u32 %v3976_v46, %v12413_v55  ;;  %v3586_v62 = vmax.f32 %v3550_v4, 0.0  ;;  %v3979_v6 = vrot.slane %v12413_v55, 4  ;;  %v5069_v7 = vrot.slane %v5067_v37, 1  ;;  %v12447_v52 = vld [vmem:[#allocation2 + $0x84] sm:$0xff]  }
 0x2d9   : > { %v4288_v54 = vld [vmem:[#allocation2 + $0xb0] sm:$0x1]  ;;  %v4185_v44 = vsel %vm11952_vm7, %v3995_v28, %v4184_v1  ;;  %v5072_v56 = vshll.u32 %v12311_v2, 16  ;;  %v8632_v58 = vpack.c.bf16 %v3588_v8, %v3588_v8  ;;  %v5245_v26 = vrot.slane %v12423_v5, 1  ;;  %v12441_v2 = vld [vmem:[#allocation2 + $0x78] sm:$0xff]  }
 0x2da   : > { %v4289_v51 = vsel %vm12005_vm10, 0, %v4288_v54  ;;  %4186 = vst [vmem:[#allocation2 + $0xcc] sm:$0xf] %v4185_v44  ;;  %v4178_v36 = vsel %vm11952_vm7, %v3978_v42, %v4177_v49  ;;  %v8630_v27 = vpack.c.bf16 %v3586_v62, %v3586_v62  ;;  %v5070_v43 = vor.u32 %v5069_v7, %v5065_v24  ;;  %v4188_v57 = vld [vmem:[#allocation2 + $0xd4] sm:$0x1] }
 0x2db   : > { %4290 = vst [vmem:[#allocation2 + $0xb0] sm:$0x1] %v4289_v51  ;;  %4179 = vst [vmem:[#allocation2 + $0xc0] sm:$0xf] %v4178_v36  ;;  %v5074_v29 = vrot.slane %v5072_v56, 1  ;;  %v5246_v14 = vrot.slane %v12409_v15, 1 }
 0x2dc   : > { %v3998_v13 = vshrl.u32 %v8632_v58, 16  ;;  %v4001_v48 = vshll.u32 %v8632_v58, 16  ;;  %v3981_v31 = vshrl.u32 %v8630_v27, 16  ;;  %v5248_v19 = vrot.slane %v12415_v17, 1  ;;  %v4181_v9 = vld [vmem:[#allocation2 + $0xc8] sm:$0x1] }
 0x2dd   : > { %v3984_v35 = vshll.u32 %v8630_v27, 16  ;;  %v5075_v25 = vsel %vm474_vm1, %v5070_v43, %v5074_v29  ;;  %v5247_v38 = vsel %vm709_vm0, %v5245_v26, %v5246_v14  ;;  %v5249_v61 = vrot.slane %v12427_v10, 1  ;;  %v12449_v21 = vld [vmem:[#allocation2 + $0x8c] ss:$0 sps:$4 sm:$0x11]   ;;  %v12481_v56 = vld [vmem:[#allocation2 + $0x90] sm:$0xff]  }
 0x2de   : > { %v4000_v39 = vrot.slane %v3998_v13, 7  ;;  %v3983_v30 = vrot.slane %v3981_v31, 7  ;;  %5545 = vmatprep.mubr.bf16.mxu0 %v5075_v25  ;;  %9472 = vmatmul.mubr.bf16.gmra.mrb[168].mxu1 %v5247_v38  ;;  %v5079_v1 = vshll.u32 %v12367_v20, 16  ;;  %v5084_v0 = vshll.u32 %v12365_v63, 16  ;;  %v12490_v14 = vld [vmem:[#allocation2 + $0x9c] sm:$0xff]  }
 0x2df   : > { %v5250_v33 = vsel %vm709_vm0, %v5248_v19, %v5249_v61  ;;  %5546 = vmatmul.mubr.bf16.gmra.mrb[184].mxu0 %v12320_v32  ;;  %v5077_v4 = vshrl.u32 %v12367_v20, 16  ;;  %v5251_v11 = vrot.slane %v12441_v2, 1  ;;  %v5252_v3 = vrot.slane %v12433_v41, 1  ;;  %v12483_v51 = vld [vmem:[#allocation2 + $0xa4] ss:$0 sps:$4 sm:$0x11]  }
 0x2e0   : > { %v4003_v46 = vor.u32 %v4001_v48, %v4000_v39  ;;  %v4005_v49 = vrot.slane %v4000_v39, 4  ;;  %v3986_v50 = vor.u32 %v3984_v35, %v3983_v30  ;;  %v3988_v37 = vrot.slane %v3983_v30, 4  ;;  %9475 = vmatprep.mubr.bf16.mxu1 %v5250_v33  ;;  %v12505_v33 = vld [vmem:[#allocation2] sm:$0xff]  }
 0x2e1   : > { %v4242_v40 = vld [vmem:[#allocation2 + $0xcc] sm:$0x1]  ;;  %v5081_v59 = vrot.slane %v5079_v1, 1  ;;  %v5086_v55 = vrot.slane %v5084_v0, 1  ;;  %v5254_v63 = vrot.slane %v12447_v52, 1  ;;  %v5255_v23 = vrot.slane %v12449_v21, 1 }
 0x2e2   : > { %v4243_v32 = vsel %vm11961_vm8, 0, %v4242_v40  ;;  %v4239_v45 = vld [vmem:[#allocation2 + $0xc0] sm:$0x1]  ;;  %v4004_v28 = vsel %vm11967_vm9, %v3996_v16, %v4003_v46  ;;  %v4189_v24 = vsel %vm11961_vm8, %v4005_v49, %v4188_v57  ;;  %v3987_v42 = vsel %vm11967_vm9, %v3979_v6, %v3986_v50  ;;  %v12473_v16 = vld [vmem:[#allocation2 + $0x98] ss:$0 sps:$4 sm:$0x11]  }
 0x2e3   : > { %4244 = vst [vmem:[#allocation2 + $0xcc] sm:$0x1] %v4243_v32  ;;  %v4240_v8 = vsel %vm11961_vm8, 0, %v4239_v45  ;;  %4187 = vst [vmem:[#allocation2 + $0xd0] sm:$0xf] %v4004_v28  ;;  %v4182_v62 = vsel %vm11961_vm8, %v3988_v37, %v4181_v9  ;;  %v5082_v54 = vor.u32 %v5081_v59, %v5077_v4  ;;  %v5253_v44 = vsel %vm709_vm0, %v5251_v11, %v5252_v3  ;;  %v12508_v4 = vld [vmem:[#allocation2 + $0xa8] sm:$0xff]  }
 0x2e4   : > { %4190 = vst [vmem:[#allocation2 + $0xd4] sm:$0x1] %v4189_v24  ;;  %4180 = vst [vmem:[#allocation2 + $0xc4] sm:$0xf] %v3987_v42  ;;  %v5091_v12 = vshll.u32 %v12374_v18, 16  ;;  %v5096_v6 = vshll.u32 %v12376_v47, 16  ;;  %v5256_v53 = vsel %vm709_vm0, %v5254_v63, %v5255_v23 }
 0x2e5   : > { %4308 = vst [vmem:[#allocation2 + $0xcc] sm:$0xf] %v13559_v34  ;;  %4241 = vst [vmem:[#allocation2 + $0xc0] sm:$0x1] %v4240_v8  ;;  %v5087_v7 = vsel %vm474_vm1, %v5082_v54, %v5086_v55  ;;  %v5089_v36 = vshrl.u32 %v12374_v18, 16  ;;  %v5103_v43 = vshll.u32 %v12423_v5, 16 }
 0x2e6   : > { %4309 = vst [vmem:[#allocation2 + $0xd0] sm:$0xf] %v13559_v34  ;;  %4183 = vst [vmem:[#allocation2 + $0xc8] sm:$0x1] %v4182_v62  ;;  %5553 = vmatprep.mubr.bf16.mxu0 %v5087_v7  ;;  %9476 = vmatmul.mubr.bf16.gmra.mrb[172].mxu1 %v5253_v44  ;;  %v5093_v58 = vrot.slane %v5091_v12, 1  ;;  %v5098_v27 = vrot.slane %v5096_v6, 1 }
 0x2e7   : > { %9479 = vmatprep.mubr.bf16.mxu1 %v5256_v53  ;;  %5554 = vmatmul.mubr.bf16.gmra.mrb[188].mxu0 %v12367_v20  ;;  %v5258_v47 = vrot.slane %v12473_v16, 1  ;;  %v5108_v29 = vshll.u32 %v12409_v15, 16  ;;  %v5105_v13 = vrot.slane %v5103_v43, 1  ;;  %v5257_v48 = vrot.slane %v12481_v56, 1  ;;  %v12510_v11 = vld [vmem:[#allocation2 + $0xb4] sm:$0xff]   ;;  %v12535_v54 = vld [vmem:[#allocation2 + $0xc] sm:$0xff]  }
 0x2e8   : > { %v5094_v26 = vor.u32 %v5093_v58, %v5089_v36  ;;  %v5101_v31 = vshrl.u32 %v12423_v5, 16  ;;  %v12494_v19 = vld [vmem:[#allocation2 + $0xb0] ss:$0 sps:$4 sm:$0x11]   ;;  %v5261_v25 = vrot.slane %v12483_v51, 1  ;;  %v5115_v30 = vshll.u32 %v12415_v17, 16 }
 0x2e9   : > { %v5110_v20 = vrot.slane %v5108_v29, 1  ;;  %v5259_v61 = vsel %vm709_vm0, %v5257_v48, %v5258_v47  ;;  %v5260_v0 = vrot.slane %v12490_v14, 1  ;;  %v12512_v3 = vld [vmem:[#allocation2 + $0x8] ss:$0 sps:$4 sm:$0x11]   ;;  %v5120_v22 = vshll.u32 %v12427_v10, 16 }
 0x2ea   : > { %v5099_v35 = vsel %vm474_vm1, %v5094_v26, %v5098_v27  ;;  %v5106_v39 = vor.u32 %v5105_v13, %v5101_v31  ;;  %v12515_v49 = vld [vmem:[#allocation2 + $0xbc] ss:$0 sps:$4 sm:$0x11]   ;;  %v5117_v37 = vrot.slane %v5115_v30, 1  ;;  %v4506_v9 = vshll.u32 %v12505_v33, 16 }
 0x2eb   : > { %v4297_v57 = vld [vmem:[#allocation2 + $0xd4] sm:$0x1]  ;;  %5561 = vmatprep.mubr.bf16.mxu0 %v5099_v35  ;;  %v5262_v46 = vsel %vm709_vm0, %v5260_v0, %v5261_v25  ;;  %v5263_v40 = vrot.slane %v12508_v4, 1  ;;  %v5113_v59 = vshrl.u32 %v12415_v17, 16  ;;  %v5266_v55 = vrot.slane %v12510_v11, 1 }
 0x2ec   : > { %v4298_v38 = vsel %vm12005_vm10, 0, %v4297_v57  ;;  %v5111_v50 = vsel %vm474_vm1, %v5106_v39, %v5110_v20  ;;  %v5267_v63 = vrot.slane %v12515_v49, 1  ;;  %v5122_v10 = vrot.slane %v5120_v22, 1  ;;  %v12532_v8 = vld [vmem:[#allocation2 + $0xc0] sm:$0xff]   ;;  %v12550_v57 = vld [vmem:[#allocation2 + $0x18] sm:$0xff]  }
 0x2ed   : > { %v4294_v15 = vld [vmem:[#allocation2 + $0xc8] sm:$0x1]  ;;  %4299 = vst [vmem:[#allocation2 + $0xd4] sm:$0x1] %v4298_v38  ;;  %v5127_v23 = vshll.u32 %v12441_v2, 16  ;;  %v5118_v32 = vor.u32 %v5117_v37, %v5113_v59  ;;  %v4504_v45 = vshrl.u32 %v12505_v33, 16 }
 0x2ee   : > { %v4295_v1 = vsel %vm12005_vm10, 0, %v4294_v15  ;;  %4310 = vst [vmem:[#allocation2 + $0xd4] sm:$0x1] %v13559_v34  ;;  %9480 = vmatmul.mubr.bf16.gmra.mrb[176].mxu1 %v5259_v61  ;;  %v5264_v34 = vrot.slane %v12494_v19, 1  ;;  %v4511_v28 = vshll.u32 %v12512_v3, 16  ;;  %v4508_v42 = vrot.slane %v4506_v9, 1 }
 0x2ef   : > { %4296 = vst [vmem:[#allocation2 + $0xc8] sm:$0x1] %v4295_v1  ;;  %9483 = vmatprep.mubr.bf16.mxu1 %v5262_v46  ;;  %5562 = vmatmul.mubr.bf16.gmra.mrb[192].mxu0 %v12374_v18  ;;  %v5268_v62 = vsel %vm709_vm0, %v5266_v55, %v5267_v63  ;;  %v5123_v44 = vsel %vm474_vm1, %v5118_v32, %v5122_v10  ;;  %v5129_v6 = vrot.slane %v5127_v23, 1  ;;  %v5132_v7 = vshll.u32 %v12433_v41, 16  ;;  %v10114_v22 = vld [vmem:[#allocation3 + $0x88] sm:$0xff]   ;;  %v10121_v10 = vld [vmem:[#allocation3 + $0x90] sm:$0xff]  }
 0x2f0   : > { %5569 = vmatprep.mubr.bf16.mxu0 %v5111_v50  ;;  %v5265_v18 = vsel %vm709_vm0, %v5263_v40, %v5264_v34  ;;  %v4509_v53 = vor.u32 %v4508_v42, %v4504_v45  ;;  %v4513_v36 = vrot.slane %v4511_v28, 1  ;;  %v5269_v58 = vrot.slane %v12532_v8, 1  ;;  %v12543_v43 = vld [vmem:[#allocation2 + $0x14] ss:$0 sps:$4 sm:$0x11]   ;;  %v12564_v37 = vld [vmem:[#allocation2 + $0x24] sm:$0xff]  }
 0x2f1   : > { %v5125_v27 = vshrl.u32 %v12441_v2, 16  ;;  %v4518_v47 = vshll.u32 %v12535_v54, 16  ;;  %v5134_v26 = vrot.slane %v5132_v7, 1  ;;  %v5139_v48 = vshll.u32 %v12447_v52, 16  ;;  %v10131_v42 = vld [vmem:[#allocation3 + $0x98] sm:$0xff]   ;;  %v10145_v7 = vld [vmem:[#allocation3 + $0xa0] sm:$0xff]  }
 0x2f2   : > { %v4514_v13 = vsel %vm474_vm1, %v4509_v53, %v4513_v36  ;;  %v4523_v31 = vshll.u32 %v12543_v43, 16  ;;  %v4516_v25 = vshrl.u32 %v12535_v54, 16  ;;  %v5144_v38 = vshll.u32 %v12449_v21, 16  ;;  %v12557_v61 = vld [vmem:[#allocation2 + $0x20] ss:$0 sps:$4 sm:$0x11]  }
 0x2f3   : > { %v5130_v29 = vor.u32 %v5129_v6, %v5125_v27  ;;  %v4520_v41 = vrot.slane %v4518_v47, 1  ;;  %v5141_v20 = vrot.slane %v5139_v48, 1  ;;  %v5137_v15 = vshrl.u32 %v12447_v52, 16  ;;  %v12571_v63 = vld [vmem:[#allocation2 + $0x2c] ss:$0 sps:$4 sm:$0x11]  }
 0x2f4   : > { %v4525_v30 = vrot.slane %v4523_v31, 1  ;;  %v4530_v1 = vshll.u32 %v12550_v57, 16  ;;  %v5146_v46 = vrot.slane %v5144_v38, 1  ;;  %v4535_v21 = vshll.u32 %v12557_v61, 16 }
 0x2f5   : > { %v5135_v35 = vsel %vm474_vm1, %v5130_v29, %v5134_v26  ;;  %v4521_v39 = vor.u32 %v4520_v41, %v4516_v25  ;;  %v5142_v0 = vor.u32 %v5141_v20, %v5137_v15  ;;  %v4528_v40 = vshrl.u32 %v12550_v57, 16  ;;  %v12586_v29 = vld [vmem:[#allocation2 + $0x38] ss:$0 sps:$4 sm:$0x11]   ;;  %v10154_v41 = vld [vmem:[#allocation3 + $0xa8] sm:$0xff]  }
 0x2f6   : > { %v12530_v24 = vld [vmem:[#allocation2 + $0xc8] ss:$0 sps:$4 sm:$0x11]   ;;  %9484 = vmatmul.mubr.bf16.gmra.mrb[180].mxu1 %v5265_v18  ;;  %v4532_v34 = vrot.slane %v4530_v1, 1  ;;  %v5156_v55 = vshll.u32 %v12473_v16, 16  ;;  %v4537_v18 = vrot.slane %v4535_v21, 1 }
 0x2f7   : > { %9487 = vmatprep.mubr.bf16.mxu1 %v5268_v62  ;;  %5570 = vmatmul.mubr.bf16.gmra.mrb[196].mxu0 %v12423_v5  ;;  %v5270_v12 = vrot.slane %v12530_v24, 1  ;;  %v4526_v50 = vsel %vm474_vm1, %v4521_v39, %v4525_v30  ;;  %v5147_v9 = vsel %vm474_vm1, %v5142_v0, %v5146_v46  ;;  %v5149_v32 = vshrl.u32 %v12481_v56, 16  ;;  %v12593_v25 = vld [vmem:[#allocation2 + $0x3c] sm:$0xff]   ;;  %v10163_v30 = vld [vmem:[#allocation3 + $0xb0] sm:$0xff]   ;;  %v10172_v21 = vld [vmem:[#allocation3 + $0xb8] sm:$0xff]  }
 0x2f8   : > { %5577 = vmatprep.mubr.bf16.mxu0 %v5123_v44  ;;  %v4533_v23 = vor.u32 %v4532_v34, %v4528_v40  ;;  %v5158_v45 = vrot.slane %v5156_v55, 1  ;;  %v5163_v28 = vshll.u32 %v12490_v14, 16  ;;  %v4547_v44 = vshll.u32 %v12571_v63, 16  ;;  %v12599_v1 = vld [vmem:[#allocation2 + $0x44] ss:$0 sps:$4 sm:$0x11]  }
 0x2f9   : > { %v5271_v5 = vsel %vm709_vm0, %v5269_v58, %v5270_v12  ;;  %v12579_v12 = vld [vmem:[#allocation2 + $0x30] sm:$0xff]   ;;  %v4540_v6 = vshrl.u32 %v12564_v37, 16  ;;  %v5168_v58 = vshll.u32 %v12483_v51, 16  ;;  %v5180_v39 = vshll.u32 %v12494_v19, 16 }
 0x2fa   : > { %v4538_v16 = vsel %vm474_vm1, %v4533_v23, %v4537_v18  ;;  %v5165_v36 = vrot.slane %v5163_v28, 1  ;;  %v4549_v47 = vrot.slane %v4547_v44, 1  ;;  %v4554_v26 = vshll.u32 %v12579_v12, 16  ;;  %v12622_v44 = vld [vmem:[#allocation2 + $0x54] sm:$0xff]  }
 0x2fb   : > { %v5170_v48 = vrot.slane %v5168_v58, 1  ;;  %v4552_v38 = vshrl.u32 %v12579_v12, 16  ;;  %v5187_v34 = vshll.u32 %v12510_v11, 16  ;;  %v4571_v40 = vshll.u32 %v12599_v1, 16 }
 0x2fc   : > { %v4556_v31 = vrot.slane %v4554_v26, 1  ;;  %v5192_v18 = vshll.u32 %v12515_v49, 16  ;;  %v12632_v26 = vld [vmem:[#allocation2 + $0x18] sm:$0xff]  }
 0x2fd   : > { %v5189_v23 = vrot.slane %v5187_v34, 1  ;;  %v4573_v28 = vrot.slane %v4571_v40, 1  ;;  %v6463_v34 = vshrl.u32 %v12632_v26, 16 }
 0x2fe   : > { %9488 = vmatmul.mubr.bf16.gmra.mrb[184].mxu1 %v5271_v5  ;;  %v5161_v5 = vshrl.u32 %v12490_v14, 16  ;;  %v4557_v0 = vor.u32 %v4556_v31, %v4552_v38  ;;  %v5197_v31 = vshrl.u32 %v12532_v8, 16  ;;  %v4721_v38 = vrot.slane %v12571_v63, 1  ;;  %v10142_v63 = vld [vmem:[#allocation2 + $0x68] ss:$0 sps:$4 sm:$0x11]  }
 0x2ff   : > { %5578 = vmatmul.mubr.bf16.gmra.mrb[200].mxu0 %v12415_v17  ;;  %5979 = vmatprep.mubr.bf16.mxu1 %v4514_v13  ;;  %v5151_v17 = vshll.u32 %v12481_v56, 16 }
 0x300   : > { %5585 = vmatprep.mubr.bf16.mxu0 %v5135_v35  ;;  %v5166_v13 = vor.u32 %v5165_v36, %v5161_v5  ;;  %v4559_v35 = vshll.u32 %v12586_v29, 16  ;;  %v4712_v36 = vrot.slane %v12512_v3, 1  ;;  %v10134_v3 = vld [vmem:[#allocation2 + $0x5c] ss:$0 sps:$4 sm:$0x11]  }
 0x301   : > { %v5153_v59 = vrot.slane %v5151_v17, 1  ;;  %v5173_v17 = vshrl.u32 %v12508_v4, 16 }
 0x302   : > { %v5171_v20 = vsel %vm474_vm1, %v5166_v13, %v5170_v48  ;;  %v4561_v46 = vrot.slane %v4559_v35, 1  ;;  %v4714_v48 = vrot.slane %v12535_v54, 1 }
 0x304   : > { %v4562_v19 = vsel %vm474_vm1, %v4557_v0, %v4561_v46  ;;  %v4595_v46 = vshll.u32 %v10134_v3, 16 }
 0x306   : > { %5980 = vmatmul.mubr.bf16.vlgmr.msra.gmra.mrb[188].mxu1 %v12505_v33 }
 0x307   : > { %5987 = vmatprep.mubr.bf16.mxu1 %v4526_v50  ;;  %9492 = vmatpush3.bf16.msra.mxu1 %v12369_v60  ;;  %v4542_v60 = vshll.u32 %v12564_v37, 16  ;;  %v5182_v50 = vrot.slane %v5180_v39, 1  ;;  %v12651_v39 = vld [vmem:[#allocation2 + $0x20] ss:$0 sps:$4 sm:$0x11]  }
 0x308   : > { %5586 = vmatmul.mubr.bf16.gmra.mrb[204].mxu0 %v12441_v2  ;;  %9493 = vmatprep.subr.bf16.mxu1 %v10114_v22  ;;  %v5154_v2 = vor.u32 %v5153_v59, %v5149_v32  ;;  %v12607_v59 = vld [vmem:[#allocation2 + $0x48] sm:$0xff]   ;;  %v12613_v32 = vld [vmem:[#allocation3 + $0x200] sm:$0xff]  }
 0x309   : > { %5593 = vmatprep.mubr.bf16.mxu0 %v5147_v9  ;;  %v4544_v62 = vrot.slane %v4542_v60, 1  ;;  %v5185_v60 = vshrl.u32 %v12510_v11, 16  ;;  %v4576_v58 = vshrl.u32 %v12607_v59, 16 }
 0x30a   : > { %v5159_v53 = vsel %vm474_vm1, %v5154_v2, %v5158_v45  ;;  %v12616_v2 = vld [vmem:[#allocation2 + $0x50] ss:$0 sps:$4 sm:$0x11]  }
 0x30b   : > { %9494 = vmatpush3.bf16.msra.mxu1 %v10114_v22  ;;  %v4545_v27 = vor.u32 %v4544_v62, %v4540_v6  ;;  %v4566_v22 = vshll.u32 %v12593_v25, 16  ;;  %v5194_v62 = vrot.slane %v5192_v18, 1  ;;  %v4583_v49 = vshll.u32 %v12616_v2, 16 }
 0x30c   : > { %9495 = vmatprep.subr.bf16.mxu1 %v10121_v10  ;;  %v4732_v18 = vrot.slane %v12622_v44, 1 }
 0x30d   : > { %v4550_v51 = vsel %vm474_vm1, %v4545_v27, %v4549_v47  ;;  %v4568_v9 = vrot.slane %v4566_v22, 1  ;;  %v5204_v47 = vshll.u32 %v12530_v24, 16  ;;  %v4718_v24 = vrot.slane %v12557_v61, 1 }
 0x30e   : > { %5988 = vmatmul.mubr.bf16.gmra.mrb[192].mxu1 %v12535_v54  ;;  %v4723_v61 = vrot.slane %v12579_v12, 1 }
 0x30f   : > { %5995 = vmatprep.mubr.bf16.mxu1 %v4538_v16  ;;  %9496 = vmatpush3.bf16.msra.mxu1 %v10121_v10  ;;  %v4564_v10 = vshrl.u32 %v12593_v25, 16  ;;  %v5190_v16 = vor.u32 %v5189_v23, %v5185_v60  ;;  %v4733_v60 = vrot.slane %v10134_v3, 1 }
 0x310   : > { %5594 = vmatmul.mubr.bf16.gmra.mrb[208].mxu0 %v12447_v52  ;;  %9497 = vmatprep.subr.bf16.mxu1 %v10131_v42  ;;  %v5175_v52 = vshll.u32 %v12508_v4, 16 }
 0x311   : > { %5601 = vmatprep.mubr.bf16.mxu0 %v5159_v53  ;;  %v4569_v45 = vor.u32 %v4568_v9, %v4564_v10  ;;  %v4711_v53 = vrot.slane %v12505_v33, 1  ;;  %v5195_v5 = vsel %vm474_vm1, %v5190_v16, %v5194_v62  ;;  %v4715_v33 = vrot.slane %v12543_v43, 1  ;;  %v12675_v10 = vld [vmem:[#allocation2 + $0x24] sm:$0xff]   ;;  %v10144_v62 = vld [vmem:[#allocation2 + $0x2c] ss:$0 sps:$4 sm:$0x11]  }
 0x312   : > { %v5177_v15 = vrot.slane %v5175_v52, 1  ;;  %v4590_v52 = vshll.u32 %v12622_v44, 16  ;;  %v4720_v43 = vrot.slane %v12564_v37, 1 }
 0x313   : > { %9498 = vmatpush3.bf16.msra.mxu1 %v10131_v42  ;;  %v4578_v42 = vshll.u32 %v12607_v59, 16  ;;  %v4574_v6 = vsel %vm474_vm1, %v4569_v45, %v4573_v28  ;;  %v12635_v13 = vsel %vm709_vm0, %v4711_v53, %v4712_v36  ;;  %v12644_v35 = vsel %vm709_vm0, %v4714_v48, %v4715_v33  ;;  %v12693_v36 = vld [vmem:[#allocation2 + $0x6c] sm:$0xff]  }
 0x314   : > { %9499 = vmatprep.subr.bf16.mxu1 %v10145_v7  ;;  %v4592_v0 = vrot.slane %v4590_v52, 1  ;;  %v12659_v22 = vsel %vm709_vm0, %v4720_v43, %v4721_v38  ;;  %v4736_v28 = vrot.slane %v10142_v63, 1  ;;  %v4607_v53 = vshll.u32 %v10142_v63, 16  ;;  %v12700_v33 = vld [vmem:[#allocation2 + $0x30] sm:$0xff]  }
 0x315   : > { %v6482_v48 = vshll.u32 %v10144_v62, 16 }
 0x316   : > { %5996 = vmatmul.mubr.bf16.gmra.mrb[196].mxu1 %v12550_v57  ;;  %v4609_v52 = vrot.slane %v4607_v53, 1  ;;  %v12748_v53 = vld [vmem:[#allocation2 + $0x8c] ss:$0 sps:$4 sm:$0x11]  }
 0x317   : > { %6003 = vmatprep.mubr.bf16.mxu1 %v4550_v51  ;;  %9500 = vmatpush3.bf16.msra.mxu1 %v10145_v7  ;;  %v4580_v7 = vrot.slane %v4578_v42, 1  ;;  %v4585_v51 = vrot.slane %v4583_v49, 1  ;;  %v12687_v42 = vsel %vm709_vm0, %v4732_v18, %v4733_v60  ;;  %v6477_v49 = vshll.u32 %v12675_v10, 16 }
 0x318   : > { %5602 = vmatmul.mubr.bf16.gmra.mrb[212].mxu0 %v12481_v56  ;;  %9501 = vmatprep.subr.bf16.mxu1 %v10154_v41  ;;  %v5178_v56 = vor.u32 %v5177_v15, %v5173_v17  ;;  %v12656_v17 = vld [vmem:[#allocation2 + $0x60] sm:$0xff]  }
 0x319   : > { %5609 = vmatprep.mubr.bf16.mxu0 %v5171_v20  ;;  %v5206_v20 = vrot.slane %v5204_v47, 1  ;;  %v4735_v45 = vrot.slane %v12656_v17, 1 }
 0x31a   : > { %v5183_v55 = vsel %vm474_vm1, %v5178_v56, %v5182_v50  ;;  %v4726_v50 = vrot.slane %v12593_v25, 1 }
 0x31b   : > { %9502 = vmatpush3.bf16.msra.mxu1 %v10154_v41  ;;  %v4717_v41 = vrot.slane %v12550_v57, 1  ;;  %v6465_v57 = vshll.u32 %v12632_v26, 16 }
 0x31c   : > { %9503 = vmatprep.subr.bf16.mxu1 %v10163_v30 }
 0x31d   : > { %v12647_v54 = vsel %vm709_vm0, %v4717_v41, %v4718_v24  ;;  %v6467_v40 = vrot.slane %v6465_v57, 1  ;;  %v12702_v41 = vld [vmem:[#allocation2 + $0x74] ss:$0 sps:$4 sm:$0x11]   ;;  %v6475_v24 = vshrl.u32 %v12675_v10, 16  ;;  %v6670_v57 = vrot.slane %v12632_v26, 1 }
 0x31e   : > { %6004 = vmatmul.mubr.bf16.gmra.mrb[200].mxu1 %v12564_v37  ;;  %v4619_v38 = vshll.u32 %v12702_v41, 16 }
 0x31f   : > { %6011 = vmatprep.mubr.bf16.mxu1 %v4562_v19  ;;  %9504 = vmatpush3.bf16.msra.mxu1 %v10163_v30  ;;  %v4724_v30 = vrot.slane %v12586_v29, 1  ;;  %v4588_v29 = vshrl.u32 %v12622_v44, 16  ;;  %v4730_v19 = vrot.slane %v12616_v2, 1  ;;  %v4597_v2 = vrot.slane %v4595_v46, 1 }
 0x320   : > { %5610 = vmatmul.mubr.bf16.gmra.mrb[216].mxu0 %v12490_v14  ;;  %9505 = vmatprep.subr.bf16.mxu1 %v10172_v21  ;;  %v5199_v14 = vshll.u32 %v12532_v8, 16  ;;  %v4612_v46 = vshrl.u32 %v12693_v36, 16 }
 0x321   : > { %5617 = vmatprep.mubr.bf16.mxu0 %v5183_v55  ;;  %v12664_v56 = vsel %vm709_vm0, %v4723_v61, %v4724_v30  ;;  %v6470_v55 = vshll.u32 %v12651_v39, 16  ;;  %v6671_v61 = vrot.slane %v12651_v39, 1  ;;  %v6673_v30 = vrot.slane %v12675_v10, 1 }
 0x322   : > { %v5201_v27 = vrot.slane %v5199_v14, 1  ;;  %v6468_v14 = vor.u32 %v6467_v40, %v6463_v34  ;;  %v4621_v34 = vrot.slane %v4619_v38, 1 }
 0x323   : > { %9506 = vmatpush3.bf16.msra.mxu1 %v10172_v21  ;;  %v4729_v21 = vrot.slane %v12607_v59, 1  ;;  %v6472_v16 = vrot.slane %v6470_v55, 1  ;;  %v12733_v55 = vld [vmem:[#allocation2 + $0x44] ss:$0 sps:$4 sm:$0x11]  }
 0x324   : > { %9539 = vmatprep.subr.bf16.mxu1 %v12613_v32  ;;  %v5202_v15 = vor.u32 %v5201_v27, %v5197_v31  ;;  %v4600_v27 = vshrl.u32 %v12656_v17, 16  ;;  %v6484_v31 = vrot.slane %v6482_v48, 1 }
 0x325   : > { %v12682_v23 = vsel %vm709_vm0, %v4729_v21, %v4730_v19  ;;  %v6473_v47 = vsel %vm474_vm1, %v6468_v14, %v6472_v16  ;;  %v6487_v21 = vshrl.u32 %v12700_v33, 16  ;;  %v12730_v19 = vld [vmem:[#allocation2 + $0x80] ss:$0 sps:$4 sm:$0x11]   ;;  %v6506_v16 = vshll.u32 %v12733_v55, 16 }
 0x326   : > { %6012 = vmatmul.mubr.bf16.gmra.mrb[204].mxu1 %v12579_v12  ;;  %v4727_v12 = vrot.slane %v12599_v1, 1  ;;  %v5207_v9 = vsel %vm474_vm1, %v5202_v15, %v5206_v20  ;;  %v4602_v1 = vshll.u32 %v12656_v17, 16  ;;  %v12712_v15 = vld [vmem:[#allocation2 + $0x78] sm:$0xff]  }
 0x327   : > { %6019 = vmatprep.mubr.bf16.mxu1 %v4574_v6  ;;  %v12691_v6 = vsel %vm709_vm0, %v4735_v45, %v4736_v28  ;;  %v4624_v28 = vshrl.u32 %v12712_v15, 16 }
 0x328   : > { %5618 = vmatmul.mubr.bf16.gmra.mrb[220].mxu0 %v12508_v4  ;;  %v4581_v4 = vor.u32 %v4580_v7, %v4576_v58  ;;  %v4604_v7 = vrot.slane %v4602_v1, 1 }
 0x329   : > { %5625 = vmatprep.mubr.bf16.mxu0 %v5195_v5  ;;  %v6479_v5 = vrot.slane %v6477_v49, 1 }
 0x32a   : > { %v4586_v37 = vsel %vm474_vm1, %v4581_v4, %v4585_v51  ;;  %v4605_v3 = vor.u32 %v4604_v7, %v4600_v27  ;;  %v12706_v4 = vld [vmem:[#allocation2 + $0x38] ss:$0 sps:$4 sm:$0x11]  }
 0x32b   : > { %v6480_v51 = vor.u32 %v6479_v5, %v6475_v24 }
 0x32c   : > { %v4610_v20 = vsel %vm474_vm1, %v4605_v3, %v4609_v52  ;;  %v4643_v52 = vshll.u32 %v12748_v53, 16 }
 0x32d   : > { %v6485_v63 = vsel %vm474_vm1, %v6480_v51, %v6484_v31 }
 0x32e   : > { %6020 = vmatmul.mubr.bf16.gmra.mrb[208].mxu1 %v12593_v25  ;;  %v12678_v25 = vsel %vm709_vm0, %v4726_v50, %v4727_v12  ;;  %v12724_v12 = vsel %vm709_vm0, %v6670_v57, %v6671_v61  ;;  %v4645_v38 = vrot.slane %v4643_v52, 1  ;;  %v12766_v61 = vld [vmem:[#allocation2 + $0x98] ss:$0 sps:$4 sm:$0x11]  }
 0x32f   : > { %6027 = vmatprep.mubr.bf16.mxu1 %v4586_v37  ;;  %v6494_v37 = vshll.u32 %v12706_v4, 16 }
 0x330   : > { %5626 = vmatmul.mubr.bf16.gmra.mrb[224].mxu0 %v12510_v11  ;;  %v4593_v11 = vor.u32 %v4592_v0, %v4588_v29  ;;  %v6674_v0 = vrot.slane %v10144_v62, 1  ;;  %v12745_v62 = vld [vmem:[#allocation2 + $0x48] sm:$0xff]  }
 0x331   : > { %5633 = vmatprep.mubr.bf16.mxu0 %v5207_v9  ;;  %v6496_v40 = vrot.slane %v6494_v37, 1  ;;  %v6513_v5 = vshll.u32 %v12745_v62, 16  ;;  %v6511_v57 = vshrl.u32 %v12745_v62, 16  ;;  %v12769_v37 = vld [vmem:[#allocation2 + $0x5c] ss:$0 sps:$4 sm:$0x11]  }
 0x332   : > { %v4598_v58 = vsel %vm474_vm1, %v4593_v11, %v4597_v2  ;;  %v12727_v39 = vsel %vm709_vm0, %v6673_v30, %v6674_v0  ;;  %v4631_v11 = vshll.u32 %v12730_v19, 16  ;;  %v12739_v2 = vld [vmem:[#allocation2 + $0x84] sm:$0xff]  }
 0x333   : > { %v4636_v51 = vshrl.u32 %v12739_v2, 16  ;;  %v6515_v31 = vrot.slane %v6513_v5, 1  ;;  %v12793_v5 = vld [vmem:[#allocation2 + $0xa8] sm:$0xff]  }
 0x334   : > { %v4633_v49 = vrot.slane %v4631_v11, 1 }
 0x335   : > { %v6516_v0 = vor.u32 %v6515_v31, %v6511_v57  ;;  %v4674_v57 = vshll.u32 %v12793_v5, 16 }
 0x336   : > { %6028 = vmatmul.mubr.bf16.gmra.mrb[212].mxu1 %v12607_v59  ;;  %v4614_v59 = vshll.u32 %v12693_v36, 16 }
 0x337   : > { %6035 = vmatprep.mubr.bf16.mxu1 %v4598_v58  ;;  %v4638_v58 = vshll.u32 %v12739_v2, 16 }
 0x338   : > { %5634 = vmatmul.mubr.bf16.gmra.mrb[228].mxu0 %v12532_v8  ;;  %v6489_v8 = vshll.u32 %v12700_v33, 16  ;;  %v4616_v43 = vrot.slane %v4614_v59, 1  ;;  %v12757_v59 = vld [vmem:[#allocation2 + $0x90] sm:$0xff]  }
 0x339   : > { %6959 = vmatprep.mubr.bf16.mxu0 %v6473_v47  ;;  %v12751_v47 = vld [vmem:[#allocation2 + $0x50] ss:$0 sps:$4 sm:$0x11]   ;;  %v4640_v3 = vrot.slane %v4638_v58, 1  ;;  %v4650_v30 = vshll.u32 %v12757_v59, 16 }
 0x33a   : > { %v6491_v50 = vrot.slane %v6489_v8, 1  ;;  %v4617_v29 = vor.u32 %v4616_v43, %v4612_v46  ;;  %v6518_v8 = vshll.u32 %v12751_v47, 16 }
 0x33b   : > { %v4641_v43 = vor.u32 %v4640_v3, %v4636_v51  ;;  %v12799_v51 = vld [vmem:[#allocation2 + $0x6c] sm:$0xff]  }
 0x33c   : > { %v6492_v9 = vor.u32 %v6491_v50, %v6487_v21  ;;  %v4622_v18 = vsel %vm474_vm1, %v4617_v29, %v4621_v34  ;;  %v6520_v46 = vrot.slane %v6518_v8, 1  ;;  %v4652_v29 = vrot.slane %v4650_v30, 1  ;;  %v12775_v21 = vld [vmem:[#allocation2 + $0x9c] sm:$0xff]  }
 0x33d   : > { %v4646_v50 = vsel %vm474_vm1, %v4641_v43, %v4645_v38  ;;  %v4655_v34 = vshll.u32 %v12766_v61, 16  ;;  %v4660_v3 = vshrl.u32 %v12775_v21, 16  ;;  %v12802_v38 = vld [vmem:[#allocation2 + $0xb0] ss:$0 sps:$4 sm:$0x11]  }
 0x33e   : > { %6036 = vmatmul.mubr.bf16.gmra.mrb[216].mxu1 %v12622_v44  ;;  %v12721_v44 = vld [vmem:[#allocation2 + $0x3c] sm:$0xff]   ;;  %v6497_v45 = vsel %vm474_vm1, %v6492_v9, %v6496_v40  ;;  %v4648_v9 = vshrl.u32 %v12757_v59, 16 }
 0x33f   : > { %6043 = vmatprep.mubr.bf16.mxu1 %v4610_v20  ;;  %v6501_v1 = vshll.u32 %v12721_v44, 16  ;;  %v6499_v7 = vshrl.u32 %v12721_v44, 16  ;;  %v12763_v20 = vld [vmem:[#allocation2 + $0x54] sm:$0xff]   ;;  %v4657_v11 = vrot.slane %v4655_v34, 1  ;;  %v4679_v34 = vshll.u32 %v12802_v38, 16 }
 0x340   : > { %6960 = vmatmul.mubr.bf16.vlgmr.msra.gmra.mrb[232].mxu0 %v12632_v26  ;;  %v4626_v26 = vshll.u32 %v12712_v15, 16 }
 0x341   : > { %6967 = vmatprep.mubr.bf16.mxu0 %v6485_v63  ;;  %v6503_v14 = vrot.slane %v6501_v1, 1  ;;  %v6525_v63 = vshll.u32 %v12763_v20, 16  ;;  %v6530_v1 = vshll.u32 %v12769_v37, 16 }
 0x342   : > { %v4628_v60 = vrot.slane %v4626_v26, 1  ;;  %v6521_v26 = vsel %vm474_vm1, %v6516_v0, %v6520_v46  ;;  %v12805_v46 = vld [vmem:[#allocation2 + $0x74] ss:$0 sps:$4 sm:$0x11]  }
 0x343   : > { %v6504_v27 = vor.u32 %v6503_v14, %v6499_v7  ;;  %v6527_v40 = vrot.slane %v6525_v63, 1  ;;  %v4662_v14 = vshll.u32 %v12775_v21, 16  ;;  %v6549_v63 = vshll.u32 %v12799_v51, 16 }
 0x346   : > { %6044 = vmatmul.mubr.bf16.gmra.mrb[220].mxu1 %v12656_v17  ;;  %v4629_v17 = vor.u32 %v4628_v60, %v4624_v28  ;;  %v4653_v60 = vor.u32 %v4652_v29, %v4648_v9  ;;  %v12784_v28 = vld [vmem:[#allocation2 + $0xa4] ss:$0 sps:$4 sm:$0x11]   ;;  %v4676_v29 = vrot.slane %v4674_v57, 1 }
 0x347   : > { %6051 = vmatprep.mubr.bf16.mxu1 %v4622_v18  ;;  %v12781_v18 = vld [vmem:[#allocation2 + $0x60] sm:$0xff]  }
 0x348   : > { %6968 = vmatmul.mubr.bf16.gmra.mrb[236].mxu0 %v12675_v10  ;;  %v6508_v10 = vrot.slane %v6506_v16, 1  ;;  %v4634_v48 = vsel %vm474_vm1, %v4629_v17, %v4633_v49  ;;  %v6532_v17 = vrot.slane %v6530_v1, 1  ;;  %v12787_v49 = vld [vmem:[#allocation2 + $0x68] ss:$0 sps:$4 sm:$0x11]   ;;  %v6537_v7 = vshll.u32 %v12781_v18, 16 }
 0x349   : > { %6975 = vmatprep.mubr.bf16.mxu0 %v6497_v45  ;;  %v6523_v45 = vshrl.u32 %v12763_v20, 16  ;;  %v4658_v58 = vsel %vm474_vm1, %v4653_v60, %v4657_v11  ;;  %v6535_v43 = vshrl.u32 %v12781_v18, 16  ;;  %v6551_v1 = vrot.slane %v6549_v63, 1  ;;  %v12817_v11 = vld [vmem:[#allocation2 + $0x78] sm:$0xff]  }
 0x34a   : > { %v6509_v24 = vsel %vm474_vm1, %v6504_v27, %v6508_v10  ;;  %v4664_v27 = vrot.slane %v4662_v14, 1  ;;  %v4667_v10 = vshll.u32 %v12784_v28, 16  ;;  %v6539_v52 = vrot.slane %v6537_v7, 1 }
 0x34b   : > { %v6528_v16 = vor.u32 %v6527_v40, %v6523_v45  ;;  %v4672_v40 = vshrl.u32 %v12793_v5, 16  ;;  %v6554_v60 = vshll.u32 %v12805_v46, 16  ;;  %v4681_v14 = vrot.slane %v4679_v34, 1 }
 0x34c   : > { %v4665_v31 = vor.u32 %v4664_v27, %v4660_v3  ;;  %v4669_v8 = vrot.slane %v4667_v10, 1  ;;  %v6540_v30 = vor.u32 %v6539_v52, %v6535_v43  ;;  %v12823_v10 = vld [vmem:[#allocation2 + $0x80] ss:$0 sps:$4 sm:$0x11]  }
 0x34d   : > { %v4677_v45 = vor.u32 %v4676_v29, %v4672_v40  ;;  %v6556_v27 = vrot.slane %v6554_v60, 1  ;;  %v6566_v57 = vshll.u32 %v12823_v10, 16 }
 0x34e   : > { %6052 = vmatmul.mubr.bf16.gmra.mrb[224].mxu1 %v12693_v36 }
 0x34f   : > { %6059 = vmatprep.mubr.bf16.mxu1 %v4634_v48  ;;  %v6533_v48 = vsel %vm474_vm1, %v6528_v16, %v6532_v17  ;;  %v6547_v16 = vshrl.u32 %v12799_v51, 16  ;;  %v12820_v17 = vld [vmem:[#allocation2 + $0xbc] ss:$0 sps:$4 sm:$0x11]   ;;  %v4682_v3 = vsel %vm474_vm1, %v4677_v45, %v4681_v14  ;;  %v6568_v34 = vrot.slane %v6566_v57, 1 }
 0x350   : > { %6976 = vmatmul.mubr.bf16.gmra.mrb[240].mxu0 %v12700_v33 }
 0x351   : > { %6983 = vmatprep.mubr.bf16.mxu0 %v6509_v24  ;;  %v6542_v24 = vshll.u32 %v12787_v49, 16 }
 0x353   : > { %v6544_v0 = vrot.slane %v6542_v24, 1  ;;  %v4691_v24 = vshll.u32 %v12820_v17, 16 }
 0x355   : > { %v6545_v9 = vsel %vm474_vm1, %v6540_v30, %v6544_v0  ;;  %v12833_v30 = vld [vmem:[#allocation2 + $0x84] sm:$0xff]   ;;  %v4693_v63 = vrot.slane %v4691_v24, 1 }
 0x356   : > { %6060 = vmatmul.mubr.bf16.gmra.mrb[228].mxu1 %v12712_v15  ;;  %v6573_v40 = vshll.u32 %v12833_v30, 16 }
 0x357   : > { %6067 = vmatprep.mubr.bf16.mxu1 %v4646_v50  ;;  %v4670_v50 = vsel %vm474_vm1, %v4665_v31, %v4669_v8 }
 0x358   : > { %6984 = vmatmul.mubr.bf16.gmra.mrb[244].mxu0 %v12721_v44  ;;  %v6575_v45 = vrot.slane %v6573_v40, 1 }
 0x359   : > { %6991 = vmatprep.mubr.bf16.mxu0 %v6521_v26  ;;  %v12811_v26 = vld [vmem:[#allocation2 + $0xb4] sm:$0xff]  }
 0x35a   : > { %v4686_v7 = vshll.u32 %v12811_v26, 16  ;;  %v4684_v8 = vshrl.u32 %v12811_v26, 16 }
 0x35c   : > { %v4688_v52 = vrot.slane %v4686_v7, 1  ;;  %v6571_v7 = vshrl.u32 %v12833_v30, 16 }
 0x35e   : > { %6068 = vmatmul.mubr.bf16.gmra.mrb[232].mxu1 %v12739_v2  ;;  %v4689_v0 = vor.u32 %v4688_v52, %v4684_v8  ;;  %v12855_v8 = vld [vmem:[#allocation2 + $0x9c] sm:$0xff]  }
 0x35f   : > { %6075 = vmatprep.mubr.bf16.mxu1 %v4658_v58  ;;  %v6552_v58 = vor.u32 %v6551_v1, %v6547_v16  ;;  %v12844_v16 = vld [vmem:[#allocation2 + $0x90] sm:$0xff]  }
 0x360   : > { %6992 = vmatmul.mubr.bf16.gmra.mrb[248].mxu0 %v12745_v62  ;;  %v4694_v1 = vsel %vm474_vm1, %v4689_v0, %v4693_v63  ;;  %v10182_v0 = vld [vmem:[#allocation3 + $0x208] sm:$0xff]  }
 0x361   : > { %6999 = vmatprep.mubr.bf16.mxu0 %v6533_v48  ;;  %v6561_v48 = vshll.u32 %v12817_v11, 16  ;;  %v6557_v31 = vsel %vm474_vm1, %v6552_v58, %v6556_v27  ;;  %v6576_v58 = vor.u32 %v6575_v45, %v6571_v7 }
 0x363   : > { %v6563_v43 = vrot.slane %v6561_v48, 1  ;;  %v12847_v48 = vld [vmem:[#allocation2 + $0x98] ss:$0 sps:$4 sm:$0x11]  }
 0x366   : > { %6076 = vmatmul.mubr.bf16.gmra.mrb[236].mxu1 %v12757_v59 }
 0x367   : > { %6083 = vmatprep.mubr.bf16.mxu1 %v4670_v50  ;;  %v6559_v50 = vshrl.u32 %v12817_v11, 16 }
 0x368   : > { %7000 = vmatmul.mubr.bf16.gmra.mrb[252].mxu0 %v12763_v20 }
 0x369   : > { %7007 = vmatprep.mubr.bf16.mxu0 %v6545_v9  ;;  %v6564_v29 = vor.u32 %v6563_v43, %v6559_v50  ;;  %v12836_v9 = vld [vmem:[#allocation2 + $0x8c] ss:$0 sps:$4 sm:$0x11]   ;;  %v6583_v43 = vshrl.u32 %v12844_v16, 16 }
 0x36a   : > { %v6578_v14 = vshll.u32 %v12836_v9, 16 }
 0x36b   : > { %v6569_v60 = vsel %vm474_vm1, %v6564_v29, %v6568_v34  ;;  %v12858_v34 = vld [vmem:[#allocation2 + $0xa4] ss:$0 sps:$4 sm:$0x11]  }
 0x36c   : > { %v6580_v27 = vrot.slane %v6578_v14, 1 }
 0x36e   : > { %6084 = vmatmul.mubr.bf16.gmra.mrb[240].mxu1 %v12775_v21  ;;  %v6581_v52 = vsel %vm474_vm1, %v6576_v58, %v6580_v27  ;;  %v6602_v58 = vshll.u32 %v12858_v34, 16  ;;  %v10185_v27 = vld [vmem:[#allocation3 + $0x210] sm:$0xff]  }
 0x36f   : > { %6091 = vmatprep.mubr.bf16.mxu1 %v4682_v3  ;;  %v6585_v3 = vshll.u32 %v12844_v16, 16 }
 0x370   : > { %7008 = vmatmul.mubr.bf16.gmra.mrb[0].mxu0 %v12781_v18 }
 0x371   : > { %7015 = vmatprep.mubr.bf16.mxu0 %v6557_v31  ;;  %v6587_v24 = vrot.slane %v6585_v3, 1  ;;  %v6590_v31 = vshll.u32 %v12847_v48, 16  ;;  %v12871_v3 = vld [vmem:[#allocation2 + $0xa8] sm:$0xff]  }
 0x373   : > { %v6588_v50 = vor.u32 %v6587_v24, %v6583_v43  ;;  %v6592_v29 = vrot.slane %v6590_v31, 1  ;;  %v6604_v24 = vrot.slane %v6602_v58, 1  ;;  %v10188_v31 = vld [vmem:[#allocation3 + $0x218] sm:$0xff]  }
 0x375   : > { %v6593_v14 = vsel %vm474_vm1, %v6588_v50, %v6592_v29  ;;  %v10191_v50 = vld [vmem:[#allocation3 + $0x220] sm:$0xff]   ;;  %v6607_v29 = vshrl.u32 %v12871_v3, 16 }
 0x376   : > { %6092 = vmatmul.mubr.bf16.gmra.mrb[244].mxu1 %v12793_v5 }
 0x377   : > { %6099 = vmatprep.mubr.bf16.mxu1 %v4694_v1 }
 0x378   : > { %7016 = vmatmul.mubr.bf16.gmra.mrb[4].mxu0 %v12799_v51 }
 0x379   : > { %7023 = vmatprep.mubr.bf16.mxu0 %v6569_v60 }
 0x37e   : > { %6100 = vmatmul.mubr.bf16.gmra.mrb[248].mxu1 %v12811_v26 }
 0x37f   : > { %9507 = vmatprep.mubr.bf16.mxu1 %v12635_v13  ;;  %v8895_v57 = vpop.f32.mrb[168].mxu0  ;;  %v6597_v13 = vshll.u32 %v12855_v8, 16 }
 0x380   : > { %7024 = vmatmul.mubr.bf16.gmra.mrb[8].mxu0 %v12817_v11  ;;  %v8896_v63 = vpop.f32.mrb[169].mxu0 }
 0x381   : > { %7031 = vmatprep.mubr.bf16.mxu0 %v6581_v52  ;;  %v12861_v40 = vadd.f32 %v8896_v63, %v8895_v57  ;;  %v8898_v1 = vpop.f32.mrb[170].mxu0  ;;  %v6599_v7 = vrot.slane %v6597_v13, 1  ;;  %v12882_v63 = vld [vmem:[#allocation2 + $0xb4] sm:$0xff]  }
 0x382   : > { %v8899_v60 = vpop.f32.mrb[171].mxu0 }
 0x383   : > { %v12864_v45 = vadd.f32 %v8899_v60, %v8898_v1 }
 0x386   : > { %9508 = vmatmul.mubr.bf16.vlgmr.msra.gmra.mrb[156].mxu1 %v12644_v35  ;;  %v6595_v35 = vshrl.u32 %v12855_v8, 16 }
 0x387   : > { %9511 = vmatprep.mubr.bf16.mxu1 %v12647_v54  ;;  %9540 = vmatpush3.bf16.msra.mxu1 %v12613_v32  ;;  %v12874_v54 = vld [vmem:[#allocation2 + $0xb0] ss:$0 sps:$4 sm:$0x11]   ;;  %v6609_v32 = vshll.u32 %v12871_v3, 16 }
 0x388   : > { %7032 = vmatmul.mubr.bf16.gmra.mrb[12].mxu0 %v12833_v30  ;;  %9541 = vmatprep.subr.bf16.mxu1 %v10182_v0  ;;  %v6600_v52 = vor.u32 %v6599_v7, %v6595_v35  ;;  %v10194_v7 = vld [vmem:[#allocation3 + $0x228] sm:$0xff]  }
 0x389   : > { %7039 = vmatprep.mubr.bf16.mxu0 %v6593_v14  ;;  %v6611_v57 = vrot.slane %v6609_v32, 1  ;;  %v6621_v14 = vshll.u32 %v12882_v63, 16 }
 0x38a   : > { %v6605_v43 = vsel %vm474_vm1, %v6600_v52, %v6604_v24 }
 0x38b   : > { %9542 = vmatpush3.bf16.msra.mxu1 %v10182_v0  ;;  %v6614_v0 = vshll.u32 %v12874_v54, 16  ;;  %v6623_v32 = vrot.slane %v6621_v14, 1 }
 0x38c   : > { %9543 = vmatprep.subr.bf16.mxu1 %v10185_v27 }
 0x38d   : > { %v6616_v1 = vrot.slane %v6614_v0, 1 }
 0x38e   : > { %9512 = vmatmul.mubr.bf16.gmra.mrb[160].mxu1 %v12659_v22  ;;  %v12885_v22 = vld [vmem:[#allocation2 + $0xbc] ss:$0 sps:$4 sm:$0x11]  }
 0x38f   : > { %9515 = vmatprep.mubr.bf16.mxu1 %v12664_v56  ;;  %9544 = vmatpush3.bf16.msra.mxu1 %v10185_v27  ;;  %13591 = vst [vmem:[#allocation15_spill] sm:$0xff] %v12885_v22  ;;  %v6612_v56 = vor.u32 %v6611_v57, %v6607_v29  ;;  %v10195_v57 = vld [vmem:[#allocation3 + $0x230] sm:$0xff]  }
 0x390   : > { %7040 = vmatmul.mubr.bf16.gmra.mrb[16].mxu0 %v12844_v16  ;;  %9545 = vmatprep.subr.bf16.mxu1 %v10188_v31  ;;  %v12900_v29 = vld [vmem:[#allocation2 + $0xc8] ss:$0 sps:$4 sm:$0x11]  }
 0x391   : > { %7047 = vmatprep.mubr.bf16.mxu0 %v6605_v43  ;;  %v6617_v24 = vsel %vm474_vm1, %v6612_v56, %v6616_v1  ;;  %v12897_v43 = vld [vmem:[#allocation2 + $0xc0] sm:$0xff]   ;;  %13592 = vst [vmem:[#allocation16_spill] sm:$0xff] %v12900_v29  ;;  %v10198_v56 = vld [vmem:[#allocation3 + $0x238] sm:$0xff]  }
 0x392   : > { %v8901_v13 = vpop.f32.mrb[172].mxu0 }
 0x393   : > { %9546 = vmatpush3.bf16.msra.mxu1 %v10188_v31  ;;  %v8902_v60 = vpop.f32.mrb[173].mxu0  ;;  %v6626_v31 = vshll.u32 %v12885_v22, 16 }
 0x394   : > { %9547 = vmatprep.subr.bf16.mxu1 %v10191_v50  ;;  %v12888_v58 = vadd.f32 %v8902_v60, %v8901_v13  ;;  %v8904_v27 = vpop.f32.mrb[174].mxu0  ;;  %v6633_v60 = vshll.u32 %v12897_v43, 16 }
 0x395   : > { %v8905_v35 = vpop.f32.mrb[175].mxu0 }
 0x396   : > { %9516 = vmatmul.mubr.bf16.gmra.mrb[164].mxu1 %v12678_v25  ;;  %v12892_v52 = vadd.f32 %v8905_v35, %v8904_v27  ;;  %v6619_v25 = vshrl.u32 %v12882_v63, 16  ;;  %v12906_v35 = vld [vmem:[#allocation2 + $0xcc] sm:$0xff]  }
 0x397   : > { %9519 = vmatprep.mubr.bf16.mxu1 %v12682_v23  ;;  %9548 = vmatpush3.bf16.msra.mxu1 %v10191_v50  ;;  %v6628_v50 = vrot.slane %v6626_v31, 1  ;;  %v6638_v31 = vshll.u32 %v12900_v29, 16  ;;  %v6643_v22 = vshrl.u32 %v12906_v35, 16 }
 0x398   : > { %7048 = vmatmul.mubr.bf16.gmra.mrb[20].mxu0 %v12855_v8  ;;  %9549 = vmatprep.subr.bf16.mxu1 %v10194_v7  ;;  %v6624_v23 = vor.u32 %v6623_v32, %v6619_v25  ;;  %v6635_v32 = vrot.slane %v6633_v60, 1  ;;  %v4739_v25 = vrot.slane %v12702_v41, 1 }
 0x399   : > { %7055 = vmatprep.mubr.bf16.mxu0 %v6617_v24 }
 0x39a   : > { %v8907_v0 = vpop.f32.mrb[176].mxu0 }
 0x39b   : > { %9550 = vmatpush3.bf16.msra.mxu1 %v10194_v7  ;;  %v8908_v13 = vpop.f32.mrb[177].mxu0  ;;  %v6629_v7 = vsel %vm474_vm1, %v6624_v23, %v6628_v50  ;;  %v6640_v50 = vrot.slane %v6638_v31, 1  ;;  %v4745_v31 = vrot.slane %v12748_v53, 1  ;;  %v4751_v53 = vrot.slane %v12784_v28, 1 }
 0x39c   : > { %9551 = vmatprep.subr.bf16.mxu1 %v10195_v57  ;;  %v12903_v1 = vadd.f32 %v8908_v13, %v8907_v0  ;;  %v8910_v14 = vpop.f32.mrb[178].mxu0  ;;  %v6631_v0 = vshrl.u32 %v12897_v43, 16  ;;  %v12917_v13 = vld [vmem:[#allocation2 + $0xd4] ss:$0 sps:$4 sm:$0x11]  }
 0x39d   : > { %v8911_v27 = vpop.f32.mrb[179].mxu0 }
 0x39e   : > { %9520 = vmatmul.mubr.bf16.gmra.mrb[168].mxu1 %v12687_v42  ;;  %v12909_v24 = vadd.f32 %v8911_v27, %v8910_v14  ;;  %v4742_v42 = vrot.slane %v12730_v19, 1  ;;  %v4741_v14 = vrot.slane %v12712_v15, 1  ;;  %v6636_v23 = vor.u32 %v6635_v32, %v6631_v0 }
 0x39f   : > { %9523 = vmatprep.mubr.bf16.mxu1 %v12691_v6  ;;  %9552 = vmatpush3.bf16.msra.mxu1 %v10195_v57  ;;  %v6645_v6 = vshll.u32 %v12906_v35, 16  ;;  %v4738_v57 = vrot.slane %v12693_v36, 1  ;;  %v6650_v36 = vshll.u32 %v12917_v13, 16 }
 0x3a0   : > { %13593 = vst [vmem:[#allocation22_spill] sm:$0xff] %v12909_v24  ;;  %7056 = vmatmul.mubr.bf16.gmra.mrb[24].mxu0 %v12871_v3  ;;  %9553 = vmatprep.subr.bf16.mxu1 %v10198_v56  ;;  %v4743_v41 = vsel %vm709_vm0, %v4741_v14, %v4742_v42 }
 0x3a1   : > { %7063 = vmatprep.mubr.bf16.mxu0 %v6629_v7  ;;  %v4740_v27 = vsel %vm709_vm0, %v4738_v57, %v4739_v25  ;;  %v6647_v24 = vrot.slane %v6645_v6, 1  ;;  %v4748_v25 = vrot.slane %v12766_v61, 1  ;;  %v6652_v0 = vrot.slane %v6650_v36, 1 }
 0x3a2   : > { %v4744_v57 = vrot.slane %v12739_v2, 1  ;;  %v4747_v6 = vrot.slane %v12757_v59, 1  ;;  %v4750_v2 = vrot.slane %v12775_v21, 1 }
 0x3a3   : > { %9554 = vmatpush3.bf16.msra.mxu1 %v10198_v56  ;;  %v8913_v60 = vpop.f32.mrb[180].mxu0  ;;  %v6641_v56 = vsel %vm474_vm1, %v6636_v23, %v6640_v50  ;;  %v6648_v42 = vor.u32 %v6647_v24, %v6643_v22  ;;  %v4754_v22 = vrot.slane %v12802_v38, 1  ;;  %v4753_v50 = vrot.slane %v12793_v5, 1 }
 0x3a4   : > { %v8914_v7 = vpop.f32.mrb[181].mxu0  ;;  %v4746_v14 = vsel %vm709_vm0, %v4744_v57, %v4745_v31  ;;  %v4757_v38 = vrot.slane %v12820_v17, 1  ;;  %v6677_v57 = vrot.slane %v12706_v4, 1 }
 0x3a5   : > { %v12924_v19 = vadd.f32 %v8914_v7, %v8913_v60  ;;  %v8916_v29 = vpop.f32.mrb[182].mxu0  ;;  %v4749_v60 = vsel %vm709_vm0, %v4747_v6, %v4748_v25  ;;  %v6653_v23 = vsel %vm474_vm1, %v6648_v42, %v6652_v0  ;;  %v4755_v28 = vsel %vm709_vm0, %v4753_v50, %v4754_v22 }
 0x3a6   : > { %9524 = vmatmul.mubr.bf16.gmra.mrb[172].mxu1 %v4740_v27  ;;  %v8917_v15 = vpop.f32.mrb[183].mxu0  ;;  %v4752_v27 = vsel %vm709_vm0, %v4750_v2, %v4751_v53  ;;  %v6683_v22 = vrot.slane %v12751_v47, 1 }
 0x3a7   : > { %9527 = vmatprep.mubr.bf16.mxu1 %v4743_v41  ;;  %v12930_v32 = vadd.f32 %v8917_v15, %v8916_v29  ;;  %v4756_v15 = vrot.slane %v12811_v26, 1  ;;  %v6676_v26 = vrot.slane %v12700_v33, 1  ;;  %v6682_v33 = vrot.slane %v12745_v62, 1 }
 0x3a8   : > { %7064 = vmatmul.mubr.bf16.gmra.mrb[28].mxu0 %v12882_v63 }
 0x3a9   : > { %7071 = vmatprep.mubr.bf16.mxu0 %v6641_v56  ;;  %v4758_v31 = vsel %vm709_vm0, %v4756_v15, %v4757_v38  ;;  %v6678_v53 = vsel %vm709_vm0, %v6676_v26, %v6677_v57  ;;  %v6685_v38 = vrot.slane %v12763_v20, 1  ;;  %v6695_v20 = vrot.slane %v12823_v10, 1 }
 0x3ae   : > { %9528 = vmatmul.mubr.bf16.gmra.mrb[176].mxu1 %v4746_v14 }
 0x3af   : > { %9531 = vmatprep.mubr.bf16.mxu1 %v4749_v60 }
 0x3b0   : > { %7072 = vmatmul.mubr.bf16.gmra.mrb[32].mxu0 %v12897_v43 }
 0x3b1   : > { %7079 = vmatprep.mubr.bf16.mxu0 %v6653_v23 }
 0x3b2   : > { %v8919_v61 = vpop.f32.mrb[184].mxu0 }
 0x3b3   : > { %v8920_v29 = vpop.f32.mrb[185].mxu0 }
 0x3b4   : > { %v12943_v59 = vadd.f32 %v8920_v29, %v8919_v61  ;;  %v8922_v24 = vpop.f32.mrb[186].mxu0  ;;  %v6680_v61 = vrot.slane %v12733_v55, 1  ;;  %v6679_v29 = vrot.slane %v12721_v44, 1  ;;  %v6686_v55 = vrot.slane %v12769_v37, 1 }
 0x3b5   : > { %v8923_v41 = vpop.f32.mrb[187].mxu0 }
 0x3b6   : > { %9532 = vmatmul.mubr.bf16.gmra.mrb[180].mxu1 %v4752_v27  ;;  %v12947_v7 = vadd.f32 %v8923_v41, %v8922_v24  ;;  %v6684_v41 = vsel %vm709_vm0, %v6682_v33, %v6683_v22  ;;  %v6687_v15 = vsel %vm709_vm0, %v6685_v38, %v6686_v55  ;;  %v6700_v38 = vrot.slane %v12844_v16, 1 }
 0x3b7   : > { %9535 = vmatprep.mubr.bf16.mxu1 %v4755_v28  ;;  %v6689_v28 = vrot.slane %v12787_v49, 1  ;;  %v6692_v49 = vrot.slane %v12805_v46, 1 }
 0x3b8   : > { %7080 = vmatmul.mubr.bf16.gmra.mrb[36].mxu0 %v12906_v35 }
 0x3ba   : > { %v8925_v36 = vpop.f32.mrb[188].mxu0 }
 0x3bb   : > { %v8926_v21 = vpop.f32.mrb[189].mxu0 }
 0x3bc   : > { %v12953_v56 = vadd.f32 %v8926_v21, %v8925_v36  ;;  %v8928_v5 = vpop.f32.mrb[190].mxu0  ;;  %v6688_v21 = vrot.slane %v12781_v18, 1  ;;  %v6691_v18 = vrot.slane %v12799_v51, 1 }
 0x3bd   : > { %v8929_v25 = vpop.f32.mrb[191].mxu0 }
 0x3be   : > { %9536 = vmatmul.mubr.bf16.gmra.mrb[184].mxu1 %v4758_v31  ;;  %v12956_v42 = vadd.f32 %v8929_v25, %v8928_v5  ;;  %v6690_v25 = vsel %vm709_vm0, %v6688_v21, %v6689_v28  ;;  %v6693_v46 = vsel %vm709_vm0, %v6691_v18, %v6692_v49  ;;  %v6707_v49 = vrot.slane %v12874_v54, 1 }
 0x3bf   : > { %9555 = vmatprep.mubr.bf16.mxu1 %v12724_v12 }
 0x3c2   : > { %v8931_v0 = vpop.f32.mrb[192].mxu0 }
 0x3c3   : > { %v8932_v6 = vpop.f32.mrb[193].mxu0 }
 0x3c4   : > { %v12960_v17 = vadd.f32 %v8932_v6, %v8931_v0  ;;  %v8934_v14 = vpop.f32.mrb[194].mxu0 }
 0x3c5   : > { %v8935_v60 = vpop.f32.mrb[195].mxu0 }
 0x3c6   : > { %9556 = vmatmul.mubr.bf16.vlgmr.msra.gmra.mrb[156].mxu1 %v12727_v39  ;;  %v12964_v23 = vadd.f32 %v8935_v60, %v8934_v14  ;;  %v6681_v39 = vsel %vm709_vm0, %v6679_v29, %v6680_v61 }
 0x3c7   : > { %9559 = vmatprep.mubr.bf16.mxu1 %v6678_v53  ;;  %v6694_v53 = vrot.slane %v12817_v11, 1 }
 0x3c9   : > { %v6696_v29 = vsel %vm709_vm0, %v6694_v53, %v6695_v20 }
 0x3ca   : > { %v8937_v12 = vpop.f32.mrb[196].mxu0 }
 0x3cb   : > { %v8938_v4 = vpop.f32.mrb[197].mxu0 }
 0x3cc   : > { %v12970_v2 = vadd.f32 %v8938_v4, %v8937_v12  ;;  %v8940_v24 = vpop.f32.mrb[198].mxu0 }
 0x3cd   : > { %v8941_v50 = vpop.f32.mrb[199].mxu0 }
 0x3ce   : > { %9560 = vmatmul.mubr.bf16.gmra.mrb[160].mxu1 %v6681_v39  ;;  %v12974_v27 = vadd.f32 %v8941_v50, %v8940_v24  ;;  %v6701_v39 = vrot.slane %v12847_v48, 1 }
 0x3cf   : > { %9563 = vmatprep.mubr.bf16.mxu1 %v6684_v41 }
 0x3d2   : > { %v8943_v47 = vpop.f32.mrb[200].mxu0 }
 0x3d3   : > { %v8944_v44 = vpop.f32.mrb[201].mxu0 }
 0x3d4   : > { %v12980_v36 = vadd.f32 %v8944_v44, %v8943_v47  ;;  %v8946_v62 = vpop.f32.mrb[202].mxu0  ;;  %v6697_v47 = vrot.slane %v12833_v30, 1 }
 0x3d5   : > { %v8947_v5 = vpop.f32.mrb[203].mxu0 }
 0x3d6   : > { %9564 = vmatmul.mubr.bf16.gmra.mrb[164].mxu1 %v6687_v15  ;;  %v12984_v31 = vadd.f32 %v8947_v5, %v8946_v62  ;;  %v6702_v5 = vsel %vm709_vm0, %v6700_v38, %v6701_v39 }
 0x3d7   : > { %9567 = vmatprep.mubr.bf16.mxu1 %v6690_v25 }
 0x3d9   : > { %v9031_v37 = vpop.f32.mrb[188].mxu1 }
 0x3da   : > { %v9032_v0 = vpop.f32.mrb[189].mxu1 }
 0x3db   : > { %v9033_v57 = vadd.f32 %v9032_v0, %v9031_v37  ;;  %v9034_v6 = vpop.f32.mrb[190].mxu1  ;;  %v8949_v14 = vpop.f32.mrb[204].mxu0 }
 0x3dc   : > { %v9035_v26 = vpop.f32.mrb[191].mxu1  ;;  %v8950_v60 = vpop.f32.mrb[205].mxu0 }
 0x3dd   : > { %v12992_v61 = vadd.f32 %v9033_v57, %v12861_v40  ;;  %v9036_v12 = vadd.f32 %v9035_v26, %v9034_v6  ;;  %v12994_v22 = vadd.f32 %v8950_v60, %v8949_v14  ;;  %v8952_v4 = vpop.f32.mrb[206].mxu0  ;;  %v6698_v40 = vrot.slane %v12836_v9, 1 }
 0x3de   : > { %9568 = vmatmul.mubr.bf16.gmra.mrb[168].mxu1 %v6693_v46  ;;  %v8953_v10 = vpop.f32.mrb[207].mxu0  ;;  %v6703_v6 = vrot.slane %v12855_v8, 1  ;;  %v6706_v26 = vrot.slane %v12871_v3, 1  ;;  %v13594_v46 = vld [vmem:[#allocation22_spill] sm:$0xff] }
 0x3df   : > { %v12999_v24 = vadd.f32 %v9036_v12, %v12864_v45  ;;  %v13001_v51 = vadd.f32 %v8953_v10, %v8952_v4  ;;  %9571 = vmatprep.mubr.bf16.mxu1 %v6696_v29  ;;  %v6699_v9 = vsel %vm709_vm0, %v6697_v47, %v6698_v40  ;;  %v13595_v29 = vld [vmem:[#allocation15_spill] sm:$0xff]  ;;  %v13596_v40 = vld [vmem:[#allocation16_spill] sm:$0xff] }
 0x3e0   : > { %v6708_v4 = vsel %vm709_vm0, %v6706_v26, %v6707_v49 }
 0x3e1   : > { %v9037_v11 = vpop.f32.mrb[192].mxu1 }
 0x3e2   : > { %v9038_v33 = vpop.f32.mrb[193].mxu1 }
 0x3e3   : > { %v9039_v50 = vadd.f32 %v9038_v33, %v9037_v11  ;;  %v9040_v41 = vpop.f32.mrb[194].mxu1  ;;  %v8955_v55 = vpop.f32.mrb[208].mxu0  ;;  %v6713_v33 = vrot.slane %v13596_v40, 1 }
 0x3e4   : > { %v9041_v28 = vpop.f32.mrb[195].mxu1  ;;  %v8956_v44 = vpop.f32.mrb[209].mxu0 }
 0x3e5   : > { %v13008_v45 = vadd.f32 %v9039_v50, %v12888_v58  ;;  %v9042_v62 = vadd.f32 %v9041_v28, %v9040_v41  ;;  %v13010_v21 = vadd.f32 %v8956_v44, %v8955_v55  ;;  %v8958_v15 = vpop.f32.mrb[210].mxu0  ;;  %v6704_v58 = vrot.slane %v12858_v34, 1 }
 0x3e6   : > { %9572 = vmatmul.mubr.bf16.gmra.mrb[172].mxu1 %v6699_v9  ;;  %v8959_v48 = vpop.f32.mrb[211].mxu0  ;;  %v6709_v55 = vrot.slane %v12882_v63, 1  ;;  %v6712_v44 = vrot.slane %v12897_v43, 1  ;;  %v6715_v43 = vrot.slane %v12906_v35, 1 }
 0x3e7   : > { %v13015_v25 = vadd.f32 %v9042_v62, %v12892_v52  ;;  %v13017_v30 = vadd.f32 %v8959_v48, %v8958_v15  ;;  %9575 = vmatprep.mubr.bf16.mxu1 %v6702_v5  ;;  %v6705_v34 = vsel %vm709_vm0, %v6703_v6, %v6704_v58 }
 0x3e9   : > { %v9043_v16 = vpop.f32.mrb[196].mxu1 }
 0x3ea   : > { %v9044_v37 = vpop.f32.mrb[197].mxu1 }
 0x3eb   : > { %v9045_v0 = vadd.f32 %v9044_v37, %v9043_v16  ;;  %v9046_v20 = vpop.f32.mrb[198].mxu1  ;;  %v8961_v57 = vpop.f32.mrb[212].mxu0  ;;  %v6714_v16 = vsel %vm709_vm0, %v6712_v44, %v6713_v33 }
 0x3ec   : > { %v9047_v14 = vpop.f32.mrb[199].mxu1  ;;  %v8962_v18 = vpop.f32.mrb[213].mxu0 }
 0x3ed   : > { %v13024_v52 = vadd.f32 %v9045_v0, %v12903_v1  ;;  %v9048_v60 = vadd.f32 %v9047_v14, %v9046_v20  ;;  %v13026_v53 = vadd.f32 %v8962_v18, %v8961_v57  ;;  %v8964_v12 = vpop.f32.mrb[214].mxu0  ;;  %v6710_v1 = vrot.slane %v13595_v29, 1 }
 0x3ee   : > { %9576 = vmatmul.mubr.bf16.gmra.mrb[176].mxu1 %v6705_v34  ;;  %v8965_v54 = vpop.f32.mrb[215].mxu0 }
 0x3ef   : > { %v13031_v10 = vadd.f32 %v9048_v60, %v13594_v46  ;;  %v13033_v8 = vadd.f32 %v8965_v54, %v8964_v12  ;;  %9579 = vmatprep.mubr.bf16.mxu1 %v6708_v4  ;;  %v6711_v48 = vsel %vm709_vm0, %v6709_v55, %v6710_v1 }
 0x3f1   : > { %v9049_v3 = vpop.f32.mrb[200].mxu1 }
 0x3f2   : > { %v9050_v11 = vpop.f32.mrb[201].mxu1 }
 0x3f3   : > { %v9051_v39 = vadd.f32 %v9050_v11, %v9049_v3  ;;  %v9052_v50 = vpop.f32.mrb[202].mxu1  ;;  %v8967_v41 = vpop.f32.mrb[216].mxu0 }
 0x3f4   : > { %v9053_v47 = vpop.f32.mrb[203].mxu1  ;;  %v8968_v28 = vpop.f32.mrb[217].mxu0 }
 0x3f5   : > { %v13040_v38 = vadd.f32 %v9051_v39, %v12924_v19  ;;  %v9054_v62 = vadd.f32 %v9053_v47, %v9052_v50  ;;  %v13042_v15 = vadd.f32 %v8968_v28, %v8967_v41  ;;  %v8970_v9 = vpop.f32.mrb[218].mxu0  ;;  %v6716_v19 = vrot.slane %v12917_v13, 1 }
 0x3f6   : > { %9580 = vmatmul.mubr.bf16.gmra.mrb[180].mxu1 %v6711_v48  ;;  %v8971_v5 = vpop.f32.mrb[219].mxu0 }
 0x3f7   : > { %v13047_v58 = vadd.f32 %v9054_v62, %v12930_v32  ;;  %v13049_v63 = vadd.f32 %v8971_v5, %v8970_v9  ;;  %9583 = vmatprep.mubr.bf16.mxu1 %v6714_v16  ;;  %v6717_v6 = vsel %vm709_vm0, %v6715_v43, %v6716_v19 }
 0x3f9   : > { %v9055_v37 = vpop.f32.mrb[204].mxu1 }
 0x3fa   : > { %v9056_v49 = vpop.f32.mrb[205].mxu1 }
 0x3fb   : > { %v9057_v0 = vadd.f32 %v9056_v49, %v9055_v37  ;;  %v9058_v20 = vpop.f32.mrb[206].mxu1  ;;  %v8973_v57 = vpop.f32.mrb[220].mxu0 }
 0x3fc   : > { %v9059_v14 = vpop.f32.mrb[207].mxu1  ;;  %v8974_v18 = vpop.f32.mrb[221].mxu0 }
 0x3fd   : > { %v13055_v26 = vadd.f32 %v9057_v0, %v12943_v59  ;;  %v9060_v32 = vadd.f32 %v9059_v14, %v9058_v20  ;;  %v13057_v60 = vadd.f32 %v8974_v18, %v8973_v57  ;;  %v8976_v12 = vpop.f32.mrb[222].mxu0 }
 0x3fe   : > { %9584 = vmatmul.mubr.bf16.gmra.mrb[184].mxu1 %v6717_v6  ;;  %v8977_v35 = vpop.f32.mrb[223].mxu0 }
 0x3ff   : > { %v13060_v13 = vadd.f32 %v9060_v32, %v12947_v7  ;;  %v13062_v34 = vadd.f32 %v8977_v35, %v8976_v12 }
 0x401   : > { %v9061_v54 = vpop.f32.mrb[208].mxu1 }
 0x402   : > { %v9062_v4 = vpop.f32.mrb[209].mxu1 }
 0x403   : > { %v9063_v46 = vadd.f32 %v9062_v4, %v9061_v54  ;;  %v9064_v3 = vpop.f32.mrb[210].mxu1  ;;  %v8979_v29 = vpop.f32.mrb[224].mxu0 }
 0x404   : > { %v9065_v1 = vpop.f32.mrb[211].mxu1  ;;  %v8980_v11 = vpop.f32.mrb[225].mxu0 }
 0x405   : > { %v13065_v59 = vadd.f32 %v9063_v46, %v12953_v56  ;;  %v9066_v40 = vadd.f32 %v9065_v1, %v9064_v3  ;;  %v13067_v33 = vadd.f32 %v8980_v11, %v8979_v29  ;;  %v8982_v39 = vpop.f32.mrb[226].mxu0 }
 0x406   : > { %v8983_v50 = vpop.f32.mrb[227].mxu0 }
 0x407   : > { %v13070_v7 = vadd.f32 %v9066_v40, %v12956_v42  ;;  %v13072_v41 = vadd.f32 %v8983_v50, %v8982_v39 }
 0x409   : > { %v9067_v55 = vpop.f32.mrb[212].mxu1 }
 0x40a   : > { %v9068_v47 = vpop.f32.mrb[213].mxu1 }
 0x40b   : > { %v9069_v28 = vadd.f32 %v9068_v47, %v9067_v55  ;;  %v9070_v44 = vpop.f32.mrb[214].mxu1  ;;  %v8985_v62 = vpop.f32.mrb[228].mxu0 }
 0x40c   : > { %v9071_v9 = vpop.f32.mrb[215].mxu1  ;;  %v8986_v48 = vpop.f32.mrb[229].mxu0 }
 0x40d   : > { %v13075_v56 = vadd.f32 %v9069_v28, %v12960_v17  ;;  %v9072_v5 = vadd.f32 %v9071_v9, %v9070_v44  ;;  %v13077_v16 = vadd.f32 %v8986_v48, %v8985_v62  ;;  %v8988_v43 = vpop.f32.mrb[230].mxu0 }
 0x40e   : > { %v8989_v19 = vpop.f32.mrb[231].mxu0 }
 0x40f   : > { %v13080_v42 = vadd.f32 %v9072_v5, %v12964_v23  ;;  %v13082_v37 = vadd.f32 %v8989_v19, %v8988_v43 }
 0x411   : > { %v9073_v49 = vpop.f32.mrb[216].mxu1 }
 0x412   : > { %v9074_v0 = vpop.f32.mrb[217].mxu1 }
 0x413   : > { %v9075_v20 = vadd.f32 %v9074_v0, %v9073_v49  ;;  %v9076_v57 = vpop.f32.mrb[218].mxu1  ;;  %v9167_v6 = vpop.f32.mrb[232].mxu0 }
 0x414   : > { %v9077_v14 = vpop.f32.mrb[219].mxu1  ;;  %v9168_v18 = vpop.f32.mrb[233].mxu0 }
 0x415   : > { %v13085_v17 = vadd.f32 %v9075_v20, %v12970_v2  ;;  %v9078_v32 = vadd.f32 %v9077_v14, %v9076_v57  ;;  %v9169_v12 = vadd.f32 %v9168_v18, %v9167_v6  ;;  %v9170_v35 = vpop.f32.mrb[234].mxu0 }
 0x416   : > { %v9171_v54 = vpop.f32.mrb[235].mxu0 }
 0x417   : > { %v13088_v4 = vadd.f32 %v9078_v32, %v12974_v27  ;;  %v9172_v23 = vadd.f32 %v9171_v54, %v9170_v35  ;;  %v13091_v46 = vadd.f32 %v12992_v61, %v9169_v12 }
 0x419   : > { %v9079_v3 = vpop.f32.mrb[220].mxu1  ;;  %v13094_v29 = vadd.f32 %v12999_v24, %v9172_v23 }
 0x41a   : > { %v9080_v1 = vpop.f32.mrb[221].mxu1 }
 0x41b   : > { %v9081_v11 = vadd.f32 %v9080_v1, %v9079_v3  ;;  %v9082_v40 = vpop.f32.mrb[222].mxu1  ;;  %v9173_v2 = vpop.f32.mrb[236].mxu0 }
 0x41c   : > { %v9083_v39 = vpop.f32.mrb[223].mxu1  ;;  %v9174_v50 = vpop.f32.mrb[237].mxu0 }
 0x41d   : > { %v13097_v55 = vadd.f32 %v9081_v11, %v12980_v36  ;;  %v9084_v47 = vadd.f32 %v9083_v39, %v9082_v40  ;;  %v9175_v27 = vadd.f32 %v9174_v50, %v9173_v2  ;;  %v9176_v28 = vpop.f32.mrb[238].mxu0 }
 0x41e   : > { %v9177_v44 = vpop.f32.mrb[239].mxu0 }
 0x41f   : > { %v13100_v61 = vadd.f32 %v9084_v47, %v12984_v31  ;;  %v9178_v62 = vadd.f32 %v9177_v44, %v9176_v28  ;;  %v13103_v24 = vadd.f32 %v13008_v45, %v9175_v27 }
 0x421   : > { %v9085_v9 = vpop.f32.mrb[224].mxu1  ;;  %v13106_v48 = vadd.f32 %v13015_v25, %v9178_v62 }
 0x422   : > { %v9086_v5 = vpop.f32.mrb[225].mxu1 }
 0x423   : > { %v9087_v43 = vadd.f32 %v9086_v5, %v9085_v9  ;;  %v9088_v19 = vpop.f32.mrb[226].mxu1  ;;  %v9179_v36 = vpop.f32.mrb[240].mxu0 }
 0x424   : > { %v9089_v49 = vpop.f32.mrb[227].mxu1  ;;  %v9180_v0 = vpop.f32.mrb[241].mxu0 }
 0x425   : > { %v13109_v20 = vadd.f32 %v9087_v43, %v12994_v22  ;;  %v9090_v57 = vadd.f32 %v9089_v49, %v9088_v19  ;;  %v9181_v31 = vadd.f32 %v9180_v0, %v9179_v36  ;;  %v9182_v6 = vpop.f32.mrb[242].mxu0 }
 0x426   : > { %v9183_v14 = vpop.f32.mrb[243].mxu0 }
 0x427   : > { %v13112_v45 = vadd.f32 %v9090_v57, %v13001_v51  ;;  %v9184_v18 = vadd.f32 %v9183_v14, %v9182_v6  ;;  %v13115_v25 = vadd.f32 %v13024_v52, %v9181_v31 }
 0x429   : > { %v9091_v32 = vpop.f32.mrb[228].mxu1  ;;  %v13118_v12 = vadd.f32 %v13031_v10, %v9184_v18 }
 0x42a   : > { %v9092_v35 = vpop.f32.mrb[229].mxu1 }
 0x42b   : > { %v9093_v54 = vadd.f32 %v9092_v35, %v9091_v32  ;;  %v9094_v23 = vpop.f32.mrb[230].mxu1  ;;  %v9185_v22 = vpop.f32.mrb[244].mxu0 }
 0x42c   : > { %v9095_v3 = vpop.f32.mrb[231].mxu1  ;;  %v9186_v1 = vpop.f32.mrb[245].mxu0 }
 0x42d   : > { %v13121_v11 = vadd.f32 %v9093_v54, %v13010_v21  ;;  %v9096_v40 = vadd.f32 %v9095_v3, %v9094_v23  ;;  %v9187_v51 = vadd.f32 %v9186_v1, %v9185_v22  ;;  %v9188_v2 = vpop.f32.mrb[246].mxu0 }
 0x42e   : > { %v9189_v39 = vpop.f32.mrb[247].mxu0 }
 0x42f   : > { %v13124_v52 = vadd.f32 %v9096_v40, %v13017_v30  ;;  %v9190_v50 = vadd.f32 %v9189_v39, %v9188_v2  ;;  %v13127_v10 = vadd.f32 %v13040_v38, %v9187_v51 }
 0x431   : > { %v9097_v47 = vpop.f32.mrb[232].mxu1  ;;  %v13130_v27 = vadd.f32 %v13047_v58, %v9190_v50 }
 0x432   : > { %v9098_v28 = vpop.f32.mrb[233].mxu1 }
 0x433   : > { %v9099_v44 = vadd.f32 %v9098_v28, %v9097_v47  ;;  %v9100_v62 = vpop.f32.mrb[234].mxu1  ;;  %v9191_v21 = vpop.f32.mrb[248].mxu0 }
 0x434   : > { %v9101_v9 = vpop.f32.mrb[235].mxu1  ;;  %v9192_v5 = vpop.f32.mrb[249].mxu0 }
 0x435   : > { %v13133_v43 = vadd.f32 %v9099_v44, %v13026_v53  ;;  %v9102_v19 = vadd.f32 %v9101_v9, %v9100_v62  ;;  %v9193_v30 = vadd.f32 %v9192_v5, %v9191_v21  ;;  %v9194_v36 = vpop.f32.mrb[250].mxu0 }
 0x436   : > { %v9195_v49 = vpop.f32.mrb[251].mxu0 }
 0x437   : > { %v13136_v38 = vadd.f32 %v9102_v19, %v13033_v8  ;;  %v9196_v0 = vadd.f32 %v9195_v49, %v9194_v36  ;;  %v13139_v58 = vadd.f32 %v13055_v26, %v9193_v30 }
 0x439   : > { %v9103_v57 = vpop.f32.mrb[236].mxu1  ;;  %v13142_v31 = vadd.f32 %v13060_v13, %v9196_v0 }
 0x43a   : > { %v9104_v6 = vpop.f32.mrb[237].mxu1 }
 0x43b   : > { %v9105_v14 = vadd.f32 %v9104_v6, %v9103_v57  ;;  %v9106_v18 = vpop.f32.mrb[238].mxu1  ;;  %v9197_v53 = vpop.f32.mrb[252].mxu0 }
 0x43c   : > { %v9107_v32 = vpop.f32.mrb[239].mxu1  ;;  %v9198_v35 = vpop.f32.mrb[253].mxu0 }
 0x43d   : > { %v13145_v54 = vadd.f32 %v9105_v14, %v13042_v15  ;;  %v9108_v23 = vadd.f32 %v9107_v32, %v9106_v18  ;;  %v9199_v8 = vadd.f32 %v9198_v35, %v9197_v53  ;;  %v9200_v22 = vpop.f32.mrb[254].mxu0 }
 0x43e   : > { %v9201_v3 = vpop.f32.mrb[255].mxu0 }
 0x43f   : > { %v13148_v26 = vadd.f32 %v9108_v23, %v13049_v63  ;;  %v9202_v1 = vadd.f32 %v9201_v3, %v9200_v22  ;;  %v13151_v13 = vadd.f32 %v13065_v59, %v9199_v8 }
 0x441   : > { %v9109_v40 = vpop.f32.mrb[240].mxu1  ;;  %v13154_v51 = vadd.f32 %v13070_v7, %v9202_v1 }
 0x442   : > { %v9110_v2 = vpop.f32.mrb[241].mxu1 }
 0x443   : > { %v9111_v39 = vadd.f32 %v9110_v2, %v9109_v40  ;;  %v9112_v50 = vpop.f32.mrb[242].mxu1  ;;  %v9203_v15 = vpop.f32.mrb[0].mxu0 }
 0x444   : > { %v9113_v47 = vpop.f32.mrb[243].mxu1  ;;  %v9204_v28 = vpop.f32.mrb[1].mxu0 }
 0x445   : > { %v13157_v44 = vadd.f32 %v9111_v39, %v13057_v60  ;;  %v9114_v62 = vadd.f32 %v9113_v47, %v9112_v50  ;;  %v9205_v63 = vadd.f32 %v9204_v28, %v9203_v15  ;;  %v9206_v21 = vpop.f32.mrb[2].mxu0 }
 0x446   : > { %v9207_v9 = vpop.f32.mrb[3].mxu0 }
 0x447   : > { %v13160_v59 = vadd.f32 %v9114_v62, %v13062_v34  ;;  %v9208_v5 = vadd.f32 %v9207_v9, %v9206_v21  ;;  %v13163_v7 = vadd.f32 %v13075_v56, %v9205_v63 }
 0x449   : > { %v9115_v19 = vpop.f32.mrb[244].mxu1  ;;  %v13166_v30 = vadd.f32 %v13080_v42, %v9208_v5 }
 0x44a   : > { %v9116_v36 = vpop.f32.mrb[245].mxu1 }
 0x44b   : > { %v9117_v49 = vadd.f32 %v9116_v36, %v9115_v19  ;;  %v9118_v0 = vpop.f32.mrb[246].mxu1  ;;  %v9209_v60 = vpop.f32.mrb[4].mxu0 }
 0x44c   : > { %v9119_v57 = vpop.f32.mrb[247].mxu1  ;;  %v9210_v6 = vpop.f32.mrb[5].mxu0 }
 0x44d   : > { %v13169_v14 = vadd.f32 %v9117_v49, %v13067_v33  ;;  %v9120_v18 = vadd.f32 %v9119_v57, %v9118_v0  ;;  %v9211_v34 = vadd.f32 %v9210_v6, %v9209_v60  ;;  %v9212_v53 = vpop.f32.mrb[6].mxu0 }
 0x44e   : > { %v9213_v32 = vpop.f32.mrb[7].mxu0 }
 0x44f   : > { %v13172_v56 = vadd.f32 %v9120_v18, %v13072_v41  ;;  %v9214_v35 = vadd.f32 %v9213_v32, %v9212_v53  ;;  %v13175_v42 = vadd.f32 %v13085_v17, %v9211_v34 }
 0x451   : > { %v9121_v23 = vpop.f32.mrb[248].mxu1  ;;  %v13178_v8 = vadd.f32 %v13088_v4, %v9214_v35 }
 0x452   : > { %v9122_v22 = vpop.f32.mrb[249].mxu1 }
 0x453   : > { %v9123_v3 = vadd.f32 %v9122_v22, %v9121_v23  ;;  %v9124_v1 = vpop.f32.mrb[250].mxu1  ;;  %v9215_v33 = vpop.f32.mrb[8].mxu0 }
 0x454   : > { %v9125_v40 = vpop.f32.mrb[251].mxu1  ;;  %v9216_v2 = vpop.f32.mrb[9].mxu0 }
 0x455   : > { %v13181_v39 = vadd.f32 %v9123_v3, %v13077_v16  ;;  %v9126_v50 = vadd.f32 %v9125_v40, %v9124_v1  ;;  %v9217_v41 = vadd.f32 %v9216_v2, %v9215_v33  ;;  %v9218_v15 = vpop.f32.mrb[10].mxu0 }
 0x456   : > { %v9219_v47 = vpop.f32.mrb[11].mxu0 }
 0x457   : > { %v13184_v17 = vadd.f32 %v9126_v50, %v13082_v37  ;;  %v9220_v28 = vadd.f32 %v9219_v47, %v9218_v15  ;;  %v13187_v4 = vadd.f32 %v13097_v55, %v9217_v41 }
 0x459   : > { %v13190_v62 = vadd.f32 %v13100_v61, %v9220_v28 }
 0x45b   : > { %v9221_v63 = vpop.f32.mrb[12].mxu0 }
 0x45c   : > { %v9222_v21 = vpop.f32.mrb[13].mxu0 }
 0x45d   : > { %v9223_v9 = vadd.f32 %v9222_v21, %v9221_v63  ;;  %v9224_v5 = vpop.f32.mrb[14].mxu0 }
 0x45e   : > { %v9225_v16 = vpop.f32.mrb[15].mxu0 }
 0x45f   : > { %v9226_v19 = vadd.f32 %v9225_v16, %v9224_v5  ;;  %v13193_v36 = vadd.f32 %v13109_v20, %v9223_v9 }
 0x461   : > { %v13196_v49 = vadd.f32 %v13112_v45, %v9226_v19 }
 0x463   : > { %v9227_v37 = vpop.f32.mrb[16].mxu0 }
 0x464   : > { %v9228_v0 = vpop.f32.mrb[17].mxu0 }
 0x465   : > { %v9229_v60 = vadd.f32 %v9228_v0, %v9227_v37  ;;  %v9230_v55 = vpop.f32.mrb[18].mxu0 }
 0x466   : > { %v9231_v57 = vpop.f32.mrb[19].mxu0 }
 0x467   : > { %v9232_v6 = vadd.f32 %v9231_v57, %v9230_v55  ;;  %v13199_v61 = vadd.f32 %v13121_v11, %v9229_v60  ;;  %v8515_v57 = vld [vmem:[%s10513_s27 + $0x24] sm:$0xff]  }
 0x469   : > { %v13202_v18 = vadd.f32 %v13124_v52, %v9232_v6  ;;  %v8778_v6 = vld [vmem:[%s10513_s27 + $0x18] sm:$0xff]  }
 0x46b   : > { %v9233_v34 = vpop.f32.mrb[20].mxu0 }
 0x46c   : > { %v9234_v53 = vpop.f32.mrb[21].mxu0 }
 0x46d   : > { %v9235_v32 = vadd.f32 %v9234_v53, %v9233_v34  ;;  %v9236_v20 = vpop.f32.mrb[22].mxu0  ;;  %v8517_v53 = vld [vmem:[%s10513_s27 + $0x2c] sm:$0x1] }
 0x46e   : > { %v9237_v35 = vpop.f32.mrb[23].mxu0 }
 0x46f   : > { %v9238_v23 = vadd.f32 %v9237_v35, %v9236_v20  ;;  %v13205_v45 = vadd.f32 %v13133_v43, %v9235_v32  ;;  %v7371_v20 = vunpack.c.l.bf16 %v8515_v57  ;;  %v8668_v35 = vunpack.c.l.bf16 %v8778_v6 }
 0x471   : > { %v13208_v22 = vadd.f32 %v13136_v38, %v9238_v23  ;;  %v8669_v23 = vunpack.c.h.bf16 %v8778_v6 }
 0x473   : > { %v9239_v3 = vpop.f32.mrb[24].mxu0 }
 0x474   : > { %v9240_v1 = vpop.f32.mrb[25].mxu0 }
 0x475   : > { %v9241_v33 = vadd.f32 %v9240_v1, %v9239_v3  ;;  %v9242_v11 = vpop.f32.mrb[26].mxu0  ;;  %v7373_v3 = vunpack.c.l.bf16 %v8517_v53 }
 0x476   : > { %v9243_v40 = vpop.f32.mrb[27].mxu0 }
 0x477   : > { %v9244_v2 = vadd.f32 %v9243_v40, %v9242_v11  ;;  %v13211_v52 = vadd.f32 %v13145_v54, %v9241_v33  ;;  %v8514_v33 = vld [vmem:[%s10513_s27 + $0x20] sm:$0x1]  ;;  %v8779_v40 = vld [vmem:[%s10513_s27 + $0x30] sm:$0xff]  }
 0x478   : > { %v8521_v11 = vld [vmem:[%s10513_s27 + $0x3c] sm:$0xff]  }
 0x479   : > { %v13214_v50 = vadd.f32 %v13148_v26, %v9244_v2  ;;  %v8523_v2 = vld [vmem:[%s10513_s27 + $0x44] sm:$0x1] }
 0x47b   : > { %v9245_v41 = vpop.f32.mrb[28].mxu0 }
 0x47c   : > { %v9246_v15 = vpop.f32.mrb[29].mxu0 }
 0x47d   : > { %v9247_v47 = vadd.f32 %v9246_v15, %v9245_v41  ;;  %v9248_v43 = vpop.f32.mrb[30].mxu0  ;;  %v7470_v41 = vrot.slane %v7371_v20, 1 }
 0x47e   : > { %v9249_v28 = vpop.f32.mrb[31].mxu0 }
 0x47f   : > { %v9250_v38 = vadd.f32 %v9249_v28, %v9248_v43  ;;  %v13217_v63 = vadd.f32 %v13157_v44, %v9247_v47  ;;  %v7465_v47 = vrot.slane %v8668_v35, 1  ;;  %v7466_v43 = vrot.slane %v8669_v23, 1 }
 0x480   : > { %v7473_v28 = vrot.slane %v7373_v3, 1 }
 0x481   : > { %v13220_v21 = vadd.f32 %v13160_v59, %v9250_v38  ;;  %v7370_v38 = vunpack.c.l.bf16 %v8514_v33 }
 0x483   : > { %v9251_v54 = vpop.f32.mrb[32].mxu0 }
 0x484   : > { %v9252_v9 = vpop.f32.mrb[33].mxu0 }
 0x485   : > { %v9253_v5 = vadd.f32 %v9252_v9, %v9251_v54  ;;  %v9254_v26 = vpop.f32.mrb[34].mxu0  ;;  %v7377_v54 = vunpack.c.l.bf16 %v8521_v11  ;;  %v7378_v9 = vunpack.c.h.bf16 %v8521_v11 }
 0x486   : > { %v9255_v16 = vpop.f32.mrb[35].mxu0 }
 0x487   : > { %v9256_v19 = vadd.f32 %v9255_v16, %v9254_v26  ;;  %v13223_v37 = vadd.f32 %v13169_v14, %v9253_v5  ;;  %v8527_v5 = vld [vmem:[%s10513_s27 + $0x54] sm:$0xff]   ;;  %v8672_v26 = vunpack.c.l.bf16 %v8779_v40  ;;  %v8673_v16 = vunpack.c.h.bf16 %v8779_v40  ;;  %v8529_v40 = vld [vmem:[%s10513_s27 + $0x5c] sm:$0x1] }
 0x488   : > { %v7480_v20 = vrot.slane %v7377_v54, 1 }
 0x489   : > { %v13226_v0 = vadd.f32 %v13172_v56, %v9256_v19  ;;  %v7372_v56 = vunpack.c.h.bf16 %v8515_v57  ;;  %v7379_v19 = vunpack.c.l.bf16 %v8523_v2  ;;  %v8780_v57 = vld [vmem:[%s10513_s27 + $0x48] sm:$0xff]   ;;  %v7475_v3 = vrot.slane %v8672_v26, 1 }
 0x48a   : > { %v7476_v33 = vrot.slane %v8673_v16, 1  ;;  %v7385_v16 = vunpack.c.l.bf16 %v8529_v40 }
 0x48b   : > { %v9257_v60 = vpop.f32.mrb[36].mxu0  ;;  %v7471_v15 = vrot.slane %v7372_v56, 1  ;;  %v7481_v56 = vrot.slane %v7378_v9, 1  ;;  %v7483_v11 = vrot.slane %v7379_v19, 1 }
 0x48c   : > { %v9258_v44 = vpop.f32.mrb[37].mxu0 }
 0x48d   : > { %v9259_v55 = vadd.f32 %v9258_v44, %v9257_v60  ;;  %v9260_v59 = vpop.f32.mrb[38].mxu0  ;;  %v7472_v60 = vsel %vm709_vm0, %v7470_v41, %v7471_v15  ;;  %v7467_v44 = vsel %vm709_vm0, %v7465_v47, %v7466_v43  ;;  %v7474_v53 = vsel %vm709_vm0, %v7471_v15, %v7473_v28 }
 0x48e   : > { %v9261_v34 = vpop.f32.mrb[39].mxu0 }
 0x48f   : > { %v9262_v32 = vadd.f32 %v9261_v34, %v9260_v59  ;;  %v13232_v14 = vadd.f32 %v13181_v39, %v9259_v55  ;;  %v8520_v39 = vld [vmem:[%s10513_s27 + $0x38] sm:$0x1]  ;;  %v7383_v55 = vunpack.c.l.bf16 %v8527_v5  ;;  %v7384_v59 = vunpack.c.h.bf16 %v8527_v5  ;;  %v13249_v34 = vld [vmem:[%s13467_s4] ss:$0 sm:$0xff] }
 0x490   : > { %v8677_v5 = vunpack.c.h.bf16 %v8780_v57 }
 0x491   : > { %v13235_v1 = vadd.f32 %v13184_v17, %v9262_v32  ;;  %v7376_v17 = vunpack.c.l.bf16 %v8520_v39  ;;  %v7468_v32 = vrot.slane %v7370_v38, 1  ;;  %v8676_v39 = vunpack.c.l.bf16 %v8780_v57 }
 0x492   : > { %v7491_v54 = vrot.slane %v7384_v59, 1  ;;  %v7482_v57 = vsel %vm709_vm0, %v7480_v20, %v7481_v56  ;;  %v13276_v20 = vrot.slane %v8677_v5, 1 }
 0x493   : > { %v7478_v47 = vrot.slane %v7376_v17, 1 }
 0x499   : > { %v9557_v6 = vpop.f32.mrb[156].mxu1 }
 0x49a   : > { %v9621_v35 = vadd.f32 %v13103_v24, %v9557_v6  ;;  %v7122_v23 = vpop.f32.mrb[157].mxu1  ;;  %v7490_v24 = vrot.slane %v7383_v55, 1  ;;  %v8526_v6 = vld [vmem:[%s10513_s27 + $0x50] sm:$0x1] }
 0x49b   : > { %v9624_v2 = vadd.f32 %v13091_v46, %v7122_v23  ;;  %v9558_v41 = vpop.f32.mrb[158].mxu1  ;;  %v7469_v46 = vsel %vm709_vm0, %v7466_v43, %v7468_v32  ;;  %v8533_v55 = vld [vmem:[%s10513_s27 + $0x6c] sm:$0xff]   ;;  %v7484_v23 = vsel %vm709_vm0, %v7481_v56, %v7483_v11  ;;  %v7485_v32 = vrot.slane %v8676_v39, 1 }
 0x49c   : > { %v7290_v15 = vadd.f32 %v9621_v35, %v13249_v34  ;;  %v9627_v28 = vadd.f32 %v13106_v48, %v9558_v41  ;;  %v7125_v38 = vpop.f32.mrb[159].mxu1  ;;  %v7477_v48 = vsel %vm709_vm0, %v7475_v3, %v7476_v33  ;;  %v8781_v3 = vld [vmem:[%s10513_s27 + $0x60] sm:$0xff]   ;;  %v7382_v41 = vunpack.c.l.bf16 %v8526_v6 }
 0x49d   : > { %v7288_v9 = vadd.f32 %v9624_v2, %v13249_v34  ;;  %v9630_v26 = vadd.f32 %v13094_v29, %v7125_v38  ;;  %v7479_v29 = vsel %vm709_vm0, %v7476_v33, %v7478_v47  ;;  %v7493_v2 = vrot.slane %v7385_v16, 1 }
 0x49e   : > { %v7579_v19 = vadd.f32 %v7472_v60, %v7290_v15  ;;  %v7291_v17 = vadd.f32 %v9627_v28, %v13249_v34  ;;  %v13274_v60 = vsel %vm709_vm0, %v7490_v24, %v7491_v54  ;;  %v7389_v15 = vunpack.c.l.bf16 %v8533_v55 }
 0x49f   : > { %v7577_v59 = vadd.f32 %v7467_v44, %v7288_v9  ;;  %v7289_v35 = vadd.f32 %v9630_v26, %v13249_v34  ;;  %v7390_v28 = vunpack.c.h.bf16 %v8533_v55  ;;  %v8680_v9 = vunpack.c.l.bf16 %v8781_v3 }
 0x4a0   : > { %v7580_v43 = vadd.f32 %v7474_v53, %v7291_v17  ;;  %v7611_v56 = vmax.f32 %v7579_v19, 0.0  ;;  %v8535_v53 = vld [vmem:[%s10513_s27 + $0x74] sm:$0x1]  ;;  %v8681_v17 = vunpack.c.h.bf16 %v8781_v3  ;;  %v8532_v3 = vld [vmem:[%s10513_s27 + $0x68] sm:$0x1] }
 0x4a1   : > { %v7578_v40 = vadd.f32 %v7469_v46, %v7289_v35  ;;  %v9561_v44 = vpop.f32.mrb[160].mxu1  ;;  %v7609_v38 = vmax.f32 %v7577_v59, 0.0  ;;  %v7391_v59 = vunpack.c.l.bf16 %v8535_v53  ;;  %v7495_v53 = vrot.slane %v8680_v9, 1 }
 0x4a2   : > { %v7612_v11 = vmax.f32 %v7580_v43, 0.0  ;;  %v9633_v33 = vadd.f32 %v13127_v10, %v9561_v44  ;;  %v7138_v47 = vpop.f32.mrb[161].mxu1  ;;  %v7494_v43 = vsel %vm709_vm0, %v7491_v54, %v7493_v2 }
 0x4a3   : > { %v7610_v24 = vmax.f32 %v7578_v40, 0.0  ;;  %v9636_v39 = vadd.f32 %v13115_v25, %v7138_v47  ;;  %v9562_v5 = vpop.f32.mrb[162].mxu1  ;;  %v8539_v40 = vld [vmem:[%s10513_s27 + $0x84] sm:$0xff]   ;;  %v7501_v47 = vrot.slane %v7390_v28, 1 }
 0x4a4   : > { %v8706_v26 = vpack.c.bf16 %v7612_v11, %v7611_v56  ;;  %v7294_v46 = vadd.f32 %v9633_v33, %v13249_v34  ;;  %v9639_v16 = vadd.f32 %v13130_v27, %v9562_v5  ;;  %v7141_v19 = vpop.f32.mrb[163].mxu1  ;;  %v7487_v27 = vsel %vm709_vm0, %v7485_v32, %v13276_v20 }
 0x4a5   : > { %v8701_v10 = vpack.c.bf16 %v7610_v24, %v7609_v38  ;;  %v7292_v6 = vadd.f32 %v9636_v39, %v13249_v34  ;;  %v9642_v55 = vadd.f32 %v13118_v12, %v7141_v19  ;;  %v7488_v56 = vrot.slane %v7382_v41, 1  ;;  %v8782_v38 = vld [vmem:[%s10513_s27 + $0x78] sm:$0xff]   ;;  %v8541_v41 = vld [vmem:[%s10513_s27 + $0x8c] sm:$0x1] }
 0x4a6   : > { %8786 = vst [vmem:[%s13287_s11 + $0x8] sm:$0xff] %v8706_v26   ;;  %v7583_v25 = vadd.f32 %v7482_v57, %v7294_v46  ;;  %v7295_v35 = vadd.f32 %v9639_v16, %v13249_v34  ;;  %v7500_v11 = vrot.slane %v7389_v15, 1  ;;  %v13298_v57 = vrot.slane %v8681_v17, 1 }
 0x4a7   : > { %8702 = vst [vmem:[%s13287_s11] sm:$0xff] %v8701_v10   ;;  %v7581_v44 = vadd.f32 %v7477_v48, %v7292_v6  ;;  %v7293_v12 = vadd.f32 %v9642_v55, %v13249_v34  ;;  %v7503_v32 = vrot.slane %v7391_v59, 1  ;;  %v7388_v5 = vunpack.c.l.bf16 %v8532_v3 }
 0x4a8   : > { %v7584_v33 = vadd.f32 %v7484_v23, %v7295_v35  ;;  %v7395_v54 = vunpack.c.l.bf16 %v8539_v40  ;;  %v7615_v2 = vmax.f32 %v7583_v25, 0.0  ;;  %v7396_v16 = vunpack.c.h.bf16 %v8539_v40 }
 0x4a9   : > { %v7582_v24 = vadd.f32 %v7479_v29, %v7293_v12  ;;  %v9565_v39 = vpop.f32.mrb[164].mxu1  ;;  %v7613_v15 = vmax.f32 %v7581_v44, 0.0  ;;  %v8684_v19 = vunpack.c.l.bf16 %v8782_v38  ;;  %v8685_v55 = vunpack.c.h.bf16 %v8782_v38  ;;  %v8538_v38 = vld [vmem:[%s10513_s27 + $0x80] sm:$0x1] }
 0x4aa   : > { %v7616_v26 = vmax.f32 %v7584_v33, 0.0  ;;  %v9645_v48 = vadd.f32 %v13151_v13, %v9565_v39  ;;  %v7154_v46 = vpop.f32.mrb[165].mxu1  ;;  %v7397_v35 = vunpack.c.l.bf16 %v8541_v41  ;;  %v7489_v40 = vsel %vm709_vm0, %v13276_v20, %v7488_v56 }
 0x4ab   : > { %v7614_v23 = vmax.f32 %v7582_v24, 0.0  ;;  %v9648_v28 = vadd.f32 %v13139_v58, %v7154_v46  ;;  %v9566_v9 = vpop.f32.mrb[166].mxu1  ;;  %v7497_v33 = vsel %vm709_vm0, %v7495_v53, %v13298_v57  ;;  %v7510_v39 = vrot.slane %v7395_v54, 1 }
 0x4ac   : > { %v8716_v29 = vpack.c.bf16 %v7616_v26, %v7615_v2  ;;  %v7298_v17 = vadd.f32 %v9645_v48, %v13249_v34  ;;  %v9651_v10 = vadd.f32 %v13154_v51, %v9566_v9  ;;  %v7157_v6 = vpop.f32.mrb[167].mxu1  ;;  %v7502_v51 = vsel %vm709_vm0, %v7500_v11, %v7501_v47  ;;  %v8545_v26 = vld [vmem:[%s10513_s27 + $0x9c] sm:$0xff]  }
 0x4ad   : > { %v8711_v13 = vpack.c.bf16 %v7614_v23, %v7613_v15  ;;  %v7296_v59 = vadd.f32 %v9648_v28, %v13249_v34  ;;  %v9654_v25 = vadd.f32 %v13142_v31, %v7157_v6  ;;  %v7504_v31 = vsel %vm709_vm0, %v7501_v47, %v7503_v32  ;;  %v8783_v32 = vld [vmem:[%s10513_s27 + $0x90] sm:$0xff]  }
 0x4ae   : > { %8788 = vst [vmem:[%s13287_s11 + $0x18] sm:$0xff] %v8716_v29   ;;  %v7587_v58 = vadd.f32 %v13274_v60, %v7298_v17  ;;  %v7299_v3 = vadd.f32 %v9651_v10, %v13249_v34  ;;  %v7498_v60 = vrot.slane %v7388_v5, 1  ;;  %v7511_v2 = vrot.slane %v7396_v16, 1  ;;  %v8547_v10 = vld [vmem:[%s10513_s27 + $0xa4] sm:$0x1] }
 0x4af   : > { %8787 = vst [vmem:[%s13287_s11 + $0x10] sm:$0xff] %v8711_v13   ;;  %v7585_v44 = vadd.f32 %v7487_v27, %v7296_v59  ;;  %v7297_v12 = vadd.f32 %v9654_v25, %v13249_v34  ;;  %v7505_v56 = vrot.slane %v8684_v19, 1  ;;  %v13321_v11 = vrot.slane %v8685_v55, 1 }
 0x4b0   : > { %v7588_v24 = vadd.f32 %v7494_v43, %v7299_v3  ;;  %v7513_v27 = vrot.slane %v7397_v35, 1  ;;  %v7619_v46 = vmax.f32 %v7587_v58, 0.0  ;;  %v7394_v47 = vunpack.c.l.bf16 %v8538_v38 }
 0x4b1   : > { %v7586_v48 = vadd.f32 %v7489_v40, %v7297_v12  ;;  %v9569_v20 = vpop.f32.mrb[168].mxu1  ;;  %v7617_v43 = vmax.f32 %v7585_v44, 0.0  ;;  %v7401_v23 = vunpack.c.l.bf16 %v8545_v26  ;;  %v7402_v17 = vunpack.c.h.bf16 %v8545_v26 }
 0x4b2   : > { %v7620_v41 = vmax.f32 %v7588_v24, 0.0  ;;  %v9657_v53 = vadd.f32 %v13175_v42, %v9569_v20  ;;  %v7170_v15 = vpop.f32.mrb[169].mxu1  ;;  %v8688_v13 = vunpack.c.l.bf16 %v8783_v32  ;;  %v7499_v25 = vsel %vm709_vm0, %v13298_v57, %v7498_v60 }
 0x4b3   : > { %v7618_v5 = vmax.f32 %v7586_v48, 0.0  ;;  %v9660_v54 = vadd.f32 %v13163_v7, %v7170_v15  ;;  %v9570_v16 = vpop.f32.mrb[170].mxu1  ;;  %v8689_v35 = vunpack.c.h.bf16 %v8783_v32  ;;  %v7512_v3 = vsel %vm709_vm0, %v7510_v39, %v7511_v2  ;;  %v8544_v48 = vld [vmem:[%s10513_s27 + $0x98] sm:$0x1] }
 0x4b4   : > { %v8726_v28 = vpack.c.bf16 %v7620_v41, %v7619_v46  ;;  %v7302_v9 = vadd.f32 %v9657_v53, %v13249_v34  ;;  %v9663_v19 = vadd.f32 %v13178_v8, %v9570_v16  ;;  %v7173_v29 = vpop.f32.mrb[171].mxu1  ;;  %v7403_v40 = vunpack.c.l.bf16 %v8547_v10  ;;  %v8553_v10 = vld [vmem:[%s10513_s27 + $0xbc] sm:$0x1] }
 0x4b5   : > { %v8721_v42 = vpack.c.bf16 %v7618_v5, %v7617_v43  ;;  %v7300_v6 = vadd.f32 %v9660_v54, %v13249_v34  ;;  %v9666_v55 = vadd.f32 %v13166_v30, %v7173_v29  ;;  %v7507_v30 = vsel %vm709_vm0, %v7505_v56, %v13321_v11 }
 0x4b6   : > { %8790 = vst [vmem:[%s13287_s11 + $0x28] sm:$0xff] %v8726_v28   ;;  %v7591_v59 = vadd.f32 %v7502_v51, %v7302_v9  ;;  %v7303_v7 = vadd.f32 %v9663_v19, %v13249_v34  ;;  %v7514_v51 = vsel %vm709_vm0, %v7511_v2, %v7513_v27  ;;  %v7508_v12 = vrot.slane %v7394_v47, 1 }
 0x4b7   : > { %8789 = vst [vmem:[%s13287_s11 + $0x20] sm:$0xff] %v8721_v42   ;;  %v7589_v8 = vadd.f32 %v7497_v33, %v7300_v6  ;;  %v7301_v58 = vadd.f32 %v9666_v55, %v13249_v34  ;;  %v7520_v57 = vrot.slane %v7401_v23, 1  ;;  %v7521_v60 = vrot.slane %v7402_v17, 1 }
 0x4b8   : > { %v7592_v44 = vadd.f32 %v7504_v31, %v7303_v7  ;;  %v7515_v26 = vrot.slane %v8688_v13, 1  ;;  %v7623_v33 = vmax.f32 %v7591_v59, 0.0  ;;  %v7516_v41 = vrot.slane %v8689_v35, 1  ;;  %v8551_v31 = vld [vmem:[%s10513_s27 + $0xb4] sm:$0xff]  }
 0x4b9   : > { %v7590_v38 = vadd.f32 %v7499_v25, %v7301_v58  ;;  %v9573_v24 = vpop.f32.mrb[172].mxu1  ;;  %v7621_v53 = vmax.f32 %v7589_v8, 0.0  ;;  %v7523_v15 = vrot.slane %v7403_v40, 1  ;;  %v7400_v54 = vunpack.c.l.bf16 %v8544_v48 }
 0x4ba   : > { %v7624_v20 = vmax.f32 %v7592_v44, 0.0  ;;  %v9669_v39 = vadd.f32 %v13193_v36, %v9573_v24  ;;  %v7186_v46 = vpop.f32.mrb[173].mxu1  ;;  %v8784_v36 = vld [vmem:[%s10513_s27 + $0xa8] sm:$0xff]   ;;  %v7407_v9 = vunpack.c.l.bf16 %v8551_v31  ;;  %v7509_v29 = vsel %vm709_vm0, %v13321_v11, %v7508_v12 }
 0x4bb   : > { %v7622_v56 = vmax.f32 %v7590_v38, 0.0  ;;  %v9672_v2 = vadd.f32 %v13187_v4, %v7186_v46  ;;  %v9574_v27 = vpop.f32.mrb[174].mxu1  ;;  %v7408_v17 = vunpack.c.h.bf16 %v8551_v31  ;;  %v7522_v6 = vsel %vm709_vm0, %v7520_v57, %v7521_v60 }
 0x4bc   : > { %v8736_v47 = vpack.c.bf16 %v7624_v20, %v7623_v33  ;;  %v7306_v32 = vadd.f32 %v9669_v39, %v13249_v34  ;;  %v9675_v43 = vadd.f32 %v13196_v49, %v9574_v27  ;;  %v7189_v5 = vpop.f32.mrb[175].mxu1  ;;  %v8692_v55 = vunpack.c.l.bf16 %v8784_v36 }
 0x4bd   : > { %v8731_v16 = vpack.c.bf16 %v7622_v56, %v7621_v53  ;;  %v7304_v23 = vadd.f32 %v9672_v2, %v13249_v34  ;;  %v9678_v28 = vadd.f32 %v13190_v62, %v7189_v5  ;;  %v7517_v62 = vsel %vm709_vm0, %v7515_v26, %v7516_v41  ;;  %v8550_v26 = vld [vmem:[%s10513_s27 + $0xb0] sm:$0x1] }
 0x4be   : > { %8792 = vst [vmem:[%s13287_s11 + $0x38] sm:$0xff] %v8736_v47   ;;  %v7595_v4 = vadd.f32 %v7512_v3, %v7306_v32  ;;  %v7307_v19 = vadd.f32 %v9675_v43, %v13249_v34  ;;  %v7524_v59 = vsel %vm709_vm0, %v7521_v60, %v7523_v15  ;;  %v8693_v7 = vunpack.c.h.bf16 %v8784_v36  ;;  %v8557_v47 = vld [vmem:[%s10513_s27 + $0xcc] sm:$0xff]  }
 0x4bf   : > { %8791 = vst [vmem:[%s13287_s11 + $0x30] sm:$0xff] %v8731_v16   ;;  %v7593_v49 = vadd.f32 %v7507_v30, %v7304_v23  ;;  %v7305_v42 = vadd.f32 %v9678_v28, %v13249_v34  ;;  %v7518_v8 = vrot.slane %v7400_v54, 1  ;;  %v7530_v11 = vrot.slane %v7407_v9, 1 }
 0x4c0   : > { %v7596_v13 = vadd.f32 %v7514_v51, %v7307_v19  ;;  %v7409_v58 = vunpack.c.l.bf16 %v8553_v10  ;;  %v7627_v3 = vmax.f32 %v7595_v4, 0.0  ;;  %v7531_v12 = vrot.slane %v7408_v17, 1  ;;  %v8559_v10 = vld [vmem:[%s10513_s27 + $0xd4] sm:$0x1] }
 0x4c1   : > { %v7594_v25 = vadd.f32 %v7509_v29, %v7305_v42  ;;  %v9577_v35 = vpop.f32.mrb[176].mxu1  ;;  %v7625_v38 = vmax.f32 %v7593_v49, 0.0  ;;  %v7525_v60 = vrot.slane %v8692_v55, 1  ;;  %v7526_v46 = vrot.slane %v8693_v7, 1 }
 0x4c2   : > { %v7628_v40 = vmax.f32 %v7596_v13, 0.0  ;;  %v9681_v44 = vadd.f32 %v13205_v45, %v9577_v35  ;;  %v7202_v30 = vpop.f32.mrb[177].mxu1  ;;  %v7533_v56 = vrot.slane %v7409_v58, 1  ;;  %v7519_v27 = vsel %vm709_vm0, %v7516_v41, %v7518_v8 }
 0x4c3   : > { %v7626_v51 = vmax.f32 %v7594_v25, 0.0  ;;  %v9684_v24 = vadd.f32 %v13199_v61, %v7202_v30  ;;  %v9578_v57 = vpop.f32.mrb[178].mxu1  ;;  %v7406_v15 = vunpack.c.l.bf16 %v8550_v26  ;;  %v7532_v5 = vsel %vm709_vm0, %v7530_v11, %v7531_v12 }
 0x4c4   : > { %v8746_v48 = vpack.c.bf16 %v7628_v40, %v7627_v3  ;;  %v7310_v33 = vadd.f32 %v9681_v44, %v13249_v34  ;;  %v9687_v20 = vadd.f32 %v13208_v22, %v9578_v57  ;;  %v7205_v39 = vpop.f32.mrb[179].mxu1  ;;  %v7527_v54 = vsel %vm709_vm0, %v7525_v60, %v7526_v46 }
 0x4c5   : > { %v8741_v45 = vpack.c.bf16 %v7626_v51, %v7625_v38  ;;  %v7308_v31 = vadd.f32 %v9684_v24, %v13249_v34  ;;  %v9690_v53 = vadd.f32 %v13202_v18, %v7205_v39  ;;  %v8785_v18 = vld [vmem:[%s10513_s27 + $0xc0] sm:$0xff]   ;;  %v7534_v23 = vsel %vm709_vm0, %v7531_v12, %v7533_v56 }
 0x4c6   : > { %8794 = vst [vmem:[%s13287_s11 + $0x48] sm:$0xff] %v8746_v48   ;;  %v7599_v61 = vadd.f32 %v7522_v6, %v7310_v33  ;;  %v7311_v2 = vadd.f32 %v9687_v20, %v13249_v34  ;;  %v7413_v28 = vunpack.c.l.bf16 %v8557_v47  ;;  %v7414_v41 = vunpack.c.h.bf16 %v8557_v47 }
 0x4c7   : > { %8793 = vst [vmem:[%s13287_s11 + $0x40] sm:$0xff] %v8741_v45   ;;  %v7597_v32 = vadd.f32 %v7517_v62, %v7308_v31  ;;  %v7309_v22 = vadd.f32 %v9690_v53, %v13249_v34  ;;  %v7528_v17 = vrot.slane %v7406_v15, 1  ;;  %v8696_v13 = vunpack.c.l.bf16 %v8785_v18  ;;  %v8556_v62 = vld [vmem:[%s10513_s27 + $0xc8] sm:$0x1]  ;;  %s8665_s27 = sshll.u32 %s10330_s21, 11  ;;  %s13417_s21 = scalar_lea.sflag [#allocation5], %s244_s12 }
 0x4c8   : > { %v7600_v43 = vadd.f32 %v7524_v59, %v7311_v2  ;;  %v7631_v9 = vmax.f32 %v7599_v61, 0.0  ;;  %v8697_v8 = vunpack.c.h.bf16 %v8785_v18  ;;  %v7415_v3 = vunpack.c.l.bf16 %v8559_v10  ;;  %s13409_s15 = scalar_lea.hbm %s13468_s5, %s8665_s27 }
 0x4c9   : > { %v7598_v36 = vadd.f32 %v7519_v27, %v7309_v22  ;;  %v9581_v16 = vpop.f32.mrb[180].mxu1  ;;  %v7629_v49 = vmax.f32 %v7597_v32, 0.0  ;;  %v7529_v44 = vsel %vm709_vm0, %v7526_v46, %v7528_v17  ;;  %v7412_v30 = vunpack.c.l.bf16 %v8556_v62 }
 0x4ca   : > { %v7632_v4 = vmax.f32 %v7600_v43, 0.0  ;;  %v9693_v19 = vadd.f32 %v13217_v63, %v9581_v16  ;;  %v7218_v29 = vpop.f32.mrb[181].mxu1  ;;  %v7541_v51 = vrot.slane %v7414_v41, 1  ;;  %v7535_v57 = vrot.slane %v8696_v13, 1 }
 0x4cb   : > { %v7630_v42 = vmax.f32 %v7598_v36, 0.0  ;;  %v9696_v6 = vadd.f32 %v13211_v52, %v7218_v29  ;;  %v9582_v55 = vpop.f32.mrb[182].mxu1  ;;  %v7536_v60 = vrot.slane %v8697_v8, 1  ;;  %v7538_v46 = vrot.slane %v7412_v30, 1 }
 0x4cc   : > { %v8756_v59 = vpack.c.bf16 %v7632_v4, %v7631_v9  ;;  %v7314_v7 = vadd.f32 %v9693_v19, %v13249_v34  ;;  %v9699_v25 = vadd.f32 %v13220_v21, %v9582_v55  ;;  %v7221_v35 = vpop.f32.mrb[183].mxu1  ;;  %v7540_v21 = vrot.slane %v7413_v28, 1 }
 0x4cd   : > { %v8751_v63 = vpack.c.bf16 %v7630_v42, %v7629_v49  ;;  %v7312_v11 = vadd.f32 %v9696_v6, %v13249_v34  ;;  %v9702_v58 = vadd.f32 %v13214_v50, %v7221_v35  ;;  %v7543_v50 = vrot.slane %v7415_v3, 1 }
 0x4ce   : > { %8796 = vst [vmem:[%s13287_s11 + $0x58] sm:$0xff] %v8756_v59   ;;  %v7603_v40 = vadd.f32 %v7532_v5, %v7314_v7  ;;  %v7315_v52 = vadd.f32 %v9699_v25, %v13249_v34  ;;  %v7542_v56 = vsel %vm709_vm0, %v7540_v21, %v7541_v51  ;;  %v7537_v47 = vsel %vm709_vm0, %v7535_v57, %v7536_v60 }
 0x4cf   : > { %8795 = vst [vmem:[%s13287_s11 + $0x50] sm:$0xff] %v8751_v63   ;;  %v7601_v12 = vadd.f32 %v7527_v54, %v7312_v11  ;;  %v7313_v38 = vadd.f32 %v9702_v58, %v13249_v34  ;;  %v7544_v5 = vsel %vm709_vm0, %v7541_v51, %v7543_v50  ;;  %v7539_v36 = vsel %vm709_vm0, %v7536_v60, %v7538_v46 }
 0x4d0   : > { %v7604_v24 = vadd.f32 %v7534_v23, %v7315_v52  ;;  %v7635_v33 = vmax.f32 %v7603_v40, 0.0 }
 0x4d1   : > { %v7602_v26 = vadd.f32 %v7529_v44, %v7313_v38  ;;  %v9585_v48 = vpop.f32.mrb[184].mxu1  ;;  %v7633_v31 = vmax.f32 %v7601_v12, 0.0 }
 0x4d2   : > { %v7636_v20 = vmax.f32 %v7604_v24, 0.0  ;;  %v9705_v39 = vadd.f32 %v13232_v14, %v9585_v48  ;;  %v7234_v45 = vpop.f32.mrb[185].mxu1 }
 0x4d3   : > { %v7634_v53 = vmax.f32 %v7602_v26, 0.0  ;;  %v9708_v61 = vadd.f32 %v13223_v37, %v7234_v45  ;;  %v9586_v2 = vpop.f32.mrb[186].mxu1 }
 0x4d4   : > { %v8766_v27 = vpack.c.bf16 %v7636_v20, %v7635_v33  ;;  %v7318_v15 = vadd.f32 %v9705_v39, %v13249_v34  ;;  %v9711_v32 = vadd.f32 %v13235_v1, %v9586_v2  ;;  %v7237_v14 = vpop.f32.mrb[187].mxu1 }
 0x4d5   : > { %v8761_v22 = vpack.c.bf16 %v7634_v53, %v7633_v31  ;;  %v7316_v43 = vadd.f32 %v9708_v61, %v13249_v34  ;;  %v9714_v54 = vadd.f32 %v13226_v0, %v7237_v14 }
 0x4d6   : > { %8798 = vst [vmem:[%s13287_s11 + $0x68] sm:$0xff] %v8766_v27   ;;  %v7607_v37 = vadd.f32 %v7542_v56, %v7318_v15  ;;  %v7319_v18 = vadd.f32 %v9711_v32, %v13249_v34 }
 0x4d7   : > { %8797 = vst [vmem:[%s13287_s11 + $0x60] sm:$0xff] %v8761_v22   ;;  %v7605_v16 = vadd.f32 %v7537_v47, %v7316_v43  ;;  %v7317_v1 = vadd.f32 %v9714_v54, %v13249_v34 }
 0x4d8   : > { %v7608_v23 = vadd.f32 %v7544_v5, %v7319_v18  ;;  %v7639_v41 = vmax.f32 %v7607_v37, 0.0 }
 0x4d9   : > { %v7606_v28 = vadd.f32 %v7539_v36, %v7317_v1  ;;  %v7637_v9 = vmax.f32 %v7605_v16, 0.0 }
 0x4da   : > { %v7640_v0 = vmax.f32 %v7608_v23, 0.0 }
 0x4db   : > { %v7638_v4 = vmax.f32 %v7606_v28, 0.0 }
 0x4dc   : > { %v8776_v19 = vpack.c.bf16 %v7640_v0, %v7639_v41 }
 0x4dd   : > { %v8771_v34 = vpack.c.bf16 %v7638_v4, %v7637_v9 }
 0x4de   : > { %8800 = vst [vmem:[%s13287_s11 + $0x78] sm:$0xff] %v8776_v19  }
 0x4df   : > { %8799 = vst [vmem:[%s13287_s11 + $0x70] sm:$0xff] %v8771_v34  }
 0x4e0   : > { %10269 = shalt.err (!%p10266_p6)
}
 0x4e1   : > { %s10270_s25 = scalar_lea.hbm %s13409_s15, 2048  ;;  %s10274_s12 = scalar_lea.hbm %s13468_s5, 4096 }
 0x4e2   : > { %p10271_p7 = scmp.ne.s32.totalorder %s13409_s15, %s10270_s25  ;;  %p10275_p0 = scmp.lt.u32.totalorder %s13409_s15, %s13468_s5 }
 0x4e3   : > { %p10276_p2 = scmp.lt.u32.totalorder %s10274_s12, %s10270_s25  ;;  %p10278_p8 = scmp.lt.u32.totalorder %s10270_s25, %s13409_s15 }
 0x4e4   : > { %p10272_p9 = pnand %p10271_p7, %p13597_p10 }
 0x4e5   : > { %p10277_p4 = por %p10276_p2, %p10275_p0 }
 0x4e6   : > { %p10273_p12 = pneg %p10272_p9 }
 0x4e7   : > { %p10279_p11 = por %p10278_p8, %p10277_p4 }
 0x4e9   : > { %p10280_p13 = pnand %p10279_p11, %p10273_p12 }
 0x4eb   : > { %10283 = shalt.err (!%p10280_p13)
}
 0x4ec   : > { %s10345_s27 = smov 64   ;;  %s10346_s14 = smov 4  }
 0x4ed   : > { %9784 = dma.vmem_to_hbm [thread:$0]  (%p13597_p10), %s13411_s10, 2048, %s13409_s15, %s13417_s21, %s10345_s27, %s10345_s27, %s10346_s14  }
 0x4ee PF: > { %p9796_p1 = scmp.ge.s32.totalorder %s10338_s23, 2  ;;  %s7833_s7 = sand.u32 1, %s10318_s18  }
 0x4ef   : > { %p13598_p3 = scmp.ne.s32.totalorder %s13478_s30, 0  ;;  %s7834_s8 = scalar_lea.sflag [#allocation5], %s7833_s7 }
 0x4f1   : > { %p9791_p5 = pnand %p9796_p1, %p13598_p3 }
 0x4f3   : > { %10313 = dma.done.wait (!%p9791_p5), %s7834_s8, 2048  }
 0x4f4   : > { %10315 = vsyncadd (!%p9791_p5), %s7834_s8, 4294965248  ;;  %s19_s23 = sadd.s32 1, %s10338_s23   ;;  %s13599_s18 = smov %s10322_s19 }
 0x4f5   : > { %p16_p6 = scmp.ge.s32.totalorder %s19_s23, 4   ;;  %s13600_s19 = smov %s10326_s20 }
 0x4f6   : > { %s13601_s20 = smov %s10430_s6  ;;  %s13602_s21 = smov %s10334_s22 }
 0x4f7   : > { %s13603_s22 = smov %s13605_s26  ;;  %18 = sbr.rel (!%p16_p6) target bundleno = 5 (0x5), region = 94 }
 0x4fe   :  { %7839 = vsyncpa [#allocation4], 1 }
 0x4ff   :  { %7841 = vsyncpa [#allocation4 + $0x1], 1 }
 0x500   :  { %7842 = vsyncpa [#allocation5], 1 }
 0x501   :  { %7844 = vsyncpa [#allocation5 + $0x1], 1 }

</bundles_post_ra>
